<compile_context>
chip_gen: v7x
topology: tpu7x:2x2x1
jax: 0.10.0
libtpu: 0.0.40
codegen_flags: <defaults>
</compile_context>

<pallas_src>
import jax
import jax.numpy as jnp
from jax.experimental import pallas as pl
from jax.experimental.pallas import tpu as pltpu  # noqa: F401  (TPU backend)


# ----------------------------------------------------------------------------
# Fused forward kernel (built per static shape configuration)
# ----------------------------------------------------------------------------
def _make_encoder_kernel(B, T, E, L1, L2, H, Tc, In):
    Np = Tc * In          # flattened conv output width
    H2 = 2 * H
    H3 = 3 * H

    def kernel(x_ref, len_ref, w1_ref, b1_ref, w2_ref, b2_ref,
               m3_ref, c3_ref, wih_ref, bih_ref, whh_ref, bhh_ref,
               out_ref, hid_ref):
        f32 = jnp.float32

        # ---- lila1 -> tanh -> lila2 -> tanh  (rows are (t, b), t-major) ----
        x = x_ref[...]                                              # (T*B, E)
        h1 = jnp.tanh(jnp.dot(x, w1_ref[...], preferred_element_type=f32)
                      + b1_ref[...])                                # (T*B, L1)
        h2 = jnp.tanh(jnp.dot(h1, w2_ref[...], preferred_element_type=f32)
                      + b2_ref[...])                                # (T*B, L2)

        # ---- conv1 o conv2 as the precomputed affine map (exact) ----
        # conv_flat[b, tc*In + j] = sum_t  h2[t*B+b, :] @ M3[t, :, tc*In + j]  + c3
        acc = jnp.zeros((B, Np), dtype=f32)
        for t in range(T):                                          # static unroll
            xt = h2[t * B:(t + 1) * B, :]                           # (B, L2)
            acc = acc + jnp.dot(xt, m3_ref[t], preferred_element_type=f32)
        conv_flat = acc + c3_ref[...]                               # (B, Tc*In)

        # ---- GRU input projections, hoisted out of the recurrence ----
        wih_f = wih_ref[0]          # (In, 3H), gate order [r | z | n]
        wih_b = wih_ref[1]
        bih_f = bih_ref[0]          # (1, 3H)
        bih_b = bih_ref[1]
        xs_f = []
        xs_b = []
        for t in range(Tc):                                         # static unroll
            blk = conv_flat[:, t * In:(t + 1) * In]                 # (B, In)
            xs_f.append(jnp.dot(blk, wih_f, preferred_element_type=f32) + bih_f)
            xs_b.append(jnp.dot(blk, wih_b, preferred_element_type=f32) + bih_b)

        # ---- bidirectional recurrence with packed-sequence semantics ----
        lengths = len_ref[...]                                      # (B, 1) int32
        whh_f = whh_ref[0]          # (H, 3H)
        whh_b = whh_ref[1]
        bhh_f = bhh_ref[0]          # (1, 3H)
        bhh_b = bhh_ref[1]

        h_f = jnp.zeros((B, H), dtype=f32)
        h_b = jnp.zeros((B, H), dtype=f32)
        for t in range(Tc):                                         # static unroll
            tb = Tc - 1 - t
            # forward direction, position t
            xp = xs_f[t]
            hp = jnp.dot(h_f, whh_f, preferred_element_type=f32) + bhh_f   # (B, 3H)
            r = jax.nn.sigmoid(xp[:, 0:H] + hp[:, 0:H])
            z = jax.nn.sigmoid(xp[:, H:2 * H] + hp[:, H:2 * H])
            n = jnp.tanh(xp[:, 2 * H:H3] + r * hp[:, 2 * H:H3])
            cand = (1.0 - z) * n + z * h_f
            valid = lengths > t                                     # (B, 1) bool
            h_f = jnp.where(valid, cand, h_f)                       # freeze past len
            out_ref[t, :, 0:H] = jnp.where(valid, h_f, 0.0)         # zero-pad

            # backward direction, position tb
            xp = xs_b[tb]
            hp = jnp.dot(h_b, whh_b, preferred_element_type=f32) + bhh_b
            r = jax.nn.sigmoid(xp[:, 0:H] + hp[:, 0:H])
            z = jax.nn.sigmoid(xp[:, H:2 * H] + hp[:, H:2 * H])
            n = jnp.tanh(xp[:, 2 * H:H3] + r * hp[:, 2 * H:H3])
            cand = (1.0 - z) * n + z * h_b
            valid = lengths > tb
            h_b = jnp.where(valid, cand, h_b)
            out_ref[tb, :, H:H2] = jnp.where(valid, h_b, 0.0)

        hid_ref[:, 0:H] = h_f        # state at last valid step (forward)
        hid_ref[:, H:H2] = h_b       # state after processing position 0 (backward)

    return kernel


# ----------------------------------------------------------------------------
# Host-side (init-time) composition of conv1 o conv2 into one affine map.
# Exact (including zero-padding boundary behaviour): probe the reference conv
# pipeline with basis vectors.  Done once at __init__, never in the forward.
# ----------------------------------------------------------------------------
def _compose_conv_affine(cw1, cb1, cw2, cb2, T, L2):
    def pipeline(x):  # x: (N, T, L2)
        y = jax.lax.conv_general_dilated(
            x[:, None, :, :], cw1, window_strides=(2, 2),
            padding=((1, 1), (1, 1)),
            dimension_numbers=('NCHW', 'OIHW', 'NCHW'))
        y = y + cb1[None, :, None, None]
        y = jax.lax.conv_general_dilated(
            y, cw2, window_strides=(2, 2),
            padding=((1, 1), (1, 1)),
            dimension_numbers=('NCHW', 'OIHW', 'NCHW'))
        y = y + cb2[None, :, None, None]
        # PyTorch: transpose(1,3).transpose(1,2) -> (N, H', W', C); flatten(2)
        y = jnp.transpose(y, (0, 2, 3, 1))
        return y.reshape(y.shape[0], -1)          # (N, H'*W'*C)

    c3 = pipeline(jnp.zeros((1, T, L2), jnp.float32))               # (1, Np)
    eye = jnp.eye(T * L2, dtype=jnp.float32).reshape(T * L2, T, L2)
    m = pipeline(eye) - c3                                          # (T*L2, Np)
    np_ = m.shape[1]
    # TODO(synk): for long T the dense composed matrix grows as (T*L2)^2; exploit
    # its banded (7-row receptive field) structure with windowed matmuls instead.
    return m.reshape(T, L2, np_).astype(jnp.float32), c3.astype(jnp.float32), np_


# ----------------------------------------------------------------------------
# Module
# ----------------------------------------------------------------------------
class SpeechRecurrentEncoderPallas:
    def __init__(self, key, emb_size=40, linear_hidden_size_1=32,
                 linear_hidden_size_2=16, hidden_size=32, max_src_len=32):
        assert linear_hidden_size_2 % 4 == 0
        self.emb_size = emb_size
        self.l1 = linear_hidden_size_1
        self.l2 = linear_hidden_size_2
        self.hidden = hidden_size
        self.rnn_in = 4 * linear_hidden_size_2
        self.max_src_len = max_src_len
        self._output_size = 2 * hidden_size

        # conv output geometry (k=3, s=2, p=1 twice)
        ho1 = (max_src_len - 1) // 2 + 1
        ho2 = (ho1 - 1) // 2 + 1
        wo1 = (linear_hidden_size_2 - 1) // 2 + 1
        wo2 = (wo1 - 1) // 2 + 1
        assert wo2 * 16 == self.rnn_in, "conv feature width must equal 4*L2"
        self.conv_time_len = ho2

        ks = jax.random.split(key, 12)
        s = 0.1
        f32 = jnp.float32
        E, L1, L2, H, In = emb_size, self.l1, self.l2, hidden_size, self.rnn_in

        # lila1 / lila2 (stored transposed: (in, out)); biases pre-shaped (1, out)
        w1 = s * jax.random.normal(ks[0], (E, L1), f32)
        b1 = s * jax.random.normal(ks[1], (1, L1), f32)
        w2 = s * jax.random.normal(ks[2], (L1, L2), f32)
        b2 = s * jax.random.normal(ks[3], (1, L2), f32)
        # conv weights (only used to build the composed affine map)
        cw1 = s * jax.random.normal(ks[4], (16, 1, 3, 3), f32)
        cb1 = s * jax.random.normal(ks[5], (16,), f32)
        cw2 = s * jax.random.normal(ks[6], (16, 16, 3, 3), f32)
        cb2 = s * jax.random.normal(ks[7], (16,), f32)
        m3, c3, np_ = _compose_conv_affine(cw1, cb1, cw2, cb2, max_src_len, L2)
        assert np_ == ho2 * In
        # bidirectional GRU, 1 layer; gate-concatenated lane-dense weights
        # dir 0 = forward, dir 1 = backward; gate column order [r | z | n]
        w_ih = s * jax.random.normal(ks[8], (2, In, 3 * H), f32)
        w_hh = s * jax.random.normal(ks[9], (2, H, 3 * H), f32)
        b_ih = s * jax.random.normal(ks[10], (2, 1, 3 * H), f32)
        b_hh = s * jax.random.normal(ks[11], (2, 1, 3 * H), f32)

        self.params = dict(w1=w1, b1=b1, w2=w2, b2=b2, m3=m3, c3=c3,
                           w_ih=w_ih, w_hh=w_hh, b_ih=b_ih, b_hh=b_hh)

        self._fwd = jax.jit(self._forward)

    @property
    def output_size(self):
        return self._output_size

    def _forward(self, params, embed_src, conv_length):
        B, T, E = embed_src.shape
        assert T == self.max_src_len, "composed conv map was built for max_src_len"
        L1, L2, H = self.l1, self.l2, self.hidden
        Tc, In = self.conv_time_len, self.rnn_in

        # rows t-major (row = t*B + b) so the conv loop slices contiguous rows
        x2d = embed_src.astype(jnp.float32).transpose(1, 0, 2).reshape(T * B, E)
        lengths = conv_length.reshape(B, 1).astype(jnp.int32)

        kernel = _make_encoder_kernel(B, T, E, L1, L2, H, Tc, In)
        out_seq, hidden = pl.pallas_call(
            kernel,
            out_shape=(
                jax.ShapeDtypeStruct((Tc, B, 2 * H), jnp.float32),
                jax.ShapeDtypeStruct((B, 2 * H), jnp.float32),
            ),
        )(x2d, lengths,
          params['w1'], params['b1'], params['w2'], params['b2'],
          params['m3'], params['c3'],
          params['w_ih'], params['b_ih'], params['w_hh'], params['b_hh'])

        # (Tc, B, 2H) -> (B, Tc, 2H).  Rows >= conv_length are exact zeros, which is
        # what pad_packed_sequence produces; the static Tc time dim avoids any
        # device->host sync on max(conv_length).
        output = out_seq.transpose(1, 0, 2)
        return output, hidden

    def __call__(self, embed_src, src_length, mask, conv_length):
        # _check_shapes_input_forward
        assert embed_src.shape[0] == src_length.shape[0]
        assert embed_src.shape[2] == self.emb_size
        assert len(src_length.shape) == 1
        # emb_dropout / input_layer_dropout / rnn_input_dropout: identity (eval)
        return self._fwd(self.params, embed_src, conv_length)


# ----------------------------------------------------------------------------
if __name__ == "__main__":
    key = jax.random.PRNGKey(0)
    k_param, k_in = jax.random.split(key)

    B, T, E = 2, 32, 40          # batch, src_len, emb_size
    L1, L2, H = 32, 16, 32       # linear_hidden_size_1/2, hidden_size

    enc = SpeechRecurrentEncoderPallas(k_param, emb_size=E,
                                       linear_hidden_size_1=L1,
                                       linear_hidden_size_2=L2,
                                       hidden_size=H,
                                       max_src_len=T)
    Tc = enc.conv_time_len       # = 8 for T = 32

    embed_src = jax.random.normal(k_in, (B, T, E), jnp.float32)
    src_length = jnp.array([T, T - 8], jnp.int32)          # sorted descending
    conv_length = jnp.array([Tc, Tc - 2], jnp.int32)       # sorted descending
    mask = jnp.ones((B, T, 1), jnp.bool_)                  # unused by forward

    output, hidden_concat = enc(embed_src, src_length, mask, conv_length)
    jax.block_until_ready((output, hidden_concat))

    assert output.shape == (B, Tc, 2 * H), output.shape
    assert hidden_concat.shape == (B, 2 * H), hidden_concat.shape
    # padded positions beyond conv_length must be exactly zero (pad_packed_sequence)
    assert float(jnp.abs(output[1, Tc - 2:]).max()) == 0.0

    print("KERNEL_OK")
</pallas_src>

<mosaic_0001>
module attributes {stable_mosaic.version = 11 : i64} {
  func.func @kernel(%arg0: memref<64x40xf32, #tpu.memory_space<vmem>>, %arg1: memref<2x1xi32, #tpu.memory_space<vmem>>, %arg2: memref<40x32xf32, #tpu.memory_space<vmem>>, %arg3: memref<1x32xf32, #tpu.memory_space<vmem>>, %arg4: memref<32x16xf32, #tpu.memory_space<vmem>>, %arg5: memref<1x16xf32, #tpu.memory_space<vmem>>, %arg6: memref<32x16x512xf32, #tpu.memory_space<vmem>>, %arg7: memref<1x512xf32, #tpu.memory_space<vmem>>, %arg8: memref<2x64x96xf32, #tpu.memory_space<vmem>>, %arg9: memref<2x1x96xf32, #tpu.memory_space<vmem>>, %arg10: memref<2x32x96xf32, #tpu.memory_space<vmem>>, %arg11: memref<2x1x96xf32, #tpu.memory_space<vmem>>, %arg12: memref<8x2x64xf32, #tpu.memory_space<vmem>>, %arg13: memref<2x64xf32, #tpu.memory_space<vmem>>) attributes {dimension_semantics = [], scalar_prefetch = 0 : i64, scratch_operands = 0 : i64, tpu.core_type = #tpu.core_type<tc>} {
    %c0 = arith.constant 0 : index
    %c0_0 = arith.constant 0 : index
    %0 = vector.load %arg0[%c0, %c0_0] : memref<64x40xf32, #tpu.memory_space<vmem>>, vector<64x40xf32>
    %c0_1 = arith.constant 0 : index
    %c0_2 = arith.constant 0 : index
    %1 = vector.load %arg2[%c0_1, %c0_2] : memref<40x32xf32, #tpu.memory_space<vmem>>, vector<40x32xf32>
    %cst = arith.constant dense<0.000000e+00> : vector<64x32xf32>
    %2 = tpu.matmul %0, %1, %cst {dimension_numbers = #tpu.dot_dimension_numbers<[1], [0], [0], [1], [0, 0, 1, 1], [], []>} : vector<64x40xf32>, vector<40x32xf32>, vector<64x32xf32> -> vector<64x32xf32>
    %c0_3 = arith.constant 0 : index
    %c0_4 = arith.constant 0 : index
    %3 = vector.load %arg3[%c0_3, %c0_4] : memref<1x32xf32, #tpu.memory_space<vmem>>, vector<1x32xf32>
    %4 = vector.broadcast %3 : vector<1x32xf32> to vector<64x32xf32>
    %5 = arith.addf %2, %4 : vector<64x32xf32>
    %6 = math.tanh %5 : vector<64x32xf32>
    %c0_5 = arith.constant 0 : index
    %c0_6 = arith.constant 0 : index
    %7 = vector.load %arg4[%c0_5, %c0_6] : memref<32x16xf32, #tpu.memory_space<vmem>>, vector<32x16xf32>
    %cst_7 = arith.constant dense<0.000000e+00> : vector<64x16xf32>
    %8 = tpu.matmul %6, %7, %cst_7 {dimension_numbers = #tpu.dot_dimension_numbers<[1], [0], [0], [1], [0, 0, 1, 1], [], []>} : vector<64x32xf32>, vector<32x16xf32>, vector<64x16xf32> -> vector<64x16xf32>
    %c0_8 = arith.constant 0 : index
    %c0_9 = arith.constant 0 : index
    %9 = vector.load %arg5[%c0_8, %c0_9] : memref<1x16xf32, #tpu.memory_space<vmem>>, vector<1x16xf32>
    %10 = vector.broadcast %9 : vector<1x16xf32> to vector<64x16xf32>
    %11 = arith.addf %8, %10 : vector<64x16xf32>
    %12 = math.tanh %11 : vector<64x16xf32>
    %cst_10 = arith.constant 0.000000e+00 : f32
    %13 = vector.broadcast %cst_10 : f32 to vector<2x512xf32>
    %14 = vector.extract_strided_slice %12 {offsets = [0, 0], sizes = [2, 16], strides = [1, 1]} : vector<64x16xf32> to vector<2x16xf32>
    %c0_11 = arith.constant 0 : index
    %c0_12 = arith.constant 0 : index
    %c0_13 = arith.constant 0 : index
    %15 = vector.load %arg6[%c0_11, %c0_12, %c0_13] : memref<32x16x512xf32, #tpu.memory_space<vmem>>, vector<1x16x512xf32>
    %16 = vector.shape_cast %15 : vector<1x16x512xf32> to vector<16x512xf32>
    %cst_14 = arith.constant dense<0.000000e+00> : vector<2x512xf32>
    %17 = tpu.matmul %14, %16, %cst_14 {dimension_numbers = #tpu.dot_dimension_numbers<[1], [0], [0], [1], [0, 0, 1, 1], [], []>} : vector<2x16xf32>, vector<16x512xf32>, vector<2x512xf32> -> vector<2x512xf32>
    %18 = arith.addf %13, %17 : vector<2x512xf32>
    %19 = vector.extract_strided_slice %12 {offsets = [2, 0], sizes = [2, 16], strides = [1, 1]} : vector<64x16xf32> to vector<2x16xf32>
    %c1 = arith.constant 1 : index
    %c0_15 = arith.constant 0 : index
    %c0_16 = arith.constant 0 : index
    %20 = vector.load %arg6[%c1, %c0_15, %c0_16] : memref<32x16x512xf32, #tpu.memory_space<vmem>>, vector<1x16x512xf32>
    %21 = vector.shape_cast %20 : vector<1x16x512xf32> to vector<16x512xf32>
    %cst_17 = arith.constant dense<0.000000e+00> : vector<2x512xf32>
    %22 = tpu.matmul %19, %21, %cst_17 {dimension_numbers = #tpu.dot_dimension_numbers<[1], [0], [0], [1], [0, 0, 1, 1], [], []>} : vector<2x16xf32>, vector<16x512xf32>, vector<2x512xf32> -> vector<2x512xf32>
    %23 = arith.addf %18, %22 : vector<2x512xf32>
    %24 = vector.extract_strided_slice %12 {offsets = [4, 0], sizes = [2, 16], strides = [1, 1]} : vector<64x16xf32> to vector<2x16xf32>
    %c2 = arith.constant 2 : index
    %c0_18 = arith.constant 0 : index
    %c0_19 = arith.constant 0 : index
    %25 = vector.load %arg6[%c2, %c0_18, %c0_19] : memref<32x16x512xf32, #tpu.memory_space<vmem>>, vector<1x16x512xf32>
    %26 = vector.shape_cast %25 : vector<1x16x512xf32> to vector<16x512xf32>
    %cst_20 = arith.constant dense<0.000000e+00> : vector<2x512xf32>
    %27 = tpu.matmul %24, %26, %cst_20 {dimension_numbers = #tpu.dot_dimension_numbers<[1], [0], [0], [1], [0, 0, 1, 1], [], []>} : vector<2x16xf32>, vector<16x512xf32>, vector<2x512xf32> -> vector<2x512xf32>
    %28 = arith.addf %23, %27 : vector<2x512xf32>
    %29 = vector.extract_strided_slice %12 {offsets = [6, 0], sizes = [2, 16], strides = [1, 1]} : vector<64x16xf32> to vector<2x16xf32>
    %c3 = arith.constant 3 : index
    %c0_21 = arith.constant 0 : index
    %c0_22 = arith.constant 0 : index
    %30 = vector.load %arg6[%c3, %c0_21, %c0_22] : memref<32x16x512xf32, #tpu.memory_space<vmem>>, vector<1x16x512xf32>
    %31 = vector.shape_cast %30 : vector<1x16x512xf32> to vector<16x512xf32>
    %cst_23 = arith.constant dense<0.000000e+00> : vector<2x512xf32>
    %32 = tpu.matmul %29, %31, %cst_23 {dimension_numbers = #tpu.dot_dimension_numbers<[1], [0], [0], [1], [0, 0, 1, 1], [], []>} : vector<2x16xf32>, vector<16x512xf32>, vector<2x512xf32> -> vector<2x512xf32>
    %33 = arith.addf %28, %32 : vector<2x512xf32>
    %34 = vector.extract_strided_slice %12 {offsets = [8, 0], sizes = [2, 16], strides = [1, 1]} : vector<64x16xf32> to vector<2x16xf32>
    %c4 = arith.constant 4 : index
    %c0_24 = arith.constant 0 : index
    %c0_25 = arith.constant 0 : index
    %35 = vector.load %arg6[%c4, %c0_24, %c0_25] : memref<32x16x512xf32, #tpu.memory_space<vmem>>, vector<1x16x512xf32>
    %36 = vector.shape_cast %35 : vector<1x16x512xf32> to vector<16x512xf32>
    %cst_26 = arith.constant dense<0.000000e+00> : vector<2x512xf32>
    %37 = tpu.matmul %34, %36, %cst_26 {dimension_numbers = #tpu.dot_dimension_numbers<[1], [0], [0], [1], [0, 0, 1, 1], [], []>} : vector<2x16xf32>, vector<16x512xf32>, vector<2x512xf32> -> vector<2x512xf32>
    %38 = arith.addf %33, %37 : vector<2x512xf32>
    %39 = vector.extract_strided_slice %12 {offsets = [10, 0], sizes = [2, 16], strides = [1, 1]} : vector<64x16xf32> to vector<2x16xf32>
    %c5 = arith.constant 5 : index
    %c0_27 = arith.constant 0 : index
    %c0_28 = arith.constant 0 : index
    %40 = vector.load %arg6[%c5, %c0_27, %c0_28] : memref<32x16x512xf32, #tpu.memory_space<vmem>>, vector<1x16x512xf32>
    %41 = vector.shape_cast %40 : vector<1x16x512xf32> to vector<16x512xf32>
    %cst_29 = arith.constant dense<0.000000e+00> : vector<2x512xf32>
    %42 = tpu.matmul %39, %41, %cst_29 {dimension_numbers = #tpu.dot_dimension_numbers<[1], [0], [0], [1], [0, 0, 1, 1], [], []>} : vector<2x16xf32>, vector<16x512xf32>, vector<2x512xf32> -> vector<2x512xf32>
    %43 = arith.addf %38, %42 : vector<2x512xf32>
    %44 = vector.extract_strided_slice %12 {offsets = [12, 0], sizes = [2, 16], strides = [1, 1]} : vector<64x16xf32> to vector<2x16xf32>
    %c6 = arith.constant 6 : index
    %c0_30 = arith.constant 0 : index
    %c0_31 = arith.constant 0 : index
    %45 = vector.load %arg6[%c6, %c0_30, %c0_31] : memref<32x16x512xf32, #tpu.memory_space<vmem>>, vector<1x16x512xf32>
    %46 = vector.shape_cast %45 : vector<1x16x512xf32> to vector<16x512xf32>
    %cst_32 = arith.constant dense<0.000000e+00> : vector<2x512xf32>
    %47 = tpu.matmul %44, %46, %cst_32 {dimension_numbers = #tpu.dot_dimension_numbers<[1], [0], [0], [1], [0, 0, 1, 1], [], []>} : vector<2x16xf32>, vector<16x512xf32>, vector<2x512xf32> -> vector<2x512xf32>
    %48 = arith.addf %43, %47 : vector<2x512xf32>
    %49 = vector.extract_strided_slice %12 {offsets = [14, 0], sizes = [2, 16], strides = [1, 1]} : vector<64x16xf32> to vector<2x16xf32>
    %c7 = arith.constant 7 : index
    %c0_33 = arith.constant 0 : index
    %c0_34 = arith.constant 0 : index
    %50 = vector.load %arg6[%c7, %c0_33, %c0_34] : memref<32x16x512xf32, #tpu.memory_space<vmem>>, vector<1x16x512xf32>
    %51 = vector.shape_cast %50 : vector<1x16x512xf32> to vector<16x512xf32>
    %cst_35 = arith.constant dense<0.000000e+00> : vector<2x512xf32>
    %52 = tpu.matmul %49, %51, %cst_35 {dimension_numbers = #tpu.dot_dimension_numbers<[1], [0], [0], [1], [0, 0, 1, 1], [], []>} : vector<2x16xf32>, vector<16x512xf32>, vector<2x512xf32> -> vector<2x512xf32>
    %53 = arith.addf %48, %52 : vector<2x512xf32>
    %54 = vector.extract_strided_slice %12 {offsets = [16, 0], sizes = [2, 16], strides = [1, 1]} : vector<64x16xf32> to vector<2x16xf32>
    %c8 = arith.constant 8 : index
    %c0_36 = arith.constant 0 : index
    %c0_37 = arith.constant 0 : index
    %55 = vector.load %arg6[%c8, %c0_36, %c0_37] : memref<32x16x512xf32, #tpu.memory_space<vmem>>, vector<1x16x512xf32>
    %56 = vector.shape_cast %55 : vector<1x16x512xf32> to vector<16x512xf32>
    %cst_38 = arith.constant dense<0.000000e+00> : vector<2x512xf32>
    %57 = tpu.matmul %54, %56, %cst_38 {dimension_numbers = #tpu.dot_dimension_numbers<[1], [0], [0], [1], [0, 0, 1, 1], [], []>} : vector<2x16xf32>, vector<16x512xf32>, vector<2x512xf32> -> vector<2x512xf32>
    %58 = arith.addf %53, %57 : vector<2x512xf32>
    %59 = vector.extract_strided_slice %12 {offsets = [18, 0], sizes = [2, 16], strides = [1, 1]} : vector<64x16xf32> to vector<2x16xf32>
    %c9 = arith.constant 9 : index
    %c0_39 = arith.constant 0 : index
    %c0_40 = arith.constant 0 : index
    %60 = vector.load %arg6[%c9, %c0_39, %c0_40] : memref<32x16x512xf32, #tpu.memory_space<vmem>>, vector<1x16x512xf32>
    %61 = vector.shape_cast %60 : vector<1x16x512xf32> to vector<16x512xf32>
    %cst_41 = arith.constant dense<0.000000e+00> : vector<2x512xf32>
    %62 = tpu.matmul %59, %61, %cst_41 {dimension_numbers = #tpu.dot_dimension_numbers<[1], [0], [0], [1], [0, 0, 1, 1], [], []>} : vector<2x16xf32>, vector<16x512xf32>, vector<2x512xf32> -> vector<2x512xf32>
    %63 = arith.addf %58, %62 : vector<2x512xf32>
    %64 = vector.extract_strided_slice %12 {offsets = [20, 0], sizes = [2, 16], strides = [1, 1]} : vector<64x16xf32> to vector<2x16xf32>
    %c10 = arith.constant 10 : index
    %c0_42 = arith.constant 0 : index
    %c0_43 = arith.constant 0 : index
    %65 = vector.load %arg6[%c10, %c0_42, %c0_43] : memref<32x16x512xf32, #tpu.memory_space<vmem>>, vector<1x16x512xf32>
    %66 = vector.shape_cast %65 : vector<1x16x512xf32> to vector<16x512xf32>
    %cst_44 = arith.constant dense<0.000000e+00> : vector<2x512xf32>
    %67 = tpu.matmul %64, %66, %cst_44 {dimension_numbers = #tpu.dot_dimension_numbers<[1], [0], [0], [1], [0, 0, 1, 1], [], []>} : vector<2x16xf32>, vector<16x512xf32>, vector<2x512xf32> -> vector<2x512xf32>
    %68 = arith.addf %63, %67 : vector<2x512xf32>
    %69 = vector.extract_strided_slice %12 {offsets = [22, 0], sizes = [2, 16], strides = [1, 1]} : vector<64x16xf32> to vector<2x16xf32>
    %c11 = arith.constant 11 : index
    %c0_45 = arith.constant 0 : index
    %c0_46 = arith.constant 0 : index
    %70 = vector.load %arg6[%c11, %c0_45, %c0_46] : memref<32x16x512xf32, #tpu.memory_space<vmem>>, vector<1x16x512xf32>
    %71 = vector.shape_cast %70 : vector<1x16x512xf32> to vector<16x512xf32>
    %cst_47 = arith.constant dense<0.000000e+00> : vector<2x512xf32>
    %72 = tpu.matmul %69, %71, %cst_47 {dimension_numbers = #tpu.dot_dimension_numbers<[1], [0], [0], [1], [0, 0, 1, 1], [], []>} : vector<2x16xf32>, vector<16x512xf32>, vector<2x512xf32> -> vector<2x512xf32>
    %73 = arith.addf %68, %72 : vector<2x512xf32>
    %74 = vector.extract_strided_slice %12 {offsets = [24, 0], sizes = [2, 16], strides = [1, 1]} : vector<64x16xf32> to vector<2x16xf32>
    %c12 = arith.constant 12 : index
    %c0_48 = arith.constant 0 : index
    %c0_49 = arith.constant 0 : index
    %75 = vector.load %arg6[%c12, %c0_48, %c0_49] : memref<32x16x512xf32, #tpu.memory_space<vmem>>, vector<1x16x512xf32>
    %76 = vector.shape_cast %75 : vector<1x16x512xf32> to vector<16x512xf32>
    %cst_50 = arith.constant dense<0.000000e+00> : vector<2x512xf32>
    %77 = tpu.matmul %74, %76, %cst_50 {dimension_numbers = #tpu.dot_dimension_numbers<[1], [0], [0], [1], [0, 0, 1, 1], [], []>} : vector<2x16xf32>, vector<16x512xf32>, vector<2x512xf32> -> vector<2x512xf32>
    %78 = arith.addf %73, %77 : vector<2x512xf32>
    %79 = vector.extract_strided_slice %12 {offsets = [26, 0], sizes = [2, 16], strides = [1, 1]} : vector<64x16xf32> to vector<2x16xf32>
    %c13 = arith.constant 13 : index
    %c0_51 = arith.constant 0 : index
    %c0_52 = arith.constant 0 : index
    %80 = vector.load %arg6[%c13, %c0_51, %c0_52] : memref<32x16x512xf32, #tpu.memory_space<vmem>>, vector<1x16x512xf32>
    %81 = vector.shape_cast %80 : vector<1x16x512xf32> to vector<16x512xf32>
    %cst_53 = arith.constant dense<0.000000e+00> : vector<2x512xf32>
    %82 = tpu.matmul %79, %81, %cst_53 {dimension_numbers = #tpu.dot_dimension_numbers<[1], [0], [0], [1], [0, 0, 1, 1], [], []>} : vector<2x16xf32>, vector<16x512xf32>, vector<2x512xf32> -> vector<2x512xf32>
    %83 = arith.addf %78, %82 : vector<2x512xf32>
    %84 = vector.extract_strided_slice %12 {offsets = [28, 0], sizes = [2, 16], strides = [1, 1]} : vector<64x16xf32> to vector<2x16xf32>
    %c14 = arith.constant 14 : index
    %c0_54 = arith.constant 0 : index
    %c0_55 = arith.constant 0 : index
    %85 = vector.load %arg6[%c14, %c0_54, %c0_55] : memref<32x16x512xf32, #tpu.memory_space<vmem>>, vector<1x16x512xf32>
    %86 = vector.shape_cast %85 : vector<1x16x512xf32> to vector<16x512xf32>
    %cst_56 = arith.constant dense<0.000000e+00> : vector<2x512xf32>
    %87 = tpu.matmul %84, %86, %cst_56 {dimension_numbers = #tpu.dot_dimension_numbers<[1], [0], [0], [1], [0, 0, 1, 1], [], []>} : vector<2x16xf32>, vector<16x512xf32>, vector<2x512xf32> -> vector<2x512xf32>
    %88 = arith.addf %83, %87 : vector<2x512xf32>
    %89 = vector.extract_strided_slice %12 {offsets = [30, 0], sizes = [2, 16], strides = [1, 1]} : vector<64x16xf32> to vector<2x16xf32>
    %c15 = arith.constant 15 : index
    %c0_57 = arith.constant 0 : index
    %c0_58 = arith.constant 0 : index
    %90 = vector.load %arg6[%c15, %c0_57, %c0_58] : memref<32x16x512xf32, #tpu.memory_space<vmem>>, vector<1x16x512xf32>
    %91 = vector.shape_cast %90 : vector<1x16x512xf32> to vector<16x512xf32>
    %cst_59 = arith.constant dense<0.000000e+00> : vector<2x512xf32>
    %92 = tpu.matmul %89, %91, %cst_59 {dimension_numbers = #tpu.dot_dimension_numbers<[1], [0], [0], [1], [0, 0, 1, 1], [], []>} : vector<2x16xf32>, vector<16x512xf32>, vector<2x512xf32> -> vector<2x512xf32>
    %93 = arith.addf %88, %92 : vector<2x512xf32>
    %94 = vector.extract_strided_slice %12 {offsets = [32, 0], sizes = [2, 16], strides = [1, 1]} : vector<64x16xf32> to vector<2x16xf32>
    %c16 = arith.constant 16 : index
    %c0_60 = arith.constant 0 : index
    %c0_61 = arith.constant 0 : index
    %95 = vector.load %arg6[%c16, %c0_60, %c0_61] : memref<32x16x512xf32, #tpu.memory_space<vmem>>, vector<1x16x512xf32>
    %96 = vector.shape_cast %95 : vector<1x16x512xf32> to vector<16x512xf32>
    %cst_62 = arith.constant dense<0.000000e+00> : vector<2x512xf32>
    %97 = tpu.matmul %94, %96, %cst_62 {dimension_numbers = #tpu.dot_dimension_numbers<[1], [0], [0], [1], [0, 0, 1, 1], [], []>} : vector<2x16xf32>, vector<16x512xf32>, vector<2x512xf32> -> vector<2x512xf32>
    %98 = arith.addf %93, %97 : vector<2x512xf32>
    %99 = vector.extract_strided_slice %12 {offsets = [34, 0], sizes = [2, 16], strides = [1, 1]} : vector<64x16xf32> to vector<2x16xf32>
    %c17 = arith.constant 17 : index
    %c0_63 = arith.constant 0 : index
    %c0_64 = arith.constant 0 : index
    %100 = vector.load %arg6[%c17, %c0_63, %c0_64] : memref<32x16x512xf32, #tpu.memory_space<vmem>>, vector<1x16x512xf32>
    %101 = vector.shape_cast %100 : vector<1x16x512xf32> to vector<16x512xf32>
    %cst_65 = arith.constant dense<0.000000e+00> : vector<2x512xf32>
    %102 = tpu.matmul %99, %101, %cst_65 {dimension_numbers = #tpu.dot_dimension_numbers<[1], [0], [0], [1], [0, 0, 1, 1], [], []>} : vector<2x16xf32>, vector<16x512xf32>, vector<2x512xf32> -> vector<2x512xf32>
    %103 = arith.addf %98, %102 : vector<2x512xf32>
    %104 = vector.extract_strided_slice %12 {offsets = [36, 0], sizes = [2, 16], strides = [1, 1]} : vector<64x16xf32> to vector<2x16xf32>
    %c18 = arith.constant 18 : index
    %c0_66 = arith.constant 0 : index
    %c0_67 = arith.constant 0 : index
    %105 = vector.load %arg6[%c18, %c0_66, %c0_67] : memref<32x16x512xf32, #tpu.memory_space<vmem>>, vector<1x16x512xf32>
    %106 = vector.shape_cast %105 : vector<1x16x512xf32> to vector<16x512xf32>
    %cst_68 = arith.constant dense<0.000000e+00> : vector<2x512xf32>
    %107 = tpu.matmul %104, %106, %cst_68 {dimension_numbers = #tpu.dot_dimension_numbers<[1], [0], [0], [1], [0, 0, 1, 1], [], []>} : vector<2x16xf32>, vector<16x512xf32>, vector<2x512xf32> -> vector<2x512xf32>
    %108 = arith.addf %103, %107 : vector<2x512xf32>
    %109 = vector.extract_strided_slice %12 {offsets = [38, 0], sizes = [2, 16], strides = [1, 1]} : vector<64x16xf32> to vector<2x16xf32>
    %c19 = arith.constant 19 : index
    %c0_69 = arith.constant 0 : index
    %c0_70 = arith.constant 0 : index
    %110 = vector.load %arg6[%c19, %c0_69, %c0_70] : memref<32x16x512xf32, #tpu.memory_space<vmem>>, vector<1x16x512xf32>
    %111 = vector.shape_cast %110 : vector<1x16x512xf32> to vector<16x512xf32>
    %cst_71 = arith.constant dense<0.000000e+00> : vector<2x512xf32>
    %112 = tpu.matmul %109, %111, %cst_71 {dimension_numbers = #tpu.dot_dimension_numbers<[1], [0], [0], [1], [0, 0, 1, 1], [], []>} : vector<2x16xf32>, vector<16x512xf32>, vector<2x512xf32> -> vector<2x512xf32>
    %113 = arith.addf %108, %112 : vector<2x512xf32>
    %114 = vector.extract_strided_slice %12 {offsets = [40, 0], sizes = [2, 16], strides = [1, 1]} : vector<64x16xf32> to vector<2x16xf32>
    %c20 = arith.constant 20 : index
    %c0_72 = arith.constant 0 : index
    %c0_73 = arith.constant 0 : index
    %115 = vector.load %arg6[%c20, %c0_72, %c0_73] : memref<32x16x512xf32, #tpu.memory_space<vmem>>, vector<1x16x512xf32>
    %116 = vector.shape_cast %115 : vector<1x16x512xf32> to vector<16x512xf32>
    %cst_74 = arith.constant dense<0.000000e+00> : vector<2x512xf32>
    %117 = tpu.matmul %114, %116, %cst_74 {dimension_numbers = #tpu.dot_dimension_numbers<[1], [0], [0], [1], [0, 0, 1, 1], [], []>} : vector<2x16xf32>, vector<16x512xf32>, vector<2x512xf32> -> vector<2x512xf32>
    %118 = arith.addf %113, %117 : vector<2x512xf32>
    %119 = vector.extract_strided_slice %12 {offsets = [42, 0], sizes = [2, 16], strides = [1, 1]} : vector<64x16xf32> to vector<2x16xf32>
    %c21 = arith.constant 21 : index
    %c0_75 = arith.constant 0 : index
    %c0_76 = arith.constant 0 : index
    %120 = vector.load %arg6[%c21, %c0_75, %c0_76] : memref<32x16x512xf32, #tpu.memory_space<vmem>>, vector<1x16x512xf32>
    %121 = vector.shape_cast %120 : vector<1x16x512xf32> to vector<16x512xf32>
    %cst_77 = arith.constant dense<0.000000e+00> : vector<2x512xf32>
    %122 = tpu.matmul %119, %121, %cst_77 {dimension_numbers = #tpu.dot_dimension_numbers<[1], [0], [0], [1], [0, 0, 1, 1], [], []>} : vector<2x16xf32>, vector<16x512xf32>, vector<2x512xf32> -> vector<2x512xf32>
    %123 = arith.addf %118, %122 : vector<2x512xf32>
    %124 = vector.extract_strided_slice %12 {offsets = [44, 0], sizes = [2, 16], strides = [1, 1]} : vector<64x16xf32> to vector<2x16xf32>
    %c22 = arith.constant 22 : index
    %c0_78 = arith.constant 0 : index
    %c0_79 = arith.constant 0 : index
    %125 = vector.load %arg6[%c22, %c0_78, %c0_79] : memref<32x16x512xf32, #tpu.memory_space<vmem>>, vector<1x16x512xf32>
    %126 = vector.shape_cast %125 : vector<1x16x512xf32> to vector<16x512xf32>
    %cst_80 = arith.constant dense<0.000000e+00> : vector<2x512xf32>
    %127 = tpu.matmul %124, %126, %cst_80 {dimension_numbers = #tpu.dot_dimension_numbers<[1], [0], [0], [1], [0, 0, 1, 1], [], []>} : vector<2x16xf32>, vector<16x512xf32>, vector<2x512xf32> -> vector<2x512xf32>
    %128 = arith.addf %123, %127 : vector<2x512xf32>
    %129 = vector.extract_strided_slice %12 {offsets = [46, 0], sizes = [2, 16], strides = [1, 1]} : vector<64x16xf32> to vector<2x16xf32>
    %c23 = arith.constant 23 : index
    %c0_81 = arith.constant 0 : index
    %c0_82 = arith.constant 0 : index
    %130 = vector.load %arg6[%c23, %c0_81, %c0_82] : memref<32x16x512xf32, #tpu.memory_space<vmem>>, vector<1x16x512xf32>
    %131 = vector.shape_cast %130 : vector<1x16x512xf32> to vector<16x512xf32>
    %cst_83 = arith.constant dense<0.000000e+00> : vector<2x512xf32>
    %132 = tpu.matmul %129, %131, %cst_83 {dimension_numbers = #tpu.dot_dimension_numbers<[1], [0], [0], [1], [0, 0, 1, 1], [], []>} : vector<2x16xf32>, vector<16x512xf32>, vector<2x512xf32> -> vector<2x512xf32>
    %133 = arith.addf %128, %132 : vector<2x512xf32>
    %134 = vector.extract_strided_slice %12 {offsets = [48, 0], sizes = [2, 16], strides = [1, 1]} : vector<64x16xf32> to vector<2x16xf32>
    %c24 = arith.constant 24 : index
    %c0_84 = arith.constant 0 : index
    %c0_85 = arith.constant 0 : index
    %135 = vector.load %arg6[%c24, %c0_84, %c0_85] : memref<32x16x512xf32, #tpu.memory_space<vmem>>, vector<1x16x512xf32>
    %136 = vector.shape_cast %135 : vector<1x16x512xf32> to vector<16x512xf32>
    %cst_86 = arith.constant dense<0.000000e+00> : vector<2x512xf32>
    %137 = tpu.matmul %134, %136, %cst_86 {dimension_numbers = #tpu.dot_dimension_numbers<[1], [0], [0], [1], [0, 0, 1, 1], [], []>} : vector<2x16xf32>, vector<16x512xf32>, vector<2x512xf32> -> vector<2x512xf32>
    %138 = arith.addf %133, %137 : vector<2x512xf32>
    %139 = vector.extract_strided_slice %12 {offsets = [50, 0], sizes = [2, 16], strides = [1, 1]} : vector<64x16xf32> to vector<2x16xf32>
    %c25 = arith.constant 25 : index
    %c0_87 = arith.constant 0 : index
    %c0_88 = arith.constant 0 : index
    %140 = vector.load %arg6[%c25, %c0_87, %c0_88] : memref<32x16x512xf32, #tpu.memory_space<vmem>>, vector<1x16x512xf32>
    %141 = vector.shape_cast %140 : vector<1x16x512xf32> to vector<16x512xf32>
    %cst_89 = arith.constant dense<0.000000e+00> : vector<2x512xf32>
    %142 = tpu.matmul %139, %141, %cst_89 {dimension_numbers = #tpu.dot_dimension_numbers<[1], [0], [0], [1], [0, 0, 1, 1], [], []>} : vector<2x16xf32>, vector<16x512xf32>, vector<2x512xf32> -> vector<2x512xf32>
    %143 = arith.addf %138, %142 : vector<2x512xf32>
    %144 = vector.extract_strided_slice %12 {offsets = [52, 0], sizes = [2, 16], strides = [1, 1]} : vector<64x16xf32> to vector<2x16xf32>
    %c26 = arith.constant 26 : index
    %c0_90 = arith.constant 0 : index
    %c0_91 = arith.constant 0 : index
    %145 = vector.load %arg6[%c26, %c0_90, %c0_91] : memref<32x16x512xf32, #tpu.memory_space<vmem>>, vector<1x16x512xf32>
    %146 = vector.shape_cast %145 : vector<1x16x512xf32> to vector<16x512xf32>
    %cst_92 = arith.constant dense<0.000000e+00> : vector<2x512xf32>
    %147 = tpu.matmul %144, %146, %cst_92 {dimension_numbers = #tpu.dot_dimension_numbers<[1], [0], [0], [1], [0, 0, 1, 1], [], []>} : vector<2x16xf32>, vector<16x512xf32>, vector<2x512xf32> -> vector<2x512xf32>
    %148 = arith.addf %143, %147 : vector<2x512xf32>
    %149 = vector.extract_strided_slice %12 {offsets = [54, 0], sizes = [2, 16], strides = [1, 1]} : vector<64x16xf32> to vector<2x16xf32>
    %c27 = arith.constant 27 : index
    %c0_93 = arith.constant 0 : index
    %c0_94 = arith.constant 0 : index
    %150 = vector.load %arg6[%c27, %c0_93, %c0_94] : memref<32x16x512xf32, #tpu.memory_space<vmem>>, vector<1x16x512xf32>
    %151 = vector.shape_cast %150 : vector<1x16x512xf32> to vector<16x512xf32>
    %cst_95 = arith.constant dense<0.000000e+00> : vector<2x512xf32>
    %152 = tpu.matmul %149, %151, %cst_95 {dimension_numbers = #tpu.dot_dimension_numbers<[1], [0], [0], [1], [0, 0, 1, 1], [], []>} : vector<2x16xf32>, vector<16x512xf32>, vector<2x512xf32> -> vector<2x512xf32>
    %153 = arith.addf %148, %152 : vector<2x512xf32>
    %154 = vector.extract_strided_slice %12 {offsets = [56, 0], sizes = [2, 16], strides = [1, 1]} : vector<64x16xf32> to vector<2x16xf32>
    %c28 = arith.constant 28 : index
    %c0_96 = arith.constant 0 : index
    %c0_97 = arith.constant 0 : index
    %155 = vector.load %arg6[%c28, %c0_96, %c0_97] : memref<32x16x512xf32, #tpu.memory_space<vmem>>, vector<1x16x512xf32>
    %156 = vector.shape_cast %155 : vector<1x16x512xf32> to vector<16x512xf32>
    %cst_98 = arith.constant dense<0.000000e+00> : vector<2x512xf32>
    %157 = tpu.matmul %154, %156, %cst_98 {dimension_numbers = #tpu.dot_dimension_numbers<[1], [0], [0], [1], [0, 0, 1, 1], [], []>} : vector<2x16xf32>, vector<16x512xf32>, vector<2x512xf32> -> vector<2x512xf32>
    %158 = arith.addf %153, %157 : vector<2x512xf32>
    %159 = vector.extract_strided_slice %12 {offsets = [58, 0], sizes = [2, 16], strides = [1, 1]} : vector<64x16xf32> to vector<2x16xf32>
    %c29 = arith.constant 29 : index
    %c0_99 = arith.constant 0 : index
    %c0_100 = arith.constant 0 : index
    %160 = vector.load %arg6[%c29, %c0_99, %c0_100] : memref<32x16x512xf32, #tpu.memory_space<vmem>>, vector<1x16x512xf32>
    %161 = vector.shape_cast %160 : vector<1x16x512xf32> to vector<16x512xf32>
    %cst_101 = arith.constant dense<0.000000e+00> : vector<2x512xf32>
    %162 = tpu.matmul %159, %161, %cst_101 {dimension_numbers = #tpu.dot_dimension_numbers<[1], [0], [0], [1], [0, 0, 1, 1], [], []>} : vector<2x16xf32>, vector<16x512xf32>, vector<2x512xf32> -> vector<2x512xf32>
    %163 = arith.addf %158, %162 : vector<2x512xf32>
    %164 = vector.extract_strided_slice %12 {offsets = [60, 0], sizes = [2, 16], strides = [1, 1]} : vector<64x16xf32> to vector<2x16xf32>
    %c30 = arith.constant 30 : index
    %c0_102 = arith.constant 0 : index
    %c0_103 = arith.constant 0 : index
    %165 = vector.load %arg6[%c30, %c0_102, %c0_103] : memref<32x16x512xf32, #tpu.memory_space<vmem>>, vector<1x16x512xf32>
    %166 = vector.shape_cast %165 : vector<1x16x512xf32> to vector<16x512xf32>
    %cst_104 = arith.constant dense<0.000000e+00> : vector<2x512xf32>
    %167 = tpu.matmul %164, %166, %cst_104 {dimension_numbers = #tpu.dot_dimension_numbers<[1], [0], [0], [1], [0, 0, 1, 1], [], []>} : vector<2x16xf32>, vector<16x512xf32>, vector<2x512xf32> -> vector<2x512xf32>
    %168 = arith.addf %163, %167 : vector<2x512xf32>
    %169 = vector.extract_strided_slice %12 {offsets = [62, 0], sizes = [2, 16], strides = [1, 1]} : vector<64x16xf32> to vector<2x16xf32>
    %c31 = arith.constant 31 : index
    %c0_105 = arith.constant 0 : index
    %c0_106 = arith.constant 0 : index
    %170 = vector.load %arg6[%c31, %c0_105, %c0_106] : memref<32x16x512xf32, #tpu.memory_space<vmem>>, vector<1x16x512xf32>
    %171 = vector.shape_cast %170 : vector<1x16x512xf32> to vector<16x512xf32>
    %cst_107 = arith.constant dense<0.000000e+00> : vector<2x512xf32>
    %172 = tpu.matmul %169, %171, %cst_107 {dimension_numbers = #tpu.dot_dimension_numbers<[1], [0], [0], [1], [0, 0, 1, 1], [], []>} : vector<2x16xf32>, vector<16x512xf32>, vector<2x512xf32> -> vector<2x512xf32>
    %173 = arith.addf %168, %172 : vector<2x512xf32>
    %c0_108 = arith.constant 0 : index
    %c0_109 = arith.constant 0 : index
    %174 = vector.load %arg7[%c0_108, %c0_109] : memref<1x512xf32, #tpu.memory_space<vmem>>, vector<1x512xf32>
    %175 = vector.broadcast %174 : vector<1x512xf32> to vector<2x512xf32>
    %176 = arith.addf %173, %175 : vector<2x512xf32>
    %c0_110 = arith.constant 0 : index
    %c0_111 = arith.constant 0 : index
    %c0_112 = arith.constant 0 : index
    %177 = vector.load %arg8[%c0_110, %c0_111, %c0_112] : memref<2x64x96xf32, #tpu.memory_space<vmem>>, vector<1x64x96xf32>
    %178 = vector.shape_cast %177 : vector<1x64x96xf32> to vector<64x96xf32>
    %c1_113 = arith.constant 1 : index
    %c0_114 = arith.constant 0 : index
    %c0_115 = arith.constant 0 : index
    %179 = vector.load %arg8[%c1_113, %c0_114, %c0_115] : memref<2x64x96xf32, #tpu.memory_space<vmem>>, vector<1x64x96xf32>
    %180 = vector.shape_cast %179 : vector<1x64x96xf32> to vector<64x96xf32>
    %c0_116 = arith.constant 0 : index
    %c0_117 = arith.constant 0 : index
    %c0_118 = arith.constant 0 : index
    %181 = vector.load %arg9[%c0_116, %c0_117, %c0_118] : memref<2x1x96xf32, #tpu.memory_space<vmem>>, vector<1x1x96xf32>
    %182 = vector.shape_cast %181 : vector<1x1x96xf32> to vector<1x96xf32>
    %c1_119 = arith.constant 1 : index
    %c0_120 = arith.constant 0 : index
    %c0_121 = arith.constant 0 : index
    %183 = vector.load %arg9[%c1_119, %c0_120, %c0_121] : memref<2x1x96xf32, #tpu.memory_space<vmem>>, vector<1x1x96xf32>
    %184 = vector.shape_cast %183 : vector<1x1x96xf32> to vector<1x96xf32>
    %185 = vector.extract_strided_slice %176 {offsets = [0, 0], sizes = [2, 64], strides = [1, 1]} : vector<2x512xf32> to vector<2x64xf32>
    %cst_122 = arith.constant dense<0.000000e+00> : vector<2x96xf32>
    %186 = tpu.matmul %185, %178, %cst_122 {dimension_numbers = #tpu.dot_dimension_numbers<[1], [0], [0], [1], [0, 0, 1, 1], [], []>} : vector<2x64xf32>, vector<64x96xf32>, vector<2x96xf32> -> vector<2x96xf32>
    %187 = vector.broadcast %182 : vector<1x96xf32> to vector<2x96xf32>
    %188 = arith.addf %186, %187 : vector<2x96xf32>
    %cst_123 = arith.constant dense<0.000000e+00> : vector<2x96xf32>
    %189 = tpu.matmul %185, %180, %cst_123 {dimension_numbers = #tpu.dot_dimension_numbers<[1], [0], [0], [1], [0, 0, 1, 1], [], []>} : vector<2x64xf32>, vector<64x96xf32>, vector<2x96xf32> -> vector<2x96xf32>
    %190 = vector.broadcast %184 : vector<1x96xf32> to vector<2x96xf32>
    %191 = arith.addf %189, %190 : vector<2x96xf32>
    %192 = vector.extract_strided_slice %176 {offsets = [0, 64], sizes = [2, 64], strides = [1, 1]} : vector<2x512xf32> to vector<2x64xf32>
    %cst_124 = arith.constant dense<0.000000e+00> : vector<2x96xf32>
    %193 = tpu.matmul %192, %178, %cst_124 {dimension_numbers = #tpu.dot_dimension_numbers<[1], [0], [0], [1], [0, 0, 1, 1], [], []>} : vector<2x64xf32>, vector<64x96xf32>, vector<2x96xf32> -> vector<2x96xf32>
    %194 = vector.broadcast %182 : vector<1x96xf32> to vector<2x96xf32>
    %195 = arith.addf %193, %194 : vector<2x96xf32>
    %cst_125 = arith.constant dense<0.000000e+00> : vector<2x96xf32>
    %196 = tpu.matmul %192, %180, %cst_125 {dimension_numbers = #tpu.dot_dimension_numbers<[1], [0], [0], [1], [0, 0, 1, 1], [], []>} : vector<2x64xf32>, vector<64x96xf32>, vector<2x96xf32> -> vector<2x96xf32>
    %197 = vector.broadcast %184 : vector<1x96xf32> to vector<2x96xf32>
    %198 = arith.addf %196, %197 : vector<2x96xf32>
    %199 = vector.extract_strided_slice %176 {offsets = [0, 128], sizes = [2, 64], strides = [1, 1]} : vector<2x512xf32> to vector<2x64xf32>
    %cst_126 = arith.constant dense<0.000000e+00> : vector<2x96xf32>
    %200 = tpu.matmul %199, %178, %cst_126 {dimension_numbers = #tpu.dot_dimension_numbers<[1], [0], [0], [1], [0, 0, 1, 1], [], []>} : vector<2x64xf32>, vector<64x96xf32>, vector<2x96xf32> -> vector<2x96xf32>
    %201 = vector.broadcast %182 : vector<1x96xf32> to vector<2x96xf32>
    %202 = arith.addf %200, %201 : vector<2x96xf32>
    %cst_127 = arith.constant dense<0.000000e+00> : vector<2x96xf32>
    %203 = tpu.matmul %199, %180, %cst_127 {dimension_numbers = #tpu.dot_dimension_numbers<[1], [0], [0], [1], [0, 0, 1, 1], [], []>} : vector<2x64xf32>, vector<64x96xf32>, vector<2x96xf32> -> vector<2x96xf32>
    %204 = vector.broadcast %184 : vector<1x96xf32> to vector<2x96xf32>
    %205 = arith.addf %203, %204 : vector<2x96xf32>
    %206 = vector.extract_strided_slice %176 {offsets = [0, 192], sizes = [2, 64], strides = [1, 1]} : vector<2x512xf32> to vector<2x64xf32>
    %cst_128 = arith.constant dense<0.000000e+00> : vector<2x96xf32>
    %207 = tpu.matmul %206, %178, %cst_128 {dimension_numbers = #tpu.dot_dimension_numbers<[1], [0], [0], [1], [0, 0, 1, 1], [], []>} : vector<2x64xf32>, vector<64x96xf32>, vector<2x96xf32> -> vector<2x96xf32>
    %208 = vector.broadcast %182 : vector<1x96xf32> to vector<2x96xf32>
    %209 = arith.addf %207, %208 : vector<2x96xf32>
    %cst_129 = arith.constant dense<0.000000e+00> : vector<2x96xf32>
    %210 = tpu.matmul %206, %180, %cst_129 {dimension_numbers = #tpu.dot_dimension_numbers<[1], [0], [0], [1], [0, 0, 1, 1], [], []>} : vector<2x64xf32>, vector<64x96xf32>, vector<2x96xf32> -> vector<2x96xf32>
    %211 = vector.broadcast %184 : vector<1x96xf32> to vector<2x96xf32>
    %212 = arith.addf %210, %211 : vector<2x96xf32>
    %213 = vector.extract_strided_slice %176 {offsets = [0, 256], sizes = [2, 64], strides = [1, 1]} : vector<2x512xf32> to vector<2x64xf32>
    %cst_130 = arith.constant dense<0.000000e+00> : vector<2x96xf32>
    %214 = tpu.matmul %213, %178, %cst_130 {dimension_numbers = #tpu.dot_dimension_numbers<[1], [0], [0], [1], [0, 0, 1, 1], [], []>} : vector<2x64xf32>, vector<64x96xf32>, vector<2x96xf32> -> vector<2x96xf32>
    %215 = vector.broadcast %182 : vector<1x96xf32> to vector<2x96xf32>
    %216 = arith.addf %214, %215 : vector<2x96xf32>
    %cst_131 = arith.constant dense<0.000000e+00> : vector<2x96xf32>
    %217 = tpu.matmul %213, %180, %cst_131 {dimension_numbers = #tpu.dot_dimension_numbers<[1], [0], [0], [1], [0, 0, 1, 1], [], []>} : vector<2x64xf32>, vector<64x96xf32>, vector<2x96xf32> -> vector<2x96xf32>
    %218 = vector.broadcast %184 : vector<1x96xf32> to vector<2x96xf32>
    %219 = arith.addf %217, %218 : vector<2x96xf32>
    %220 = vector.extract_strided_slice %176 {offsets = [0, 320], sizes = [2, 64], strides = [1, 1]} : vector<2x512xf32> to vector<2x64xf32>
    %cst_132 = arith.constant dense<0.000000e+00> : vector<2x96xf32>
    %221 = tpu.matmul %220, %178, %cst_132 {dimension_numbers = #tpu.dot_dimension_numbers<[1], [0], [0], [1], [0, 0, 1, 1], [], []>} : vector<2x64xf32>, vector<64x96xf32>, vector<2x96xf32> -> vector<2x96xf32>
    %222 = vector.broadcast %182 : vector<1x96xf32> to vector<2x96xf32>
    %223 = arith.addf %221, %222 : vector<2x96xf32>
    %cst_133 = arith.constant dense<0.000000e+00> : vector<2x96xf32>
    %224 = tpu.matmul %220, %180, %cst_133 {dimension_numbers = #tpu.dot_dimension_numbers<[1], [0], [0], [1], [0, 0, 1, 1], [], []>} : vector<2x64xf32>, vector<64x96xf32>, vector<2x96xf32> -> vector<2x96xf32>
    %225 = vector.broadcast %184 : vector<1x96xf32> to vector<2x96xf32>
    %226 = arith.addf %224, %225 : vector<2x96xf32>
    %227 = vector.extract_strided_slice %176 {offsets = [0, 384], sizes = [2, 64], strides = [1, 1]} : vector<2x512xf32> to vector<2x64xf32>
    %cst_134 = arith.constant dense<0.000000e+00> : vector<2x96xf32>
    %228 = tpu.matmul %227, %178, %cst_134 {dimension_numbers = #tpu.dot_dimension_numbers<[1], [0], [0], [1], [0, 0, 1, 1], [], []>} : vector<2x64xf32>, vector<64x96xf32>, vector<2x96xf32> -> vector<2x96xf32>
    %229 = vector.broadcast %182 : vector<1x96xf32> to vector<2x96xf32>
    %230 = arith.addf %228, %229 : vector<2x96xf32>
    %cst_135 = arith.constant dense<0.000000e+00> : vector<2x96xf32>
    %231 = tpu.matmul %227, %180, %cst_135 {dimension_numbers = #tpu.dot_dimension_numbers<[1], [0], [0], [1], [0, 0, 1, 1], [], []>} : vector<2x64xf32>, vector<64x96xf32>, vector<2x96xf32> -> vector<2x96xf32>
    %232 = vector.broadcast %184 : vector<1x96xf32> to vector<2x96xf32>
    %233 = arith.addf %231, %232 : vector<2x96xf32>
    %234 = vector.extract_strided_slice %176 {offsets = [0, 448], sizes = [2, 64], strides = [1, 1]} : vector<2x512xf32> to vector<2x64xf32>
    %cst_136 = arith.constant dense<0.000000e+00> : vector<2x96xf32>
    %235 = tpu.matmul %234, %178, %cst_136 {dimension_numbers = #tpu.dot_dimension_numbers<[1], [0], [0], [1], [0, 0, 1, 1], [], []>} : vector<2x64xf32>, vector<64x96xf32>, vector<2x96xf32> -> vector<2x96xf32>
    %236 = vector.broadcast %182 : vector<1x96xf32> to vector<2x96xf32>
    %237 = arith.addf %235, %236 : vector<2x96xf32>
    %cst_137 = arith.constant dense<0.000000e+00> : vector<2x96xf32>
    %238 = tpu.matmul %234, %180, %cst_137 {dimension_numbers = #tpu.dot_dimension_numbers<[1], [0], [0], [1], [0, 0, 1, 1], [], []>} : vector<2x64xf32>, vector<64x96xf32>, vector<2x96xf32> -> vector<2x96xf32>
    %239 = vector.broadcast %184 : vector<1x96xf32> to vector<2x96xf32>
    %240 = arith.addf %238, %239 : vector<2x96xf32>
    %c0_138 = arith.constant 0 : index
    %c0_139 = arith.constant 0 : index
    %241 = vector.load %arg1[%c0_138, %c0_139] : memref<2x1xi32, #tpu.memory_space<vmem>>, vector<2x1xi32>
    %c0_140 = arith.constant 0 : index
    %c0_141 = arith.constant 0 : index
    %c0_142 = arith.constant 0 : index
    %242 = vector.load %arg10[%c0_140, %c0_141, %c0_142] : memref<2x32x96xf32, #tpu.memory_space<vmem>>, vector<1x32x96xf32>
    %243 = vector.shape_cast %242 : vector<1x32x96xf32> to vector<32x96xf32>
    %c1_143 = arith.constant 1 : index
    %c0_144 = arith.constant 0 : index
    %c0_145 = arith.constant 0 : index
    %244 = vector.load %arg10[%c1_143, %c0_144, %c0_145] : memref<2x32x96xf32, #tpu.memory_space<vmem>>, vector<1x32x96xf32>
    %245 = vector.shape_cast %244 : vector<1x32x96xf32> to vector<32x96xf32>
    %c0_146 = arith.constant 0 : index
    %c0_147 = arith.constant 0 : index
    %c0_148 = arith.constant 0 : index
    %246 = vector.load %arg11[%c0_146, %c0_147, %c0_148] : memref<2x1x96xf32, #tpu.memory_space<vmem>>, vector<1x1x96xf32>
    %247 = vector.shape_cast %246 : vector<1x1x96xf32> to vector<1x96xf32>
    %c1_149 = arith.constant 1 : index
    %c0_150 = arith.constant 0 : index
    %c0_151 = arith.constant 0 : index
    %248 = vector.load %arg11[%c1_149, %c0_150, %c0_151] : memref<2x1x96xf32, #tpu.memory_space<vmem>>, vector<1x1x96xf32>
    %249 = vector.shape_cast %248 : vector<1x1x96xf32> to vector<1x96xf32>
    %cst_152 = arith.constant 0.000000e+00 : f32
    %250 = vector.broadcast %cst_152 : f32 to vector<2x32xf32>
    %cst_153 = arith.constant 0.000000e+00 : f32
    %251 = vector.broadcast %cst_153 : f32 to vector<2x32xf32>
    %cst_154 = arith.constant dense<0.000000e+00> : vector<2x96xf32>
    %252 = tpu.matmul %250, %243, %cst_154 {dimension_numbers = #tpu.dot_dimension_numbers<[1], [0], [0], [1], [0, 0, 1, 1], [], []>} : vector<2x32xf32>, vector<32x96xf32>, vector<2x96xf32> -> vector<2x96xf32>
    %253 = vector.broadcast %247 : vector<1x96xf32> to vector<2x96xf32>
    %254 = arith.addf %252, %253 : vector<2x96xf32>
    %255 = vector.extract_strided_slice %188 {offsets = [0, 0], sizes = [2, 32], strides = [1, 1]} : vector<2x96xf32> to vector<2x32xf32>
    %256 = vector.extract_strided_slice %254 {offsets = [0, 0], sizes = [2, 32], strides = [1, 1]} : vector<2x96xf32> to vector<2x32xf32>
    %257 = arith.addf %255, %256 : vector<2x32xf32>
    %258 = arith.negf %257 : vector<2x32xf32>
    %259 = math.exp %258 : vector<2x32xf32>
    %cst_155 = arith.constant 1.000000e+00 : f32
    %260 = vector.broadcast %cst_155 : f32 to vector<2x32xf32>
    %261 = arith.addf %260, %259 : vector<2x32xf32>
    %262 = arith.divf %260, %261 : vector<2x32xf32>
    %263 = vector.extract_strided_slice %188 {offsets = [0, 32], sizes = [2, 32], strides = [1, 1]} : vector<2x96xf32> to vector<2x32xf32>
    %264 = vector.extract_strided_slice %254 {offsets = [0, 32], sizes = [2, 32], strides = [1, 1]} : vector<2x96xf32> to vector<2x32xf32>
    %265 = arith.addf %263, %264 : vector<2x32xf32>
    %266 = arith.negf %265 : vector<2x32xf32>
    %267 = math.exp %266 : vector<2x32xf32>
    %cst_156 = arith.constant 1.000000e+00 : f32
    %268 = vector.broadcast %cst_156 : f32 to vector<2x32xf32>
    %269 = arith.addf %268, %267 : vector<2x32xf32>
    %270 = arith.divf %268, %269 : vector<2x32xf32>
    %271 = vector.extract_strided_slice %188 {offsets = [0, 64], sizes = [2, 32], strides = [1, 1]} : vector<2x96xf32> to vector<2x32xf32>
    %272 = vector.extract_strided_slice %254 {offsets = [0, 64], sizes = [2, 32], strides = [1, 1]} : vector<2x96xf32> to vector<2x32xf32>
    %273 = arith.mulf %262, %272 : vector<2x32xf32>
    %274 = arith.addf %271, %273 : vector<2x32xf32>
    %275 = math.tanh %274 : vector<2x32xf32>
    %cst_157 = arith.constant 1.000000e+00 : f32
    %276 = vector.broadcast %cst_157 : f32 to vector<2x32xf32>
    %277 = arith.subf %276, %270 : vector<2x32xf32>
    %278 = arith.mulf %277, %275 : vector<2x32xf32>
    %279 = arith.mulf %270, %250 : vector<2x32xf32>
    %280 = arith.addf %278, %279 : vector<2x32xf32>
    %c0_i32 = arith.constant 0 : i32
    %281 = vector.broadcast %c0_i32 : i32 to vector<2x1xi32>
    %282 = arith.cmpi sgt, %241, %281 : vector<2x1xi32>
    %283 = vector.shape_cast %282 : vector<2x1xi1> to vector<2x1xi1>
    %284 = vector.broadcast %283 : vector<2x1xi1> to vector<2x32xi1>
    %285 = arith.select %284, %280, %250 : vector<2x32xi1>, vector<2x32xf32>
    %cst_158 = arith.constant 0.000000e+00 : f32
    %286 = vector.shape_cast %282 : vector<2x1xi1> to vector<2x1xi1>
    %287 = vector.broadcast %286 : vector<2x1xi1> to vector<2x32xi1>
    %288 = vector.broadcast %cst_158 : f32 to vector<2x32xf32>
    %289 = arith.select %287, %285, %288 : vector<2x32xi1>, vector<2x32xf32>
    %c0_159 = arith.constant 0 : index
    %c0_160 = arith.constant 0 : index
    %c0_161 = arith.constant 0 : index
    %290 = vector.load %arg12[%c0_159, %c0_160, %c0_161] : memref<8x2x64xf32, #tpu.memory_space<vmem>>, vector<1x2x32xf32>
    %291 = vector.shape_cast %290 : vector<1x2x32xf32> to vector<2x32xf32>
    %292 = vector.shape_cast %289 : vector<2x32xf32> to vector<1x2x32xf32>
    tpu.vector_store %arg12[%c0_159, %c0_160, %c0_161], %292 {strides = array<i32>} : memref<8x2x64xf32, #tpu.memory_space<vmem>>, vector<1x2x32xf32>,
    %cst_162 = arith.constant dense<0.000000e+00> : vector<2x96xf32>
    %293 = tpu.matmul %251, %245, %cst_162 {dimension_numbers = #tpu.dot_dimension_numbers<[1], [0], [0], [1], [0, 0, 1, 1], [], []>} : vector<2x32xf32>, vector<32x96xf32>, vector<2x96xf32> -> vector<2x96xf32>
    %294 = vector.broadcast %249 : vector<1x96xf32> to vector<2x96xf32>
    %295 = arith.addf %293, %294 : vector<2x96xf32>
    %296 = vector.extract_strided_slice %240 {offsets = [0, 0], sizes = [2, 32], strides = [1, 1]} : vector<2x96xf32> to vector<2x32xf32>
    %297 = vector.extract_strided_slice %295 {offsets = [0, 0], sizes = [2, 32], strides = [1, 1]} : vector<2x96xf32> to vector<2x32xf32>
    %298 = arith.addf %296, %297 : vector<2x32xf32>
    %299 = arith.negf %298 : vector<2x32xf32>
    %300 = math.exp %299 : vector<2x32xf32>
    %cst_163 = arith.constant 1.000000e+00 : f32
    %301 = vector.broadcast %cst_163 : f32 to vector<2x32xf32>
    %302 = arith.addf %301, %300 : vector<2x32xf32>
    %303 = arith.divf %301, %302 : vector<2x32xf32>
    %304 = vector.extract_strided_slice %240 {offsets = [0, 32], sizes = [2, 32], strides = [1, 1]} : vector<2x96xf32> to vector<2x32xf32>
    %305 = vector.extract_strided_slice %295 {offsets = [0, 32], sizes = [2, 32], strides = [1, 1]} : vector<2x96xf32> to vector<2x32xf32>
    %306 = arith.addf %304, %305 : vector<2x32xf32>
    %307 = arith.negf %306 : vector<2x32xf32>
    %308 = math.exp %307 : vector<2x32xf32>
    %cst_164 = arith.constant 1.000000e+00 : f32
    %309 = vector.broadcast %cst_164 : f32 to vector<2x32xf32>
    %310 = arith.addf %309, %308 : vector<2x32xf32>
    %311 = arith.divf %309, %310 : vector<2x32xf32>
    %312 = vector.extract_strided_slice %240 {offsets = [0, 64], sizes = [2, 32], strides = [1, 1]} : vector<2x96xf32> to vector<2x32xf32>
    %313 = vector.extract_strided_slice %295 {offsets = [0, 64], sizes = [2, 32], strides = [1, 1]} : vector<2x96xf32> to vector<2x32xf32>
    %314 = arith.mulf %303, %313 : vector<2x32xf32>
    %315 = arith.addf %312, %314 : vector<2x32xf32>
    %316 = math.tanh %315 : vector<2x32xf32>
    %cst_165 = arith.constant 1.000000e+00 : f32
    %317 = vector.broadcast %cst_165 : f32 to vector<2x32xf32>
    %318 = arith.subf %317, %311 : vector<2x32xf32>
    %319 = arith.mulf %318, %316 : vector<2x32xf32>
    %320 = arith.mulf %311, %251 : vector<2x32xf32>
    %321 = arith.addf %319, %320 : vector<2x32xf32>
    %c7_i32 = arith.constant 7 : i32
    %322 = vector.broadcast %c7_i32 : i32 to vector<2x1xi32>
    %323 = arith.cmpi sgt, %241, %322 : vector<2x1xi32>
    %324 = vector.shape_cast %323 : vector<2x1xi1> to vector<2x1xi1>
    %325 = vector.broadcast %324 : vector<2x1xi1> to vector<2x32xi1>
    %326 = arith.select %325, %321, %251 : vector<2x32xi1>, vector<2x32xf32>
    %cst_166 = arith.constant 0.000000e+00 : f32
    %327 = vector.shape_cast %323 : vector<2x1xi1> to vector<2x1xi1>
    %328 = vector.broadcast %327 : vector<2x1xi1> to vector<2x32xi1>
    %329 = vector.broadcast %cst_166 : f32 to vector<2x32xf32>
    %330 = arith.select %328, %326, %329 : vector<2x32xi1>, vector<2x32xf32>
    %c7_167 = arith.constant 7 : index
    %c0_168 = arith.constant 0 : index
    %c32 = arith.constant 32 : index
    %331 = vector.load %arg12[%c7_167, %c0_168, %c32] : memref<8x2x64xf32, #tpu.memory_space<vmem>>, vector<1x2x32xf32>
    %332 = vector.shape_cast %331 : vector<1x2x32xf32> to vector<2x32xf32>
    %333 = vector.shape_cast %330 : vector<2x32xf32> to vector<1x2x32xf32>
    tpu.vector_store %arg12[%c7_167, %c0_168, %c32], %333 {strides = array<i32>} : memref<8x2x64xf32, #tpu.memory_space<vmem>>, vector<1x2x32xf32>,
    %cst_169 = arith.constant dense<0.000000e+00> : vector<2x96xf32>
    %334 = tpu.matmul %285, %243, %cst_169 {dimension_numbers = #tpu.dot_dimension_numbers<[1], [0], [0], [1], [0, 0, 1, 1], [], []>} : vector<2x32xf32>, vector<32x96xf32>, vector<2x96xf32> -> vector<2x96xf32>
    %335 = vector.broadcast %247 : vector<1x96xf32> to vector<2x96xf32>
    %336 = arith.addf %334, %335 : vector<2x96xf32>
    %337 = vector.extract_strided_slice %195 {offsets = [0, 0], sizes = [2, 32], strides = [1, 1]} : vector<2x96xf32> to vector<2x32xf32>
    %338 = vector.extract_strided_slice %336 {offsets = [0, 0], sizes = [2, 32], strides = [1, 1]} : vector<2x96xf32> to vector<2x32xf32>
    %339 = arith.addf %337, %338 : vector<2x32xf32>
    %340 = arith.negf %339 : vector<2x32xf32>
    %341 = math.exp %340 : vector<2x32xf32>
    %cst_170 = arith.constant 1.000000e+00 : f32
    %342 = vector.broadcast %cst_170 : f32 to vector<2x32xf32>
    %343 = arith.addf %342, %341 : vector<2x32xf32>
    %344 = arith.divf %342, %343 : vector<2x32xf32>
    %345 = vector.extract_strided_slice %195 {offsets = [0, 32], sizes = [2, 32], strides = [1, 1]} : vector<2x96xf32> to vector<2x32xf32>
    %346 = vector.extract_strided_slice %336 {offsets = [0, 32], sizes = [2, 32], strides = [1, 1]} : vector<2x96xf32> to vector<2x32xf32>
    %347 = arith.addf %345, %346 : vector<2x32xf32>
    %348 = arith.negf %347 : vector<2x32xf32>
    %349 = math.exp %348 : vector<2x32xf32>
    %cst_171 = arith.constant 1.000000e+00 : f32
    %350 = vector.broadcast %cst_171 : f32 to vector<2x32xf32>
    %351 = arith.addf %350, %349 : vector<2x32xf32>
    %352 = arith.divf %350, %351 : vector<2x32xf32>
    %353 = vector.extract_strided_slice %195 {offsets = [0, 64], sizes = [2, 32], strides = [1, 1]} : vector<2x96xf32> to vector<2x32xf32>
    %354 = vector.extract_strided_slice %336 {offsets = [0, 64], sizes = [2, 32], strides = [1, 1]} : vector<2x96xf32> to vector<2x32xf32>
    %355 = arith.mulf %344, %354 : vector<2x32xf32>
    %356 = arith.addf %353, %355 : vector<2x32xf32>
    %357 = math.tanh %356 : vector<2x32xf32>
    %cst_172 = arith.constant 1.000000e+00 : f32
    %358 = vector.broadcast %cst_172 : f32 to vector<2x32xf32>
    %359 = arith.subf %358, %352 : vector<2x32xf32>
    %360 = arith.mulf %359, %357 : vector<2x32xf32>
    %361 = arith.mulf %352, %285 : vector<2x32xf32>
    %362 = arith.addf %360, %361 : vector<2x32xf32>
    %c1_i32 = arith.constant 1 : i32
    %363 = vector.broadcast %c1_i32 : i32 to vector<2x1xi32>
    %364 = arith.cmpi sgt, %241, %363 : vector<2x1xi32>
    %365 = vector.shape_cast %364 : vector<2x1xi1> to vector<2x1xi1>
    %366 = vector.broadcast %365 : vector<2x1xi1> to vector<2x32xi1>
    %367 = arith.select %366, %362, %285 : vector<2x32xi1>, vector<2x32xf32>
    %cst_173 = arith.constant 0.000000e+00 : f32
    %368 = vector.shape_cast %364 : vector<2x1xi1> to vector<2x1xi1>
    %369 = vector.broadcast %368 : vector<2x1xi1> to vector<2x32xi1>
    %370 = vector.broadcast %cst_173 : f32 to vector<2x32xf32>
    %371 = arith.select %369, %367, %370 : vector<2x32xi1>, vector<2x32xf32>
    %c1_174 = arith.constant 1 : index
    %c0_175 = arith.constant 0 : index
    %c0_176 = arith.constant 0 : index
    %372 = vector.load %arg12[%c1_174, %c0_175, %c0_176] : memref<8x2x64xf32, #tpu.memory_space<vmem>>, vector<1x2x32xf32>
    %373 = vector.shape_cast %372 : vector<1x2x32xf32> to vector<2x32xf32>
    %374 = vector.shape_cast %371 : vector<2x32xf32> to vector<1x2x32xf32>
    tpu.vector_store %arg12[%c1_174, %c0_175, %c0_176], %374 {strides = array<i32>} : memref<8x2x64xf32, #tpu.memory_space<vmem>>, vector<1x2x32xf32>,
    %cst_177 = arith.constant dense<0.000000e+00> : vector<2x96xf32>
    %375 = tpu.matmul %326, %245, %cst_177 {dimension_numbers = #tpu.dot_dimension_numbers<[1], [0], [0], [1], [0, 0, 1, 1], [], []>} : vector<2x32xf32>, vector<32x96xf32>, vector<2x96xf32> -> vector<2x96xf32>
    %376 = vector.broadcast %249 : vector<1x96xf32> to vector<2x96xf32>
    %377 = arith.addf %375, %376 : vector<2x96xf32>
    %378 = vector.extract_strided_slice %233 {offsets = [0, 0], sizes = [2, 32], strides = [1, 1]} : vector<2x96xf32> to vector<2x32xf32>
    %379 = vector.extract_strided_slice %377 {offsets = [0, 0], sizes = [2, 32], strides = [1, 1]} : vector<2x96xf32> to vector<2x32xf32>
    %380 = arith.addf %378, %379 : vector<2x32xf32>
    %381 = arith.negf %380 : vector<2x32xf32>
    %382 = math.exp %381 : vector<2x32xf32>
    %cst_178 = arith.constant 1.000000e+00 : f32
    %383 = vector.broadcast %cst_178 : f32 to vector<2x32xf32>
    %384 = arith.addf %383, %382 : vector<2x32xf32>
    %385 = arith.divf %383, %384 : vector<2x32xf32>
    %386 = vector.extract_strided_slice %233 {offsets = [0, 32], sizes = [2, 32], strides = [1, 1]} : vector<2x96xf32> to vector<2x32xf32>
    %387 = vector.extract_strided_slice %377 {offsets = [0, 32], sizes = [2, 32], strides = [1, 1]} : vector<2x96xf32> to vector<2x32xf32>
    %388 = arith.addf %386, %387 : vector<2x32xf32>
    %389 = arith.negf %388 : vector<2x32xf32>
    %390 = math.exp %389 : vector<2x32xf32>
    %cst_179 = arith.constant 1.000000e+00 : f32
    %391 = vector.broadcast %cst_179 : f32 to vector<2x32xf32>
    %392 = arith.addf %391, %390 : vector<2x32xf32>
    %393 = arith.divf %391, %392 : vector<2x32xf32>
    %394 = vector.extract_strided_slice %233 {offsets = [0, 64], sizes = [2, 32], strides = [1, 1]} : vector<2x96xf32> to vector<2x32xf32>
    %395 = vector.extract_strided_slice %377 {offsets = [0, 64], sizes = [2, 32], strides = [1, 1]} : vector<2x96xf32> to vector<2x32xf32>
    %396 = arith.mulf %385, %395 : vector<2x32xf32>
    %397 = arith.addf %394, %396 : vector<2x32xf32>
    %398 = math.tanh %397 : vector<2x32xf32>
    %cst_180 = arith.constant 1.000000e+00 : f32
    %399 = vector.broadcast %cst_180 : f32 to vector<2x32xf32>
    %400 = arith.subf %399, %393 : vector<2x32xf32>
    %401 = arith.mulf %400, %398 : vector<2x32xf32>
    %402 = arith.mulf %393, %326 : vector<2x32xf32>
    %403 = arith.addf %401, %402 : vector<2x32xf32>
    %c6_i32 = arith.constant 6 : i32
    %404 = vector.broadcast %c6_i32 : i32 to vector<2x1xi32>
    %405 = arith.cmpi sgt, %241, %404 : vector<2x1xi32>
    %406 = vector.shape_cast %405 : vector<2x1xi1> to vector<2x1xi1>
    %407 = vector.broadcast %406 : vector<2x1xi1> to vector<2x32xi1>
    %408 = arith.select %407, %403, %326 : vector<2x32xi1>, vector<2x32xf32>
    %cst_181 = arith.constant 0.000000e+00 : f32
    %409 = vector.shape_cast %405 : vector<2x1xi1> to vector<2x1xi1>
    %410 = vector.broadcast %409 : vector<2x1xi1> to vector<2x32xi1>
    %411 = vector.broadcast %cst_181 : f32 to vector<2x32xf32>
    %412 = arith.select %410, %408, %411 : vector<2x32xi1>, vector<2x32xf32>
    %c6_182 = arith.constant 6 : index
    %c0_183 = arith.constant 0 : index
    %c32_184 = arith.constant 32 : index
    %413 = vector.load %arg12[%c6_182, %c0_183, %c32_184] : memref<8x2x64xf32, #tpu.memory_space<vmem>>, vector<1x2x32xf32>
    %414 = vector.shape_cast %413 : vector<1x2x32xf32> to vector<2x32xf32>
    %415 = vector.shape_cast %412 : vector<2x32xf32> to vector<1x2x32xf32>
    tpu.vector_store %arg12[%c6_182, %c0_183, %c32_184], %415 {strides = array<i32>} : memref<8x2x64xf32, #tpu.memory_space<vmem>>, vector<1x2x32xf32>,
    %cst_185 = arith.constant dense<0.000000e+00> : vector<2x96xf32>
    %416 = tpu.matmul %367, %243, %cst_185 {dimension_numbers = #tpu.dot_dimension_numbers<[1], [0], [0], [1], [0, 0, 1, 1], [], []>} : vector<2x32xf32>, vector<32x96xf32>, vector<2x96xf32> -> vector<2x96xf32>
    %417 = vector.broadcast %247 : vector<1x96xf32> to vector<2x96xf32>
    %418 = arith.addf %416, %417 : vector<2x96xf32>
    %419 = vector.extract_strided_slice %202 {offsets = [0, 0], sizes = [2, 32], strides = [1, 1]} : vector<2x96xf32> to vector<2x32xf32>
    %420 = vector.extract_strided_slice %418 {offsets = [0, 0], sizes = [2, 32], strides = [1, 1]} : vector<2x96xf32> to vector<2x32xf32>
    %421 = arith.addf %419, %420 : vector<2x32xf32>
    %422 = arith.negf %421 : vector<2x32xf32>
    %423 = math.exp %422 : vector<2x32xf32>
    %cst_186 = arith.constant 1.000000e+00 : f32
    %424 = vector.broadcast %cst_186 : f32 to vector<2x32xf32>
    %425 = arith.addf %424, %423 : vector<2x32xf32>
    %426 = arith.divf %424, %425 : vector<2x32xf32>
    %427 = vector.extract_strided_slice %202 {offsets = [0, 32], sizes = [2, 32], strides = [1, 1]} : vector<2x96xf32> to vector<2x32xf32>
    %428 = vector.extract_strided_slice %418 {offsets = [0, 32], sizes = [2, 32], strides = [1, 1]} : vector<2x96xf32> to vector<2x32xf32>
    %429 = arith.addf %427, %428 : vector<2x32xf32>
    %430 = arith.negf %429 : vector<2x32xf32>
    %431 = math.exp %430 : vector<2x32xf32>
    %cst_187 = arith.constant 1.000000e+00 : f32
    %432 = vector.broadcast %cst_187 : f32 to vector<2x32xf32>
    %433 = arith.addf %432, %431 : vector<2x32xf32>
    %434 = arith.divf %432, %433 : vector<2x32xf32>
    %435 = vector.extract_strided_slice %202 {offsets = [0, 64], sizes = [2, 32], strides = [1, 1]} : vector<2x96xf32> to vector<2x32xf32>
    %436 = vector.extract_strided_slice %418 {offsets = [0, 64], sizes = [2, 32], strides = [1, 1]} : vector<2x96xf32> to vector<2x32xf32>
    %437 = arith.mulf %426, %436 : vector<2x32xf32>
    %438 = arith.addf %435, %437 : vector<2x32xf32>
    %439 = math.tanh %438 : vector<2x32xf32>
    %cst_188 = arith.constant 1.000000e+00 : f32
    %440 = vector.broadcast %cst_188 : f32 to vector<2x32xf32>
    %441 = arith.subf %440, %434 : vector<2x32xf32>
    %442 = arith.mulf %441, %439 : vector<2x32xf32>
    %443 = arith.mulf %434, %367 : vector<2x32xf32>
    %444 = arith.addf %442, %443 : vector<2x32xf32>
    %c2_i32 = arith.constant 2 : i32
    %445 = vector.broadcast %c2_i32 : i32 to vector<2x1xi32>
    %446 = arith.cmpi sgt, %241, %445 : vector<2x1xi32>
    %447 = vector.shape_cast %446 : vector<2x1xi1> to vector<2x1xi1>
    %448 = vector.broadcast %447 : vector<2x1xi1> to vector<2x32xi1>
    %449 = arith.select %448, %444, %367 : vector<2x32xi1>, vector<2x32xf32>
    %cst_189 = arith.constant 0.000000e+00 : f32
    %450 = vector.shape_cast %446 : vector<2x1xi1> to vector<2x1xi1>
    %451 = vector.broadcast %450 : vector<2x1xi1> to vector<2x32xi1>
    %452 = vector.broadcast %cst_189 : f32 to vector<2x32xf32>
    %453 = arith.select %451, %449, %452 : vector<2x32xi1>, vector<2x32xf32>
    %c2_190 = arith.constant 2 : index
    %c0_191 = arith.constant 0 : index
    %c0_192 = arith.constant 0 : index
    %454 = vector.load %arg12[%c2_190, %c0_191, %c0_192] : memref<8x2x64xf32, #tpu.memory_space<vmem>>, vector<1x2x32xf32>
    %455 = vector.shape_cast %454 : vector<1x2x32xf32> to vector<2x32xf32>
    %456 = vector.shape_cast %453 : vector<2x32xf32> to vector<1x2x32xf32>
    tpu.vector_store %arg12[%c2_190, %c0_191, %c0_192], %456 {strides = array<i32>} : memref<8x2x64xf32, #tpu.memory_space<vmem>>, vector<1x2x32xf32>,
    %cst_193 = arith.constant dense<0.000000e+00> : vector<2x96xf32>
    %457 = tpu.matmul %408, %245, %cst_193 {dimension_numbers = #tpu.dot_dimension_numbers<[1], [0], [0], [1], [0, 0, 1, 1], [], []>} : vector<2x32xf32>, vector<32x96xf32>, vector<2x96xf32> -> vector<2x96xf32>
    %458 = vector.broadcast %249 : vector<1x96xf32> to vector<2x96xf32>
    %459 = arith.addf %457, %458 : vector<2x96xf32>
    %460 = vector.extract_strided_slice %226 {offsets = [0, 0], sizes = [2, 32], strides = [1, 1]} : vector<2x96xf32> to vector<2x32xf32>
    %461 = vector.extract_strided_slice %459 {offsets = [0, 0], sizes = [2, 32], strides = [1, 1]} : vector<2x96xf32> to vector<2x32xf32>
    %462 = arith.addf %460, %461 : vector<2x32xf32>
    %463 = arith.negf %462 : vector<2x32xf32>
    %464 = math.exp %463 : vector<2x32xf32>
    %cst_194 = arith.constant 1.000000e+00 : f32
    %465 = vector.broadcast %cst_194 : f32 to vector<2x32xf32>
    %466 = arith.addf %465, %464 : vector<2x32xf32>
    %467 = arith.divf %465, %466 : vector<2x32xf32>
    %468 = vector.extract_strided_slice %226 {offsets = [0, 32], sizes = [2, 32], strides = [1, 1]} : vector<2x96xf32> to vector<2x32xf32>
    %469 = vector.extract_strided_slice %459 {offsets = [0, 32], sizes = [2, 32], strides = [1, 1]} : vector<2x96xf32> to vector<2x32xf32>
    %470 = arith.addf %468, %469 : vector<2x32xf32>
    %471 = arith.negf %470 : vector<2x32xf32>
    %472 = math.exp %471 : vector<2x32xf32>
    %cst_195 = arith.constant 1.000000e+00 : f32
    %473 = vector.broadcast %cst_195 : f32 to vector<2x32xf32>
    %474 = arith.addf %473, %472 : vector<2x32xf32>
    %475 = arith.divf %473, %474 : vector<2x32xf32>
    %476 = vector.extract_strided_slice %226 {offsets = [0, 64], sizes = [2, 32], strides = [1, 1]} : vector<2x96xf32> to vector<2x32xf32>
    %477 = vector.extract_strided_slice %459 {offsets = [0, 64], sizes = [2, 32], strides = [1, 1]} : vector<2x96xf32> to vector<2x32xf32>
    %478 = arith.mulf %467, %477 : vector<2x32xf32>
    %479 = arith.addf %476, %478 : vector<2x32xf32>
    %480 = math.tanh %479 : vector<2x32xf32>
    %cst_196 = arith.constant 1.000000e+00 : f32
    %481 = vector.broadcast %cst_196 : f32 to vector<2x32xf32>
    %482 = arith.subf %481, %475 : vector<2x32xf32>
    %483 = arith.mulf %482, %480 : vector<2x32xf32>
    %484 = arith.mulf %475, %408 : vector<2x32xf32>
    %485 = arith.addf %483, %484 : vector<2x32xf32>
    %c5_i32 = arith.constant 5 : i32
    %486 = vector.broadcast %c5_i32 : i32 to vector<2x1xi32>
    %487 = arith.cmpi sgt, %241, %486 : vector<2x1xi32>
    %488 = vector.shape_cast %487 : vector<2x1xi1> to vector<2x1xi1>
    %489 = vector.broadcast %488 : vector<2x1xi1> to vector<2x32xi1>
    %490 = arith.select %489, %485, %408 : vector<2x32xi1>, vector<2x32xf32>
    %cst_197 = arith.constant 0.000000e+00 : f32
    %491 = vector.shape_cast %487 : vector<2x1xi1> to vector<2x1xi1>
    %492 = vector.broadcast %491 : vector<2x1xi1> to vector<2x32xi1>
    %493 = vector.broadcast %cst_197 : f32 to vector<2x32xf32>
    %494 = arith.select %492, %490, %493 : vector<2x32xi1>, vector<2x32xf32>
    %c5_198 = arith.constant 5 : index
    %c0_199 = arith.constant 0 : index
    %c32_200 = arith.constant 32 : index
    %495 = vector.load %arg12[%c5_198, %c0_199, %c32_200] : memref<8x2x64xf32, #tpu.memory_space<vmem>>, vector<1x2x32xf32>
    %496 = vector.shape_cast %495 : vector<1x2x32xf32> to vector<2x32xf32>
    %497 = vector.shape_cast %494 : vector<2x32xf32> to vector<1x2x32xf32>
    tpu.vector_store %arg12[%c5_198, %c0_199, %c32_200], %497 {strides = array<i32>} : memref<8x2x64xf32, #tpu.memory_space<vmem>>, vector<1x2x32xf32>,
    %cst_201 = arith.constant dense<0.000000e+00> : vector<2x96xf32>
    %498 = tpu.matmul %449, %243, %cst_201 {dimension_numbers = #tpu.dot_dimension_numbers<[1], [0], [0], [1], [0, 0, 1, 1], [], []>} : vector<2x32xf32>, vector<32x96xf32>, vector<2x96xf32> -> vector<2x96xf32>
    %499 = vector.broadcast %247 : vector<1x96xf32> to vector<2x96xf32>
    %500 = arith.addf %498, %499 : vector<2x96xf32>
    %501 = vector.extract_strided_slice %209 {offsets = [0, 0], sizes = [2, 32], strides = [1, 1]} : vector<2x96xf32> to vector<2x32xf32>
    %502 = vector.extract_strided_slice %500 {offsets = [0, 0], sizes = [2, 32], strides = [1, 1]} : vector<2x96xf32> to vector<2x32xf32>
    %503 = arith.addf %501, %502 : vector<2x32xf32>
    %504 = arith.negf %503 : vector<2x32xf32>
    %505 = math.exp %504 : vector<2x32xf32>
    %cst_202 = arith.constant 1.000000e+00 : f32
    %506 = vector.broadcast %cst_202 : f32 to vector<2x32xf32>
    %507 = arith.addf %506, %505 : vector<2x32xf32>
    %508 = arith.divf %506, %507 : vector<2x32xf32>
    %509 = vector.extract_strided_slice %209 {offsets = [0, 32], sizes = [2, 32], strides = [1, 1]} : vector<2x96xf32> to vector<2x32xf32>
    %510 = vector.extract_strided_slice %500 {offsets = [0, 32], sizes = [2, 32], strides = [1, 1]} : vector<2x96xf32> to vector<2x32xf32>
    %511 = arith.addf %509, %510 : vector<2x32xf32>
    %512 = arith.negf %511 : vector<2x32xf32>
    %513 = math.exp %512 : vector<2x32xf32>
    %cst_203 = arith.constant 1.000000e+00 : f32
    %514 = vector.broadcast %cst_203 : f32 to vector<2x32xf32>
    %515 = arith.addf %514, %513 : vector<2x32xf32>
    %516 = arith.divf %514, %515 : vector<2x32xf32>
    %517 = vector.extract_strided_slice %209 {offsets = [0, 64], sizes = [2, 32], strides = [1, 1]} : vector<2x96xf32> to vector<2x32xf32>
    %518 = vector.extract_strided_slice %500 {offsets = [0, 64], sizes = [2, 32], strides = [1, 1]} : vector<2x96xf32> to vector<2x32xf32>
    %519 = arith.mulf %508, %518 : vector<2x32xf32>
    %520 = arith.addf %517, %519 : vector<2x32xf32>
    %521 = math.tanh %520 : vector<2x32xf32>
    %cst_204 = arith.constant 1.000000e+00 : f32
    %522 = vector.broadcast %cst_204 : f32 to vector<2x32xf32>
    %523 = arith.subf %522, %516 : vector<2x32xf32>
    %524 = arith.mulf %523, %521 : vector<2x32xf32>
    %525 = arith.mulf %516, %449 : vector<2x32xf32>
    %526 = arith.addf %524, %525 : vector<2x32xf32>
    %c3_i32 = arith.constant 3 : i32
    %527 = vector.broadcast %c3_i32 : i32 to vector<2x1xi32>
    %528 = arith.cmpi sgt, %241, %527 : vector<2x1xi32>
    %529 = vector.shape_cast %528 : vector<2x1xi1> to vector<2x1xi1>
    %530 = vector.broadcast %529 : vector<2x1xi1> to vector<2x32xi1>
    %531 = arith.select %530, %526, %449 : vector<2x32xi1>, vector<2x32xf32>
    %cst_205 = arith.constant 0.000000e+00 : f32
    %532 = vector.shape_cast %528 : vector<2x1xi1> to vector<2x1xi1>
    %533 = vector.broadcast %532 : vector<2x1xi1> to vector<2x32xi1>
    %534 = vector.broadcast %cst_205 : f32 to vector<2x32xf32>
    %535 = arith.select %533, %531, %534 : vector<2x32xi1>, vector<2x32xf32>
    %c3_206 = arith.constant 3 : index
    %c0_207 = arith.constant 0 : index
    %c0_208 = arith.constant 0 : index
    %536 = vector.load %arg12[%c3_206, %c0_207, %c0_208] : memref<8x2x64xf32, #tpu.memory_space<vmem>>, vector<1x2x32xf32>
    %537 = vector.shape_cast %536 : vector<1x2x32xf32> to vector<2x32xf32>
    %538 = vector.shape_cast %535 : vector<2x32xf32> to vector<1x2x32xf32>
    tpu.vector_store %arg12[%c3_206, %c0_207, %c0_208], %538 {strides = array<i32>} : memref<8x2x64xf32, #tpu.memory_space<vmem>>, vector<1x2x32xf32>,
    %cst_209 = arith.constant dense<0.000000e+00> : vector<2x96xf32>
    %539 = tpu.matmul %490, %245, %cst_209 {dimension_numbers = #tpu.dot_dimension_numbers<[1], [0], [0], [1], [0, 0, 1, 1], [], []>} : vector<2x32xf32>, vector<32x96xf32>, vector<2x96xf32> -> vector<2x96xf32>
    %540 = vector.broadcast %249 : vector<1x96xf32> to vector<2x96xf32>
    %541 = arith.addf %539, %540 : vector<2x96xf32>
    %542 = vector.extract_strided_slice %219 {offsets = [0, 0], sizes = [2, 32], strides = [1, 1]} : vector<2x96xf32> to vector<2x32xf32>
    %543 = vector.extract_strided_slice %541 {offsets = [0, 0], sizes = [2, 32], strides = [1, 1]} : vector<2x96xf32> to vector<2x32xf32>
    %544 = arith.addf %542, %543 : vector<2x32xf32>
    %545 = arith.negf %544 : vector<2x32xf32>
    %546 = math.exp %545 : vector<2x32xf32>
    %cst_210 = arith.constant 1.000000e+00 : f32
    %547 = vector.broadcast %cst_210 : f32 to vector<2x32xf32>
    %548 = arith.addf %547, %546 : vector<2x32xf32>
    %549 = arith.divf %547, %548 : vector<2x32xf32>
    %550 = vector.extract_strided_slice %219 {offsets = [0, 32], sizes = [2, 32], strides = [1, 1]} : vector<2x96xf32> to vector<2x32xf32>
    %551 = vector.extract_strided_slice %541 {offsets = [0, 32], sizes = [2, 32], strides = [1, 1]} : vector<2x96xf32> to vector<2x32xf32>
    %552 = arith.addf %550, %551 : vector<2x32xf32>
    %553 = arith.negf %552 : vector<2x32xf32>
    %554 = math.exp %553 : vector<2x32xf32>
    %cst_211 = arith.constant 1.000000e+00 : f32
    %555 = vector.broadcast %cst_211 : f32 to vector<2x32xf32>
    %556 = arith.addf %555, %554 : vector<2x32xf32>
    %557 = arith.divf %555, %556 : vector<2x32xf32>
    %558 = vector.extract_strided_slice %219 {offsets = [0, 64], sizes = [2, 32], strides = [1, 1]} : vector<2x96xf32> to vector<2x32xf32>
    %559 = vector.extract_strided_slice %541 {offsets = [0, 64], sizes = [2, 32], strides = [1, 1]} : vector<2x96xf32> to vector<2x32xf32>
    %560 = arith.mulf %549, %559 : vector<2x32xf32>
    %561 = arith.addf %558, %560 : vector<2x32xf32>
    %562 = math.tanh %561 : vector<2x32xf32>
    %cst_212 = arith.constant 1.000000e+00 : f32
    %563 = vector.broadcast %cst_212 : f32 to vector<2x32xf32>
    %564 = arith.subf %563, %557 : vector<2x32xf32>
    %565 = arith.mulf %564, %562 : vector<2x32xf32>
    %566 = arith.mulf %557, %490 : vector<2x32xf32>
    %567 = arith.addf %565, %566 : vector<2x32xf32>
    %c4_i32 = arith.constant 4 : i32
    %568 = vector.broadcast %c4_i32 : i32 to vector<2x1xi32>
    %569 = arith.cmpi sgt, %241, %568 : vector<2x1xi32>
    %570 = vector.shape_cast %569 : vector<2x1xi1> to vector<2x1xi1>
    %571 = vector.broadcast %570 : vector<2x1xi1> to vector<2x32xi1>
    %572 = arith.select %571, %567, %490 : vector<2x32xi1>, vector<2x32xf32>
    %cst_213 = arith.constant 0.000000e+00 : f32
    %573 = vector.shape_cast %569 : vector<2x1xi1> to vector<2x1xi1>
    %574 = vector.broadcast %573 : vector<2x1xi1> to vector<2x32xi1>
    %575 = vector.broadcast %cst_213 : f32 to vector<2x32xf32>
    %576 = arith.select %574, %572, %575 : vector<2x32xi1>, vector<2x32xf32>
    %c4_214 = arith.constant 4 : index
    %c0_215 = arith.constant 0 : index
    %c32_216 = arith.constant 32 : index
    %577 = vector.load %arg12[%c4_214, %c0_215, %c32_216] : memref<8x2x64xf32, #tpu.memory_space<vmem>>, vector<1x2x32xf32>
    %578 = vector.shape_cast %577 : vector<1x2x32xf32> to vector<2x32xf32>
    %579 = vector.shape_cast %576 : vector<2x32xf32> to vector<1x2x32xf32>
    tpu.vector_store %arg12[%c4_214, %c0_215, %c32_216], %579 {strides = array<i32>} : memref<8x2x64xf32, #tpu.memory_space<vmem>>, vector<1x2x32xf32>,
    %cst_217 = arith.constant dense<0.000000e+00> : vector<2x96xf32>
    %580 = tpu.matmul %531, %243, %cst_217 {dimension_numbers = #tpu.dot_dimension_numbers<[1], [0], [0], [1], [0, 0, 1, 1], [], []>} : vector<2x32xf32>, vector<32x96xf32>, vector<2x96xf32> -> vector<2x96xf32>
    %581 = vector.broadcast %247 : vector<1x96xf32> to vector<2x96xf32>
    %582 = arith.addf %580, %581 : vector<2x96xf32>
    %583 = vector.extract_strided_slice %216 {offsets = [0, 0], sizes = [2, 32], strides = [1, 1]} : vector<2x96xf32> to vector<2x32xf32>
    %584 = vector.extract_strided_slice %582 {offsets = [0, 0], sizes = [2, 32], strides = [1, 1]} : vector<2x96xf32> to vector<2x32xf32>
    %585 = arith.addf %583, %584 : vector<2x32xf32>
    %586 = arith.negf %585 : vector<2x32xf32>
    %587 = math.exp %586 : vector<2x32xf32>
    %cst_218 = arith.constant 1.000000e+00 : f32
    %588 = vector.broadcast %cst_218 : f32 to vector<2x32xf32>
    %589 = arith.addf %588, %587 : vector<2x32xf32>
    %590 = arith.divf %588, %589 : vector<2x32xf32>
    %591 = vector.extract_strided_slice %216 {offsets = [0, 32], sizes = [2, 32], strides = [1, 1]} : vector<2x96xf32> to vector<2x32xf32>
    %592 = vector.extract_strided_slice %582 {offsets = [0, 32], sizes = [2, 32], strides = [1, 1]} : vector<2x96xf32> to vector<2x32xf32>
    %593 = arith.addf %591, %592 : vector<2x32xf32>
    %594 = arith.negf %593 : vector<2x32xf32>
    %595 = math.exp %594 : vector<2x32xf32>
    %cst_219 = arith.constant 1.000000e+00 : f32
    %596 = vector.broadcast %cst_219 : f32 to vector<2x32xf32>
    %597 = arith.addf %596, %595 : vector<2x32xf32>
    %598 = arith.divf %596, %597 : vector<2x32xf32>
    %599 = vector.extract_strided_slice %216 {offsets = [0, 64], sizes = [2, 32], strides = [1, 1]} : vector<2x96xf32> to vector<2x32xf32>
    %600 = vector.extract_strided_slice %582 {offsets = [0, 64], sizes = [2, 32], strides = [1, 1]} : vector<2x96xf32> to vector<2x32xf32>
    %601 = arith.mulf %590, %600 : vector<2x32xf32>
    %602 = arith.addf %599, %601 : vector<2x32xf32>
    %603 = math.tanh %602 : vector<2x32xf32>
    %cst_220 = arith.constant 1.000000e+00 : f32
    %604 = vector.broadcast %cst_220 : f32 to vector<2x32xf32>
    %605 = arith.subf %604, %598 : vector<2x32xf32>
    %606 = arith.mulf %605, %603 : vector<2x32xf32>
    %607 = arith.mulf %598, %531 : vector<2x32xf32>
    %608 = arith.addf %606, %607 : vector<2x32xf32>
    %c4_i32_221 = arith.constant 4 : i32
    %609 = vector.broadcast %c4_i32_221 : i32 to vector<2x1xi32>
    %610 = arith.cmpi sgt, %241, %609 : vector<2x1xi32>
    %611 = vector.shape_cast %610 : vector<2x1xi1> to vector<2x1xi1>
    %612 = vector.broadcast %611 : vector<2x1xi1> to vector<2x32xi1>
    %613 = arith.select %612, %608, %531 : vector<2x32xi1>, vector<2x32xf32>
    %cst_222 = arith.constant 0.000000e+00 : f32
    %614 = vector.shape_cast %610 : vector<2x1xi1> to vector<2x1xi1>
    %615 = vector.broadcast %614 : vector<2x1xi1> to vector<2x32xi1>
    %616 = vector.broadcast %cst_222 : f32 to vector<2x32xf32>
    %617 = arith.select %615, %613, %616 : vector<2x32xi1>, vector<2x32xf32>
    %c4_223 = arith.constant 4 : index
    %c0_224 = arith.constant 0 : index
    %c0_225 = arith.constant 0 : index
    %618 = vector.load %arg12[%c4_223, %c0_224, %c0_225] : memref<8x2x64xf32, #tpu.memory_space<vmem>>, vector<1x2x32xf32>
    %619 = vector.shape_cast %618 : vector<1x2x32xf32> to vector<2x32xf32>
    %620 = vector.shape_cast %617 : vector<2x32xf32> to vector<1x2x32xf32>
    tpu.vector_store %arg12[%c4_223, %c0_224, %c0_225], %620 {strides = array<i32>} : memref<8x2x64xf32, #tpu.memory_space<vmem>>, vector<1x2x32xf32>,
    %cst_226 = arith.constant dense<0.000000e+00> : vector<2x96xf32>
    %621 = tpu.matmul %572, %245, %cst_226 {dimension_numbers = #tpu.dot_dimension_numbers<[1], [0], [0], [1], [0, 0, 1, 1], [], []>} : vector<2x32xf32>, vector<32x96xf32>, vector<2x96xf32> -> vector<2x96xf32>
    %622 = vector.broadcast %249 : vector<1x96xf32> to vector<2x96xf32>
    %623 = arith.addf %621, %622 : vector<2x96xf32>
    %624 = vector.extract_strided_slice %212 {offsets = [0, 0], sizes = [2, 32], strides = [1, 1]} : vector<2x96xf32> to vector<2x32xf32>
    %625 = vector.extract_strided_slice %623 {offsets = [0, 0], sizes = [2, 32], strides = [1, 1]} : vector<2x96xf32> to vector<2x32xf32>
    %626 = arith.addf %624, %625 : vector<2x32xf32>
    %627 = arith.negf %626 : vector<2x32xf32>
    %628 = math.exp %627 : vector<2x32xf32>
    %cst_227 = arith.constant 1.000000e+00 : f32
    %629 = vector.broadcast %cst_227 : f32 to vector<2x32xf32>
    %630 = arith.addf %629, %628 : vector<2x32xf32>
    %631 = arith.divf %629, %630 : vector<2x32xf32>
    %632 = vector.extract_strided_slice %212 {offsets = [0, 32], sizes = [2, 32], strides = [1, 1]} : vector<2x96xf32> to vector<2x32xf32>
    %633 = vector.extract_strided_slice %623 {offsets = [0, 32], sizes = [2, 32], strides = [1, 1]} : vector<2x96xf32> to vector<2x32xf32>
    %634 = arith.addf %632, %633 : vector<2x32xf32>
    %635 = arith.negf %634 : vector<2x32xf32>
    %636 = math.exp %635 : vector<2x32xf32>
    %cst_228 = arith.constant 1.000000e+00 : f32
    %637 = vector.broadcast %cst_228 : f32 to vector<2x32xf32>
    %638 = arith.addf %637, %636 : vector<2x32xf32>
    %639 = arith.divf %637, %638 : vector<2x32xf32>
    %640 = vector.extract_strided_slice %212 {offsets = [0, 64], sizes = [2, 32], strides = [1, 1]} : vector<2x96xf32> to vector<2x32xf32>
    %641 = vector.extract_strided_slice %623 {offsets = [0, 64], sizes = [2, 32], strides = [1, 1]} : vector<2x96xf32> to vector<2x32xf32>
    %642 = arith.mulf %631, %641 : vector<2x32xf32>
    %643 = arith.addf %640, %642 : vector<2x32xf32>
    %644 = math.tanh %643 : vector<2x32xf32>
    %cst_229 = arith.constant 1.000000e+00 : f32
    %645 = vector.broadcast %cst_229 : f32 to vector<2x32xf32>
    %646 = arith.subf %645, %639 : vector<2x32xf32>
    %647 = arith.mulf %646, %644 : vector<2x32xf32>
    %648 = arith.mulf %639, %572 : vector<2x32xf32>
    %649 = arith.addf %647, %648 : vector<2x32xf32>
    %c3_i32_230 = arith.constant 3 : i32
    %650 = vector.broadcast %c3_i32_230 : i32 to vector<2x1xi32>
    %651 = arith.cmpi sgt, %241, %650 : vector<2x1xi32>
    %652 = vector.shape_cast %651 : vector<2x1xi1> to vector<2x1xi1>
    %653 = vector.broadcast %652 : vector<2x1xi1> to vector<2x32xi1>
    %654 = arith.select %653, %649, %572 : vector<2x32xi1>, vector<2x32xf32>
    %cst_231 = arith.constant 0.000000e+00 : f32
    %655 = vector.shape_cast %651 : vector<2x1xi1> to vector<2x1xi1>
    %656 = vector.broadcast %655 : vector<2x1xi1> to vector<2x32xi1>
    %657 = vector.broadcast %cst_231 : f32 to vector<2x32xf32>
    %658 = arith.select %656, %654, %657 : vector<2x32xi1>, vector<2x32xf32>
    %c3_232 = arith.constant 3 : index
    %c0_233 = arith.constant 0 : index
    %c32_234 = arith.constant 32 : index
    %659 = vector.load %arg12[%c3_232, %c0_233, %c32_234] : memref<8x2x64xf32, #tpu.memory_space<vmem>>, vector<1x2x32xf32>
    %660 = vector.shape_cast %659 : vector<1x2x32xf32> to vector<2x32xf32>
    %661 = vector.shape_cast %658 : vector<2x32xf32> to vector<1x2x32xf32>
    tpu.vector_store %arg12[%c3_232, %c0_233, %c32_234], %661 {strides = array<i32>} : memref<8x2x64xf32, #tpu.memory_space<vmem>>, vector<1x2x32xf32>,
    %cst_235 = arith.constant dense<0.000000e+00> : vector<2x96xf32>
    %662 = tpu.matmul %613, %243, %cst_235 {dimension_numbers = #tpu.dot_dimension_numbers<[1], [0], [0], [1], [0, 0, 1, 1], [], []>} : vector<2x32xf32>, vector<32x96xf32>, vector<2x96xf32> -> vector<2x96xf32>
    %663 = vector.broadcast %247 : vector<1x96xf32> to vector<2x96xf32>
    %664 = arith.addf %662, %663 : vector<2x96xf32>
    %665 = vector.extract_strided_slice %223 {offsets = [0, 0], sizes = [2, 32], strides = [1, 1]} : vector<2x96xf32> to vector<2x32xf32>
    %666 = vector.extract_strided_slice %664 {offsets = [0, 0], sizes = [2, 32], strides = [1, 1]} : vector<2x96xf32> to vector<2x32xf32>
    %667 = arith.addf %665, %666 : vector<2x32xf32>
    %668 = arith.negf %667 : vector<2x32xf32>
    %669 = math.exp %668 : vector<2x32xf32>
    %cst_236 = arith.constant 1.000000e+00 : f32
    %670 = vector.broadcast %cst_236 : f32 to vector<2x32xf32>
    %671 = arith.addf %670, %669 : vector<2x32xf32>
    %672 = arith.divf %670, %671 : vector<2x32xf32>
    %673 = vector.extract_strided_slice %223 {offsets = [0, 32], sizes = [2, 32], strides = [1, 1]} : vector<2x96xf32> to vector<2x32xf32>
    %674 = vector.extract_strided_slice %664 {offsets = [0, 32], sizes = [2, 32], strides = [1, 1]} : vector<2x96xf32> to vector<2x32xf32>
    %675 = arith.addf %673, %674 : vector<2x32xf32>
    %676 = arith.negf %675 : vector<2x32xf32>
    %677 = math.exp %676 : vector<2x32xf32>
    %cst_237 = arith.constant 1.000000e+00 : f32
    %678 = vector.broadcast %cst_237 : f32 to vector<2x32xf32>
    %679 = arith.addf %678, %677 : vector<2x32xf32>
    %680 = arith.divf %678, %679 : vector<2x32xf32>
    %681 = vector.extract_strided_slice %223 {offsets = [0, 64], sizes = [2, 32], strides = [1, 1]} : vector<2x96xf32> to vector<2x32xf32>
    %682 = vector.extract_strided_slice %664 {offsets = [0, 64], sizes = [2, 32], strides = [1, 1]} : vector<2x96xf32> to vector<2x32xf32>
    %683 = arith.mulf %672, %682 : vector<2x32xf32>
    %684 = arith.addf %681, %683 : vector<2x32xf32>
    %685 = math.tanh %684 : vector<2x32xf32>
    %cst_238 = arith.constant 1.000000e+00 : f32
    %686 = vector.broadcast %cst_238 : f32 to vector<2x32xf32>
    %687 = arith.subf %686, %680 : vector<2x32xf32>
    %688 = arith.mulf %687, %685 : vector<2x32xf32>
    %689 = arith.mulf %680, %613 : vector<2x32xf32>
    %690 = arith.addf %688, %689 : vector<2x32xf32>
    %c5_i32_239 = arith.constant 5 : i32
    %691 = vector.broadcast %c5_i32_239 : i32 to vector<2x1xi32>
    %692 = arith.cmpi sgt, %241, %691 : vector<2x1xi32>
    %693 = vector.shape_cast %692 : vector<2x1xi1> to vector<2x1xi1>
    %694 = vector.broadcast %693 : vector<2x1xi1> to vector<2x32xi1>
    %695 = arith.select %694, %690, %613 : vector<2x32xi1>, vector<2x32xf32>
    %cst_240 = arith.constant 0.000000e+00 : f32
    %696 = vector.shape_cast %692 : vector<2x1xi1> to vector<2x1xi1>
    %697 = vector.broadcast %696 : vector<2x1xi1> to vector<2x32xi1>
    %698 = vector.broadcast %cst_240 : f32 to vector<2x32xf32>
    %699 = arith.select %697, %695, %698 : vector<2x32xi1>, vector<2x32xf32>
    %c5_241 = arith.constant 5 : index
    %c0_242 = arith.constant 0 : index
    %c0_243 = arith.constant 0 : index
    %700 = vector.load %arg12[%c5_241, %c0_242, %c0_243] : memref<8x2x64xf32, #tpu.memory_space<vmem>>, vector<1x2x32xf32>
    %701 = vector.shape_cast %700 : vector<1x2x32xf32> to vector<2x32xf32>
    %702 = vector.shape_cast %699 : vector<2x32xf32> to vector<1x2x32xf32>
    tpu.vector_store %arg12[%c5_241, %c0_242, %c0_243], %702 {strides = array<i32>} : memref<8x2x64xf32, #tpu.memory_space<vmem>>, vector<1x2x32xf32>,
    %cst_244 = arith.constant dense<0.000000e+00> : vector<2x96xf32>
    %703 = tpu.matmul %654, %245, %cst_244 {dimension_numbers = #tpu.dot_dimension_numbers<[1], [0], [0], [1], [0, 0, 1, 1], [], []>} : vector<2x32xf32>, vector<32x96xf32>, vector<2x96xf32> -> vector<2x96xf32>
    %704 = vector.broadcast %249 : vector<1x96xf32> to vector<2x96xf32>
    %705 = arith.addf %703, %704 : vector<2x96xf32>
    %706 = vector.extract_strided_slice %205 {offsets = [0, 0], sizes = [2, 32], strides = [1, 1]} : vector<2x96xf32> to vector<2x32xf32>
    %707 = vector.extract_strided_slice %705 {offsets = [0, 0], sizes = [2, 32], strides = [1, 1]} : vector<2x96xf32> to vector<2x32xf32>
    %708 = arith.addf %706, %707 : vector<2x32xf32>
    %709 = arith.negf %708 : vector<2x32xf32>
    %710 = math.exp %709 : vector<2x32xf32>
    %cst_245 = arith.constant 1.000000e+00 : f32
    %711 = vector.broadcast %cst_245 : f32 to vector<2x32xf32>
    %712 = arith.addf %711, %710 : vector<2x32xf32>
    %713 = arith.divf %711, %712 : vector<2x32xf32>
    %714 = vector.extract_strided_slice %205 {offsets = [0, 32], sizes = [2, 32], strides = [1, 1]} : vector<2x96xf32> to vector<2x32xf32>
    %715 = vector.extract_strided_slice %705 {offsets = [0, 32], sizes = [2, 32], strides = [1, 1]} : vector<2x96xf32> to vector<2x32xf32>
    %716 = arith.addf %714, %715 : vector<2x32xf32>
    %717 = arith.negf %716 : vector<2x32xf32>
    %718 = math.exp %717 : vector<2x32xf32>
    %cst_246 = arith.constant 1.000000e+00 : f32
    %719 = vector.broadcast %cst_246 : f32 to vector<2x32xf32>
    %720 = arith.addf %719, %718 : vector<2x32xf32>
    %721 = arith.divf %719, %720 : vector<2x32xf32>
    %722 = vector.extract_strided_slice %205 {offsets = [0, 64], sizes = [2, 32], strides = [1, 1]} : vector<2x96xf32> to vector<2x32xf32>
    %723 = vector.extract_strided_slice %705 {offsets = [0, 64], sizes = [2, 32], strides = [1, 1]} : vector<2x96xf32> to vector<2x32xf32>
    %724 = arith.mulf %713, %723 : vector<2x32xf32>
    %725 = arith.addf %722, %724 : vector<2x32xf32>
    %726 = math.tanh %725 : vector<2x32xf32>
    %cst_247 = arith.constant 1.000000e+00 : f32
    %727 = vector.broadcast %cst_247 : f32 to vector<2x32xf32>
    %728 = arith.subf %727, %721 : vector<2x32xf32>
    %729 = arith.mulf %728, %726 : vector<2x32xf32>
    %730 = arith.mulf %721, %654 : vector<2x32xf32>
    %731 = arith.addf %729, %730 : vector<2x32xf32>
    %c2_i32_248 = arith.constant 2 : i32
    %732 = vector.broadcast %c2_i32_248 : i32 to vector<2x1xi32>
    %733 = arith.cmpi sgt, %241, %732 : vector<2x1xi32>
    %734 = vector.shape_cast %733 : vector<2x1xi1> to vector<2x1xi1>
    %735 = vector.broadcast %734 : vector<2x1xi1> to vector<2x32xi1>
    %736 = arith.select %735, %731, %654 : vector<2x32xi1>, vector<2x32xf32>
    %cst_249 = arith.constant 0.000000e+00 : f32
    %737 = vector.shape_cast %733 : vector<2x1xi1> to vector<2x1xi1>
    %738 = vector.broadcast %737 : vector<2x1xi1> to vector<2x32xi1>
    %739 = vector.broadcast %cst_249 : f32 to vector<2x32xf32>
    %740 = arith.select %738, %736, %739 : vector<2x32xi1>, vector<2x32xf32>
    %c2_250 = arith.constant 2 : index
    %c0_251 = arith.constant 0 : index
    %c32_252 = arith.constant 32 : index
    %741 = vector.load %arg12[%c2_250, %c0_251, %c32_252] : memref<8x2x64xf32, #tpu.memory_space<vmem>>, vector<1x2x32xf32>
    %742 = vector.shape_cast %741 : vector<1x2x32xf32> to vector<2x32xf32>
    %743 = vector.shape_cast %740 : vector<2x32xf32> to vector<1x2x32xf32>
    tpu.vector_store %arg12[%c2_250, %c0_251, %c32_252], %743 {strides = array<i32>} : memref<8x2x64xf32, #tpu.memory_space<vmem>>, vector<1x2x32xf32>,
    %cst_253 = arith.constant dense<0.000000e+00> : vector<2x96xf32>
    %744 = tpu.matmul %695, %243, %cst_253 {dimension_numbers = #tpu.dot_dimension_numbers<[1], [0], [0], [1], [0, 0, 1, 1], [], []>} : vector<2x32xf32>, vector<32x96xf32>, vector<2x96xf32> -> vector<2x96xf32>
    %745 = vector.broadcast %247 : vector<1x96xf32> to vector<2x96xf32>
    %746 = arith.addf %744, %745 : vector<2x96xf32>
    %747 = vector.extract_strided_slice %230 {offsets = [0, 0], sizes = [2, 32], strides = [1, 1]} : vector<2x96xf32> to vector<2x32xf32>
    %748 = vector.extract_strided_slice %746 {offsets = [0, 0], sizes = [2, 32], strides = [1, 1]} : vector<2x96xf32> to vector<2x32xf32>
    %749 = arith.addf %747, %748 : vector<2x32xf32>
    %750 = arith.negf %749 : vector<2x32xf32>
    %751 = math.exp %750 : vector<2x32xf32>
    %cst_254 = arith.constant 1.000000e+00 : f32
    %752 = vector.broadcast %cst_254 : f32 to vector<2x32xf32>
    %753 = arith.addf %752, %751 : vector<2x32xf32>
    %754 = arith.divf %752, %753 : vector<2x32xf32>
    %755 = vector.extract_strided_slice %230 {offsets = [0, 32], sizes = [2, 32], strides = [1, 1]} : vector<2x96xf32> to vector<2x32xf32>
    %756 = vector.extract_strided_slice %746 {offsets = [0, 32], sizes = [2, 32], strides = [1, 1]} : vector<2x96xf32> to vector<2x32xf32>
    %757 = arith.addf %755, %756 : vector<2x32xf32>
    %758 = arith.negf %757 : vector<2x32xf32>
    %759 = math.exp %758 : vector<2x32xf32>
    %cst_255 = arith.constant 1.000000e+00 : f32
    %760 = vector.broadcast %cst_255 : f32 to vector<2x32xf32>
    %761 = arith.addf %760, %759 : vector<2x32xf32>
    %762 = arith.divf %760, %761 : vector<2x32xf32>
    %763 = vector.extract_strided_slice %230 {offsets = [0, 64], sizes = [2, 32], strides = [1, 1]} : vector<2x96xf32> to vector<2x32xf32>
    %764 = vector.extract_strided_slice %746 {offsets = [0, 64], sizes = [2, 32], strides = [1, 1]} : vector<2x96xf32> to vector<2x32xf32>
    %765 = arith.mulf %754, %764 : vector<2x32xf32>
    %766 = arith.addf %763, %765 : vector<2x32xf32>
    %767 = math.tanh %766 : vector<2x32xf32>
    %cst_256 = arith.constant 1.000000e+00 : f32
    %768 = vector.broadcast %cst_256 : f32 to vector<2x32xf32>
    %769 = arith.subf %768, %762 : vector<2x32xf32>
    %770 = arith.mulf %769, %767 : vector<2x32xf32>
    %771 = arith.mulf %762, %695 : vector<2x32xf32>
    %772 = arith.addf %770, %771 : vector<2x32xf32>
    %c6_i32_257 = arith.constant 6 : i32
    %773 = vector.broadcast %c6_i32_257 : i32 to vector<2x1xi32>
    %774 = arith.cmpi sgt, %241, %773 : vector<2x1xi32>
    %775 = vector.shape_cast %774 : vector<2x1xi1> to vector<2x1xi1>
    %776 = vector.broadcast %775 : vector<2x1xi1> to vector<2x32xi1>
    %777 = arith.select %776, %772, %695 : vector<2x32xi1>, vector<2x32xf32>
    %cst_258 = arith.constant 0.000000e+00 : f32
    %778 = vector.shape_cast %774 : vector<2x1xi1> to vector<2x1xi1>
    %779 = vector.broadcast %778 : vector<2x1xi1> to vector<2x32xi1>
    %780 = vector.broadcast %cst_258 : f32 to vector<2x32xf32>
    %781 = arith.select %779, %777, %780 : vector<2x32xi1>, vector<2x32xf32>
    %c6_259 = arith.constant 6 : index
    %c0_260 = arith.constant 0 : index
    %c0_261 = arith.constant 0 : index
    %782 = vector.load %arg12[%c6_259, %c0_260, %c0_261] : memref<8x2x64xf32, #tpu.memory_space<vmem>>, vector<1x2x32xf32>
    %783 = vector.shape_cast %782 : vector<1x2x32xf32> to vector<2x32xf32>
    %784 = vector.shape_cast %781 : vector<2x32xf32> to vector<1x2x32xf32>
    tpu.vector_store %arg12[%c6_259, %c0_260, %c0_261], %784 {strides = array<i32>} : memref<8x2x64xf32, #tpu.memory_space<vmem>>, vector<1x2x32xf32>,
    %cst_262 = arith.constant dense<0.000000e+00> : vector<2x96xf32>
    %785 = tpu.matmul %736, %245, %cst_262 {dimension_numbers = #tpu.dot_dimension_numbers<[1], [0], [0], [1], [0, 0, 1, 1], [], []>} : vector<2x32xf32>, vector<32x96xf32>, vector<2x96xf32> -> vector<2x96xf32>
    %786 = vector.broadcast %249 : vector<1x96xf32> to vector<2x96xf32>
    %787 = arith.addf %785, %786 : vector<2x96xf32>
    %788 = vector.extract_strided_slice %198 {offsets = [0, 0], sizes = [2, 32], strides = [1, 1]} : vector<2x96xf32> to vector<2x32xf32>
    %789 = vector.extract_strided_slice %787 {offsets = [0, 0], sizes = [2, 32], strides = [1, 1]} : vector<2x96xf32> to vector<2x32xf32>
    %790 = arith.addf %788, %789 : vector<2x32xf32>
    %791 = arith.negf %790 : vector<2x32xf32>
    %792 = math.exp %791 : vector<2x32xf32>
    %cst_263 = arith.constant 1.000000e+00 : f32
    %793 = vector.broadcast %cst_263 : f32 to vector<2x32xf32>
    %794 = arith.addf %793, %792 : vector<2x32xf32>
    %795 = arith.divf %793, %794 : vector<2x32xf32>
    %796 = vector.extract_strided_slice %198 {offsets = [0, 32], sizes = [2, 32], strides = [1, 1]} : vector<2x96xf32> to vector<2x32xf32>
    %797 = vector.extract_strided_slice %787 {offsets = [0, 32], sizes = [2, 32], strides = [1, 1]} : vector<2x96xf32> to vector<2x32xf32>
    %798 = arith.addf %796, %797 : vector<2x32xf32>
    %799 = arith.negf %798 : vector<2x32xf32>
    %800 = math.exp %799 : vector<2x32xf32>
    %cst_264 = arith.constant 1.000000e+00 : f32
    %801 = vector.broadcast %cst_264 : f32 to vector<2x32xf32>
    %802 = arith.addf %801, %800 : vector<2x32xf32>
    %803 = arith.divf %801, %802 : vector<2x32xf32>
    %804 = vector.extract_strided_slice %198 {offsets = [0, 64], sizes = [2, 32], strides = [1, 1]} : vector<2x96xf32> to vector<2x32xf32>
    %805 = vector.extract_strided_slice %787 {offsets = [0, 64], sizes = [2, 32], strides = [1, 1]} : vector<2x96xf32> to vector<2x32xf32>
    %806 = arith.mulf %795, %805 : vector<2x32xf32>
    %807 = arith.addf %804, %806 : vector<2x32xf32>
    %808 = math.tanh %807 : vector<2x32xf32>
    %cst_265 = arith.constant 1.000000e+00 : f32
    %809 = vector.broadcast %cst_265 : f32 to vector<2x32xf32>
    %810 = arith.subf %809, %803 : vector<2x32xf32>
    %811 = arith.mulf %810, %808 : vector<2x32xf32>
    %812 = arith.mulf %803, %736 : vector<2x32xf32>
    %813 = arith.addf %811, %812 : vector<2x32xf32>
    %c1_i32_266 = arith.constant 1 : i32
    %814 = vector.broadcast %c1_i32_266 : i32 to vector<2x1xi32>
    %815 = arith.cmpi sgt, %241, %814 : vector<2x1xi32>
    %816 = vector.shape_cast %815 : vector<2x1xi1> to vector<2x1xi1>
    %817 = vector.broadcast %816 : vector<2x1xi1> to vector<2x32xi1>
    %818 = arith.select %817, %813, %736 : vector<2x32xi1>, vector<2x32xf32>
    %cst_267 = arith.constant 0.000000e+00 : f32
    %819 = vector.shape_cast %815 : vector<2x1xi1> to vector<2x1xi1>
    %820 = vector.broadcast %819 : vector<2x1xi1> to vector<2x32xi1>
    %821 = vector.broadcast %cst_267 : f32 to vector<2x32xf32>
    %822 = arith.select %820, %818, %821 : vector<2x32xi1>, vector<2x32xf32>
    %c1_268 = arith.constant 1 : index
    %c0_269 = arith.constant 0 : index
    %c32_270 = arith.constant 32 : index
    %823 = vector.load %arg12[%c1_268, %c0_269, %c32_270] : memref<8x2x64xf32, #tpu.memory_space<vmem>>, vector<1x2x32xf32>
    %824 = vector.shape_cast %823 : vector<1x2x32xf32> to vector<2x32xf32>
    %825 = vector.shape_cast %822 : vector<2x32xf32> to vector<1x2x32xf32>
    tpu.vector_store %arg12[%c1_268, %c0_269, %c32_270], %825 {strides = array<i32>} : memref<8x2x64xf32, #tpu.memory_space<vmem>>, vector<1x2x32xf32>,
    %cst_271 = arith.constant dense<0.000000e+00> : vector<2x96xf32>
    %826 = tpu.matmul %777, %243, %cst_271 {dimension_numbers = #tpu.dot_dimension_numbers<[1], [0], [0], [1], [0, 0, 1, 1], [], []>} : vector<2x32xf32>, vector<32x96xf32>, vector<2x96xf32> -> vector<2x96xf32>
    %827 = vector.broadcast %247 : vector<1x96xf32> to vector<2x96xf32>
    %828 = arith.addf %826, %827 : vector<2x96xf32>
    %829 = vector.extract_strided_slice %237 {offsets = [0, 0], sizes = [2, 32], strides = [1, 1]} : vector<2x96xf32> to vector<2x32xf32>
    %830 = vector.extract_strided_slice %828 {offsets = [0, 0], sizes = [2, 32], strides = [1, 1]} : vector<2x96xf32> to vector<2x32xf32>
    %831 = arith.addf %829, %830 : vector<2x32xf32>
    %832 = arith.negf %831 : vector<2x32xf32>
    %833 = math.exp %832 : vector<2x32xf32>
    %cst_272 = arith.constant 1.000000e+00 : f32
    %834 = vector.broadcast %cst_272 : f32 to vector<2x32xf32>
    %835 = arith.addf %834, %833 : vector<2x32xf32>
    %836 = arith.divf %834, %835 : vector<2x32xf32>
    %837 = vector.extract_strided_slice %237 {offsets = [0, 32], sizes = [2, 32], strides = [1, 1]} : vector<2x96xf32> to vector<2x32xf32>
    %838 = vector.extract_strided_slice %828 {offsets = [0, 32], sizes = [2, 32], strides = [1, 1]} : vector<2x96xf32> to vector<2x32xf32>
    %839 = arith.addf %837, %838 : vector<2x32xf32>
    %840 = arith.negf %839 : vector<2x32xf32>
    %841 = math.exp %840 : vector<2x32xf32>
    %cst_273 = arith.constant 1.000000e+00 : f32
    %842 = vector.broadcast %cst_273 : f32 to vector<2x32xf32>
    %843 = arith.addf %842, %841 : vector<2x32xf32>
    %844 = arith.divf %842, %843 : vector<2x32xf32>
    %845 = vector.extract_strided_slice %237 {offsets = [0, 64], sizes = [2, 32], strides = [1, 1]} : vector<2x96xf32> to vector<2x32xf32>
    %846 = vector.extract_strided_slice %828 {offsets = [0, 64], sizes = [2, 32], strides = [1, 1]} : vector<2x96xf32> to vector<2x32xf32>
    %847 = arith.mulf %836, %846 : vector<2x32xf32>
    %848 = arith.addf %845, %847 : vector<2x32xf32>
    %849 = math.tanh %848 : vector<2x32xf32>
    %cst_274 = arith.constant 1.000000e+00 : f32
    %850 = vector.broadcast %cst_274 : f32 to vector<2x32xf32>
    %851 = arith.subf %850, %844 : vector<2x32xf32>
    %852 = arith.mulf %851, %849 : vector<2x32xf32>
    %853 = arith.mulf %844, %777 : vector<2x32xf32>
    %854 = arith.addf %852, %853 : vector<2x32xf32>
    %c7_i32_275 = arith.constant 7 : i32
    %855 = vector.broadcast %c7_i32_275 : i32 to vector<2x1xi32>
    %856 = arith.cmpi sgt, %241, %855 : vector<2x1xi32>
    %857 = vector.shape_cast %856 : vector<2x1xi1> to vector<2x1xi1>
    %858 = vector.broadcast %857 : vector<2x1xi1> to vector<2x32xi1>
    %859 = arith.select %858, %854, %777 : vector<2x32xi1>, vector<2x32xf32>
    %cst_276 = arith.constant 0.000000e+00 : f32
    %860 = vector.shape_cast %856 : vector<2x1xi1> to vector<2x1xi1>
    %861 = vector.broadcast %860 : vector<2x1xi1> to vector<2x32xi1>
    %862 = vector.broadcast %cst_276 : f32 to vector<2x32xf32>
    %863 = arith.select %861, %859, %862 : vector<2x32xi1>, vector<2x32xf32>
    %c7_277 = arith.constant 7 : index
    %c0_278 = arith.constant 0 : index
    %c0_279 = arith.constant 0 : index
    %864 = vector.load %arg12[%c7_277, %c0_278, %c0_279] : memref<8x2x64xf32, #tpu.memory_space<vmem>>, vector<1x2x32xf32>
    %865 = vector.shape_cast %864 : vector<1x2x32xf32> to vector<2x32xf32>
    %866 = vector.shape_cast %863 : vector<2x32xf32> to vector<1x2x32xf32>
    tpu.vector_store %arg12[%c7_277, %c0_278, %c0_279], %866 {strides = array<i32>} : memref<8x2x64xf32, #tpu.memory_space<vmem>>, vector<1x2x32xf32>,
    %cst_280 = arith.constant dense<0.000000e+00> : vector<2x96xf32>
    %867 = tpu.matmul %818, %245, %cst_280 {dimension_numbers = #tpu.dot_dimension_numbers<[1], [0], [0], [1], [0, 0, 1, 1], [], []>} : vector<2x32xf32>, vector<32x96xf32>, vector<2x96xf32> -> vector<2x96xf32>
    %868 = vector.broadcast %249 : vector<1x96xf32> to vector<2x96xf32>
    %869 = arith.addf %867, %868 : vector<2x96xf32>
    %870 = vector.extract_strided_slice %191 {offsets = [0, 0], sizes = [2, 32], strides = [1, 1]} : vector<2x96xf32> to vector<2x32xf32>
    %871 = vector.extract_strided_slice %869 {offsets = [0, 0], sizes = [2, 32], strides = [1, 1]} : vector<2x96xf32> to vector<2x32xf32>
    %872 = arith.addf %870, %871 : vector<2x32xf32>
    %873 = arith.negf %872 : vector<2x32xf32>
    %874 = math.exp %873 : vector<2x32xf32>
    %cst_281 = arith.constant 1.000000e+00 : f32
    %875 = vector.broadcast %cst_281 : f32 to vector<2x32xf32>
    %876 = arith.addf %875, %874 : vector<2x32xf32>
    %877 = arith.divf %875, %876 : vector<2x32xf32>
    %878 = vector.extract_strided_slice %191 {offsets = [0, 32], sizes = [2, 32], strides = [1, 1]} : vector<2x96xf32> to vector<2x32xf32>
    %879 = vector.extract_strided_slice %869 {offsets = [0, 32], sizes = [2, 32], strides = [1, 1]} : vector<2x96xf32> to vector<2x32xf32>
    %880 = arith.addf %878, %879 : vector<2x32xf32>
    %881 = arith.negf %880 : vector<2x32xf32>
    %882 = math.exp %881 : vector<2x32xf32>
    %cst_282 = arith.constant 1.000000e+00 : f32
    %883 = vector.broadcast %cst_282 : f32 to vector<2x32xf32>
    %884 = arith.addf %883, %882 : vector<2x32xf32>
    %885 = arith.divf %883, %884 : vector<2x32xf32>
    %886 = vector.extract_strided_slice %191 {offsets = [0, 64], sizes = [2, 32], strides = [1, 1]} : vector<2x96xf32> to vector<2x32xf32>
    %887 = vector.extract_strided_slice %869 {offsets = [0, 64], sizes = [2, 32], strides = [1, 1]} : vector<2x96xf32> to vector<2x32xf32>
    %888 = arith.mulf %877, %887 : vector<2x32xf32>
    %889 = arith.addf %886, %888 : vector<2x32xf32>
    %890 = math.tanh %889 : vector<2x32xf32>
    %cst_283 = arith.constant 1.000000e+00 : f32
    %891 = vector.broadcast %cst_283 : f32 to vector<2x32xf32>
    %892 = arith.subf %891, %885 : vector<2x32xf32>
    %893 = arith.mulf %892, %890 : vector<2x32xf32>
    %894 = arith.mulf %885, %818 : vector<2x32xf32>
    %895 = arith.addf %893, %894 : vector<2x32xf32>
    %c0_i32_284 = arith.constant 0 : i32
    %896 = vector.broadcast %c0_i32_284 : i32 to vector<2x1xi32>
    %897 = arith.cmpi sgt, %241, %896 : vector<2x1xi32>
    %898 = vector.shape_cast %897 : vector<2x1xi1> to vector<2x1xi1>
    %899 = vector.broadcast %898 : vector<2x1xi1> to vector<2x32xi1>
    %900 = arith.select %899, %895, %818 : vector<2x32xi1>, vector<2x32xf32>
    %cst_285 = arith.constant 0.000000e+00 : f32
    %901 = vector.shape_cast %897 : vector<2x1xi1> to vector<2x1xi1>
    %902 = vector.broadcast %901 : vector<2x1xi1> to vector<2x32xi1>
    %903 = vector.broadcast %cst_285 : f32 to vector<2x32xf32>
    %904 = arith.select %902, %900, %903 : vector<2x32xi1>, vector<2x32xf32>
    %c0_286 = arith.constant 0 : index
    %c0_287 = arith.constant 0 : index
    %c32_288 = arith.constant 32 : index
    %905 = vector.load %arg12[%c0_286, %c0_287, %c32_288] : memref<8x2x64xf32, #tpu.memory_space<vmem>>, vector<1x2x32xf32>
    %906 = vector.shape_cast %905 : vector<1x2x32xf32> to vector<2x32xf32>
    %907 = vector.shape_cast %904 : vector<2x32xf32> to vector<1x2x32xf32>
    tpu.vector_store %arg12[%c0_286, %c0_287, %c32_288], %907 {strides = array<i32>} : memref<8x2x64xf32, #tpu.memory_space<vmem>>, vector<1x2x32xf32>,
    %c0_289 = arith.constant 0 : index
    %c0_290 = arith.constant 0 : index
    %908 = vector.load %arg13[%c0_289, %c0_290] : memref<2x64xf32, #tpu.memory_space<vmem>>, vector<2x32xf32>
    tpu.vector_store %arg13[%c0_289, %c0_290], %859 {strides = array<i32>} : memref<2x64xf32, #tpu.memory_space<vmem>>, vector<2x32xf32>,
    %c0_291 = arith.constant 0 : index
    %c32_292 = arith.constant 32 : index
    %909 = vector.load %arg13[%c0_291, %c32_292] : memref<2x64xf32, #tpu.memory_space<vmem>>, vector<2x32xf32>
    tpu.vector_store %arg13[%c0_291, %c32_292], %900 {strides = array<i32>} : memref<2x64xf32, #tpu.memory_space<vmem>>, vector<2x32xf32>,
    return
  }
}

</mosaic_0001>

<bundles_post_ra>
// kernel: _forward.1
= control target key start
LH: loop header
LB: loop body
LE: loop exit
PB: predicated region body
PF: predicated region fallthrough
CT: control target
= control target key end

     0   :  { %19 = vsyncpa [#allocation3], 0  ;;  %s11455_s0 = inlined_call_operand.vmem [shape: f32[64,40], index: 0, kind: input, shape index: {}]   ;;  %s11456_s1 = inlined_call_operand.vmem [shape: s32[2,1], index: 1, kind: input, shape index: {}]   ;;  %s11457_s2 = inlined_call_operand.vmem [shape: f32[40,32], index: 2, kind: input, shape index: {}]   ;;  %s11458_s3 = inlined_call_operand.vmem [shape: f32[1,32], index: 3, kind: input, shape index: {}]   ;;  %s11459_s4 = inlined_call_operand.vmem [shape: f32[32,16], index: 4, kind: input, shape index: {}]   ;;  %s11460_s5 = inlined_call_operand.vmem [shape: f32[1,16], index: 5, kind: input, shape index: {}]   ;;  %s11461_s6 = inlined_call_operand.hbm [shape: f32[32,16,512], index: 6, kind: input, shape index: {}]   ;;  %s11462_s7 = inlined_call_operand.vmem [shape: f32[1,512], index: 7, kind: input, shape index: {}]   ;;  %s11463_s8 = inlined_call_operand.vmem [shape: f32[2,64,96], index: 8, kind: input, shape index: {}]   ;;  %s11464_s9 = inlined_call_operand.vmem [shape: f32[2,1,96], index: 9, kind: input, shape index: {}]   ;;  %s11465_s10 = inlined_call_operand.vmem [shape: f32[2,32,96], index: 10, kind: input, shape index: {}]   ;;  %s11466_s11 = inlined_call_operand.vmem [shape: f32[2,1,96], index: 11, kind: input, shape index: {}]   ;;  %s11467_s12 = inlined_call_operand.vmem [shape: f32[8,2,64], index: 12, kind: output, shape index: {0}]   ;;  %s11468_s13 = inlined_call_operand.hbm [shape: f32[2,64], index: 13, kind: output, shape index: {1}]  }
   0x1   :  { %20 = vsyncpa [#allocation4], 0  ;;  %s10218_s25 = smov [#allocation2]   ;;  %s10170_s29 = scalar_lea.hbm %s11461_s6, 32768 }
   0x2   :  { %s38_s26 = sshll.u32 %s10218_s25, 4  ;;  %p10171_p0 = scmp.ne.s32.totalorder %s11461_s6, %s10170_s29  ;;  %s39_s26 = int_to_ptr.vmem [resolvable:$true] %s38_s26 }
   0x3   :  { %p10174_p1 = scmp.lt.u32.totalorder %s10170_s29, %s11461_s6 }
   0x5   :  { %p10176_p2 = pnand %p10174_p1, %p10171_p0 }
   0x7   :  { %10179 = shalt.err (!%p10176_p2)
}
   0x8   :  { %s10180_s17 = scalar_lea.vmem %s39_s26, 32768  ;;  %p10185_p4 = scmp.lt.s32.totalorder %s39_s26, %s39_s26 }
   0x9   :  { %p10181_p3 = scmp.ne.s32.totalorder %s39_s26, %s10180_s17  ;;  %p10186_p5 = scmp.lt.s32.totalorder %s10180_s17, %s10180_s17 }
   0xb   :  { %p10187_p6 = por %p10186_p5, %p10185_p4 }
   0xd   :  { %p10188_p7 = pnand %p10187_p6, %p10181_p3 }
   0xf   :  { %10191 = shalt.err (!%p10188_p7)
}
  0x10   :  { %s10219_s18 = smov 512   ;;  %s10220_s19 = smov 32  }
  0x11   :  { %44 = dma.hbm_to_vmem [thread:$0]  %s11461_s6, 32768, %s39_s26, [#allocation3], %s10219_s18, %s10219_s18, %s10220_s19  }
  0x12   :  { %10214 = dma.done.wait [#allocation3], 32768  }
  0x13   :  { %10215 = vsyncadd [#allocation3], 4294934528  ;;  %vm78_vm0 = vcmask 326656   ;;  %v66_v0 = vld [vmem:[%s11457_s2] sm:$0xff]  ;;  %v67_v1 = vld [vmem:[%s11457_s2 + $0x8] sm:$0xff]  ;;  %vm227_vm1 = vcmask 261120  }
  0x14   :  { %v68_v2 = vld [vmem:[%s11457_s2 + $0x10] sm:$0xff]  ;;  %v9342_v3 = vpack.c.bf16 %v67_v1, %v66_v0  ;;  %v69_v4 = vld [vmem:[%s11457_s2 + $0x18] sm:$0xff]  ;;  %v58_v5 = vld [vmem:[%s11455_s0] sm:$0xff]  ;;  %v10221_v56 = vmov 0.0   ;;  %vm384_vm2 = vcmask 130048   ;;  %vm10223_vm3 = vmmov 0  }
  0x15   :  { %v9346_v6 = vpack.c.bf16 %v69_v4, %v68_v2  ;;  %8830 = vmatprep.mubr.msk.f32.mxu0 %vm78_vm0, %v58_v5  ;;  %v70_v7 = vld [vmem:[%s11457_s2 + $0x20] sm:$0xff]  ;;  %v59_v8 = vld [vmem:[%s11455_s0 + $0x8] sm:$0xff]  ;;  %v60_v9 = vld [vmem:[%s11455_s0 + $0x10] sm:$0xff]  ;;  %vm5465_vm4 = vcmask 523264   ;;  %s10224_s29 = smov 64   ;;  %vm6861_vm8 = vcmask 517376  }
  0x16   :  { %9343 = vmatprep.subr.bf16.mxu0 %v9342_v3  ;;  %v61_v10 = vld [vmem:[%s11455_s0 + $0x18] sm:$0xff]  ;;  %v62_v11 = vld [vmem:[%s11455_s0 + $0x20] sm:$0xff]  ;;  %v63_v12 = vld [vmem:[%s11455_s0 + $0x28] sm:$0xff]  ;;  %vm6749_vm10 = vcmask 254976  }
  0x17   :  { %9345 = vmatpush3.bf16.msra.mxu0 %v9342_v3  ;;  %v64_v13 = vld [vmem:[%s11455_s0 + $0x30] sm:$0xff]  ;;  %v65_v14 = vld [vmem:[%s11455_s0 + $0x38] sm:$0xff]  ;;  %v216_v15 = vld [vmem:[%s11459_s4] sm:$0xff] }
  0x18   :  { %9347 = vmatprep.subr.bf16.mxu0 %v9346_v6  ;;  %v217_v16 = vld [vmem:[%s11459_s4 + $0x8] sm:$0xff]  ;;  %v218_v17 = vld [vmem:[%s11459_s4 + $0x10] sm:$0xff]  ;;  %v219_v19 = vld [vmem:[%s11459_s4 + $0x18] sm:$0xff] }
  0x19   :  { %v9350_v18 = vpack.c.bf16 %v217_v16, %v216_v15  ;;  %v9354_v20 = vpack.c.bf16 %v219_v19, %v218_v17  ;;  %v8411_v21 = vld [vmem:[%s11458_s3] ss:$0 sm:$0xff]  ;;  %v375_v46 = vld [vmem:[#allocation2 + $0x48] sm:$0xff]  ;;  %v377_v51 = vld [vmem:[#allocation2 + $0x58] sm:$0xff] }
  0x1a   :  { %v379_v47 = vld [vmem:[#allocation2 + $0x68] sm:$0xff]  ;;  %v374_v49 = vld [vmem:[#allocation2 + $0x40] sm:$0xff]  ;;  %v381_v53 = vld [vmem:[#allocation2 + $0x78] sm:$0xff] }
  0x1b   :  { %9349 = vmatpush3.bf16.msra.mxu0 %v9346_v6  ;;  %9351 = vmatprep.subr.bf16.mxu1 %v9350_v18  ;;  %v9358_v48 = vpack.c.bf16 %v379_v47, %v375_v46  ;;  %v378_v50 = vld [vmem:[#allocation2 + $0x60] sm:$0xff]  ;;  %v376_v54 = vld [vmem:[#allocation2 + $0x50] sm:$0xff]  ;;  %v9362_v57 = vpack.c.bf16 %v381_v53, %v377_v51  ;;  %v366_v59 = vld [vmem:[#allocation2 + $0x8] sm:$0xff] }
  0x1c   :  { %8828 = vmatprep.subr.mxu0 %v70_v7  ;;  %9353 = vmatpush3.bf16.msra.mxu1 %v9350_v18  ;;  %v9360_v52 = vpack.c.bf16 %v378_v50, %v374_v49  ;;  %v380_v55 = vld [vmem:[#allocation2 + $0x70] sm:$0xff]  ;;  %v370_v60 = vld [vmem:[#allocation2 + $0x28] sm:$0xff]  ;;  %v368_v62 = vld [vmem:[#allocation2 + $0x18] sm:$0xff] }
  0x1d   :  { %9355 = vmatprep.subr.bf16.mxu1 %v9354_v20  ;;  %v9364_v58 = vpack.c.bf16 %v380_v55, %v376_v54  ;;  %v9366_v61 = vpack.c.bf16 %v370_v60, %v366_v59  ;;  %v372_v63 = vld [vmem:[#allocation2 + $0x38] sm:$0xff]  ;;  %v10385_v1 = vld [vmem:[%s11460_s5] ss:$0 sm:$0xff]  ;;  %v367_v15 = vld [vmem:[#allocation2 + $0x10] sm:$0xff] }
  0x1e   :  { %v9370_v0 = vpack.c.bf16 %v372_v63, %v368_v62  ;;  %v371_v16 = vld [vmem:[#allocation2 + $0x30] sm:$0xff]  ;;  %v675_v17 = vld [vmem:[#allocation2 + $0x88] sm:$0xff]  ;;  %v677_v19 = vld [vmem:[#allocation2 + $0x98] sm:$0xff] }
  0x1f   :  { %8829 = vmatpush3.msra.mxu0 %v70_v7  ;;  %v679_v18 = vld [vmem:[#allocation2 + $0xa8] sm:$0xff]  ;;  %v997_v46 = vld [vmem:[#allocation2 + $0x138] sm:$0xff]  ;;  %v990_v53 = vld [vmem:[#allocation2 + $0x100] sm:$0xff] }
  0x20   :  { %8831 = vmatmul.mubr.msk.f32.vlgmr.msra.gmra.mrb[0].mxu0 %vm78_vm0, %v59_v8  ;;  %9357 = vmatpush3.bf16.msra.mxu1 %v9354_v20  ;;  %v681_v20 = vld [vmem:[#allocation2 + $0xb8] sm:$0xff]  ;;  %v994_v54 = vld [vmem:[#allocation2 + $0x120] sm:$0xff]  ;;  %v992_v55 = vld [vmem:[#allocation2 + $0x110] sm:$0xff] }
  0x21   :  { %8833 = vmatprep.mubr.msk.f32.mxu0 %vm78_vm0, %v60_v9  ;;  %9359 = vmatprep.subr.bf16.mxu1 %v9358_v48  ;;  %v1153_v59 = vld [vmem:[#allocation2 + $0x168] sm:$0xff]  ;;  %v1151_v60 = vld [vmem:[#allocation2 + $0x158] sm:$0xff]  ;;  %v9392_v62 = vpack.c.bf16 %v994_v54, %v990_v53  ;;  %v1628_v53 = vld [vmem:[#allocation2 + $0x230] sm:$0xff] }
  0x22   :  { %9363 = vmatprep.subr.bf16.mxu0 %v9362_v57  ;;  %v996_v57 = vld [vmem:[#allocation2 + $0x130] sm:$0xff]  ;;  %v1781_v54 = vld [vmem:[#allocation2 + $0x248] sm:$0xff] }
  0x23   :  { %9365 = vmatpush1.bf16.msra.mxu0 %v9364_v58  ;;  %v1149_v58 = vld [vmem:[#allocation2 + $0x148] sm:$0xff]  ;;  %v9396_v63 = vpack.c.bf16 %v996_v57, %v992_v55  ;;  %v1783_v57 = vld [vmem:[#allocation2 + $0x258] sm:$0xff] }
  0x24   :  { %8834 = vmatmul.mubr.msk.f32.gmra.mrb[2].mxu0 %vm78_vm0, %v61_v10  ;;  %9371 = vmatprep.subr.bf16.mxu0 %v9370_v0  ;;  %v1785_v55 = vld [vmem:[#allocation2 + $0x268] sm:$0xff] }
  0x25   :  { %8836 = vmatprep.mubr.msk.f32.mxu0 %vm78_vm0, %v62_v11 }
  0x28   :  { %8837 = vmatmul.mubr.msk.f32.gmra.mrb[4].mxu0 %vm78_vm0, %v63_v12  ;;  %v365_v12 = vld [vmem:[#allocation2] sm:$0xff] }
  0x29   :  { %8839 = vmatprep.mubr.msk.f32.mxu0 %vm78_vm0, %v64_v13 }
  0x2c   :  { %8840 = vmatmul.mubr.msk.f32.gmra.mrb[6].mxu0 %vm78_vm0, %v65_v14  ;;  %v369_v14 = vld [vmem:[#allocation2 + $0x20] sm:$0xff] }
  0x2d   :  { %522 = vmatprep.mubr.f32.mxu0 %v10221_v56 }
  0xf3   :  { %v8832_v22 = vpop.f32.mrb[0].mxu0 }
  0xf4   :  { %v175_v23 = vadd.f32 %v8832_v22, %v8411_v21  ;;  %v169_v24 = vpop.f32.mrb[1].mxu0  ;;  %v9368_v22 = vpack.c.bf16 %v369_v14, %v365_v12  ;;  %v1311_v12 = vld [vmem:[#allocation2 + $0x1a8] sm:$0xff]  ;;  %v1309_v14 = vld [vmem:[#allocation2 + $0x198] sm:$0xff] }
  0xf5   :  { %v170_v25 = vadd.f32 %v8411_v21, %v169_v24 }
  0xf7   :  { %10038 = vtanh.f32 %v170_v25  ;;  %v8835_v26 = vpop.f32.mrb[2].mxu0  ;;  %v9374_v25 = vpack.c.bf16 %v679_v18, %v675_v17 }
  0xf8   :  { %10040 = vtanh.f32 %v175_v23  ;;  %v185_v27 = vadd.f32 %v8835_v26, %v8411_v21  ;;  %v179_v28 = vpop.f32.mrb[3].mxu0  ;;  %v9372_v23 = vpack.c.bf16 %v371_v16, %v367_v15  ;;  %v9378_v26 = vpack.c.bf16 %v681_v20, %v677_v19  ;;  %v1313_v15 = vld [vmem:[#allocation2 + $0x1b8] sm:$0xff] }
  0xf9   :  { %v180_v29 = vadd.f32 %v8411_v21, %v179_v28  ;;  %v678_v28 = vld [vmem:[#allocation2 + $0xa0] sm:$0xff]  ;;  %v9410_v20 = vpack.c.bf16 %v1313_v15, %v1309_v14 }
  0xfa   :  { %10042 = vtanh.f32 %v185_v27  ;;  %v674_v27 = vld [vmem:[#allocation2 + $0x80] sm:$0xff] }
  0xfb   :  { %10044 = vtanh.f32 %v180_v29  ;;  %v8838_v30 = vpop.f32.mrb[4].mxu0  ;;  %v676_v29 = vld [vmem:[#allocation2 + $0x90] sm:$0xff] }
  0xfc   :  { %v195_v31 = vadd.f32 %v8838_v30, %v8411_v21  ;;  %v189_v32 = vpop.f32.mrb[5].mxu0  ;;  %v680_v30 = vld [vmem:[#allocation2 + $0xb0] sm:$0xff] }
  0xfd   :  { %v190_v33 = vadd.f32 %v8411_v21, %v189_v32  ;;  %v837_v32 = vld [vmem:[#allocation2 + $0xe8] sm:$0xff] }
  0xfe   :  { %10046 = vtanh.f32 %v195_v31  ;;  %v833_v31 = vld [vmem:[#allocation2 + $0xc8] sm:$0xff] }
  0xff   :  { %10048 = vtanh.f32 %v190_v33  ;;  %v8841_v34 = vpop.f32.mrb[6].mxu0  ;;  %v835_v33 = vld [vmem:[#allocation2 + $0xd8] sm:$0xff] }
 0x100   :  { %v205_v35 = vadd.f32 %v8841_v34, %v8411_v21  ;;  %v199_v36 = vpop.f32.mrb[7].mxu0  ;;  %v839_v34 = vld [vmem:[#allocation2 + $0xf8] sm:$0xff] }
 0x101   :  { %v10039_v37 = vpop.eup %10038  ;;  %v200_v38 = vadd.f32 %v8411_v21, %v199_v36  ;;  %v9380_v36 = vpack.c.bf16 %v680_v30, %v676_v29 }
 0x102   :  { %v10041_v39 = vpop.eup %10040  ;;  %8850 = vmatprep.mubr.msk.f32.mxu1 %vm227_vm1, %v10039_v37  ;;  %10050 = vtanh.f32 %v205_v35  ;;  %v9376_v35 = vpack.c.bf16 %v678_v28, %v674_v27  ;;  %v9382_v37 = vpack.c.bf16 %v837_v32, %v833_v31  ;;  %v1467_v27 = vld [vmem:[#allocation2 + $0x1d8] sm:$0xff] }
 0x103   :  { %8851 = vmatmul.mubr.msk.f32.vlgmr.msra.gmra.mrb[0].mxu1 %vm227_vm1, %v10041_v39  ;;  %10052 = vtanh.f32 %v200_v38  ;;  %v9386_v38 = vpack.c.bf16 %v839_v34, %v835_v33  ;;  %v832_v39 = vld [vmem:[#allocation2 + $0xc0] sm:$0xff]  ;;  %v1471_v28 = vld [vmem:[#allocation2 + $0x1f8] sm:$0xff] }
 0x104   :  { %v10043_v40 = vpop.eup %10042  ;;  %9361 = vmatpush1.bf16.msra.mxu1 %v9360_v52  ;;  %v9418_v33 = vpack.c.bf16 %v1471_v28, %v1467_v27  ;;  %v1464_v34 = vld [vmem:[#allocation2 + $0x1c0] sm:$0xff] }
 0x105   :  { %v10045_v41 = vpop.eup %10044  ;;  %9367 = vmatprep.subr.bf16.mxu1 %v9366_v61  ;;  %v1155_v61 = vld [vmem:[#allocation2 + $0x178] sm:$0xff] }
 0x106   :  { %8853 = vmatprep.mubr.msk.f32.mxu1 %vm227_vm1, %v10045_v41  ;;  %v834_v41 = vld [vmem:[#allocation2 + $0xd0] sm:$0xff] }
 0x107   :  { %8854 = vmatmul.mubr.msk.f32.gmra.mrb[2].mxu1 %vm227_vm1, %v10043_v40  ;;  %v836_v40 = vld [vmem:[#allocation2 + $0xe0] sm:$0xff] }
 0x108   :  { %v10047_v42 = vpop.eup %10046  ;;  %v9384_v47 = vpack.c.bf16 %v836_v40, %v832_v39 }
 0x109   :  { %v10049_v43 = vpop.eup %10048 }
 0x10a   :  { %8856 = vmatprep.mubr.msk.f32.mxu1 %vm227_vm1, %v10049_v43  ;;  %v991_v43 = vld [vmem:[#allocation2 + $0x108] sm:$0xff] }
 0x10b   :  { %8857 = vmatmul.mubr.msk.f32.gmra.mrb[4].mxu1 %vm227_vm1, %v10047_v42  ;;  %v838_v42 = vld [vmem:[#allocation2 + $0xf0] sm:$0xff] }
 0x10c   :  { %v10051_v44 = vpop.eup %10050  ;;  %v9388_v48 = vpack.c.bf16 %v838_v42, %v834_v41  ;;  %v1623_v41 = vld [vmem:[#allocation2 + $0x208] sm:$0xff] }
 0x10d   :  { %v10053_v45 = vpop.eup %10052 }
 0x10e   :  { %8859 = vmatprep.mubr.msk.f32.mxu1 %vm227_vm1, %v10053_v45  ;;  %v993_v45 = vld [vmem:[#allocation2 + $0x118] sm:$0xff] }
 0x10f   :  { %8860 = vmatmul.mubr.msk.f32.gmra.mrb[6].mxu1 %vm227_vm1, %v10051_v44  ;;  %v995_v44 = vld [vmem:[#allocation2 + $0x128] sm:$0xff]  ;;  %v9394_v51 = vpack.c.bf16 %v997_v46, %v993_v45  ;;  %v1629_v45 = vld [vmem:[#allocation2 + $0x238] sm:$0xff] }
 0x110   :  { %451 = vmatprep.mubr.f32.mxu1 %v10221_v56  ;;  %v9390_v50 = vpack.c.bf16 %v995_v44, %v991_v43  ;;  %v1627_v43 = vld [vmem:[#allocation2 + $0x228] sm:$0xff]  ;;  %v1625_v44 = vld [vmem:[#allocation2 + $0x218] sm:$0xff] }
 0x1d6   :  { %v10387_v2 = vpop.f32.mrb[0].mxu1 }
 0x1d7   :  { %v318_v3 = vpop.f32.mrb[1].mxu1  ;;  %v324_v52 = vadd.f32 %v10387_v2, %v10385_v1  ;;  %v9398_v2 = vpack.c.bf16 %v1153_v59, %v1149_v58  ;;  %v1787_v58 = vld [vmem:[#allocation2 + $0x278] sm:$0xff] }
 0x1d8   :  { %v319_v4 = vadd.f32 %v10385_v1, %v318_v3  ;;  %v9402_v3 = vpack.c.bf16 %v1155_v61, %v1151_v60 }
 0x1da   :  { %10054 = vtanh.f32 %v319_v4  ;;  %v8855_v5 = vpop.f32.mrb[2].mxu1  ;;  %v1148_v4 = vld [vmem:[#allocation2 + $0x140] sm:$0xff] }
 0x1db   :  { %v10391_v6 = vadd.f32 %v8855_v5, %v10385_v1  ;;  %v328_v7 = vpop.f32.mrb[3].mxu1  ;;  %10056 = vtanh.f32 %v324_v52  ;;  %v1152_v5 = vld [vmem:[#allocation2 + $0x160] sm:$0xff]  ;;  %v1624_v52 = vld [vmem:[#allocation2 + $0x210] sm:$0xff] }
 0x1dc   :  { %v10394_v8 = vadd.f32 %v10385_v1, %v328_v7  ;;  %v1150_v7 = vld [vmem:[#allocation2 + $0x150] sm:$0xff]  ;;  %v9400_v16 = vpack.c.bf16 %v1152_v5, %v1148_v4  ;;  %v9428_v60 = vpack.c.bf16 %v1628_v53, %v1624_v52  ;;  %v1939_v4 = vld [vmem:[#allocation2 + $0x288] sm:$0xff] }
 0x1dd   :  { %v1943_v5 = vld [vmem:[#allocation2 + $0x2a8] sm:$0xff] }
 0x1de   :  { %v8858_v9 = vpop.f32.mrb[4].mxu1  ;;  %10058 = vtanh.f32 %v10394_v8  ;;  %v1786_v8 = vld [vmem:[#allocation2 + $0x270] sm:$0xff]  ;;  %v9438_v15 = vpack.c.bf16 %v1943_v5, %v1939_v4 }
 0x1df   :  { %v10397_v10 = vadd.f32 %v8858_v9, %v10385_v1  ;;  %v338_v11 = vpop.f32.mrb[5].mxu1  ;;  %v1154_v9 = vld [vmem:[#allocation2 + $0x170] sm:$0xff]  ;;  %10060 = vtanh.f32 %v10391_v6 }
 0x1e0   :  { %v10400_v13 = vadd.f32 %v10385_v1, %v338_v11  ;;  %v1307_v11 = vld [vmem:[#allocation2 + $0x188] sm:$0xff]  ;;  %v9404_v17 = vpack.c.bf16 %v1154_v9, %v1150_v7  ;;  %v1941_v7 = vld [vmem:[#allocation2 + $0x298] sm:$0xff]  ;;  %v2418_v6 = vld [vmem:[#allocation2 + $0x370] sm:$0xff] }
 0x1e1   :  { %v9406_v19 = vpack.c.bf16 %v1311_v12, %v1307_v11  ;;  %v1945_v9 = vld [vmem:[#allocation2 + $0x2b8] sm:$0xff] }
 0x1e2   :  { %10062 = vtanh.f32 %v10400_v13  ;;  %v3050_v13 = vld [vmem:[#allocation2 + $0x470] sm:$0xff] }
 0x1e3   :  { %10064 = vtanh.f32 %v10397_v10  ;;  %v3682_v10 = vld [vmem:[#allocation2 + $0x570] sm:$0xff] }
 0x1e4   :  { %v10402_v21 = vpop.eup %10054 }
 0x1e5   :  { %v383_v24 = vrot.slane %v10402_v21, 2  ;;  %v682_v49 = vrot.slane %v10402_v21, 4  ;;  %v840_v0 = vrot.slane %v10402_v21, 6  ;;  %v10427_v18 = vpop.eup %10056 }
 0x1e6   :  { %v1156_v31 = vrot.slane %v10427_v18, 2  ;;  %v1472_v61 = vrot.slane %v10427_v18, 6 }
 0x1e7   :  { %8429 = vmatmul.mubr.msk.f32.vlgmr.msra.gmra.mrb[8].mxu1 %vm384_vm2, %v383_v24  ;;  %8430 = vmatmul.mubr.msk.f32.vlgmr.msra.gmra.mrb[8].mxu0 %vm384_vm2, %v383_v24  ;;  %v1312_v24 = vld [vmem:[#allocation2 + $0x1b0] sm:$0xff] }
 0x1e8   :  { %9369 = vmatpush1.bf16.msra.mxu1 %v9368_v22  ;;  %9373 = vmatpush1.bf16.msra.mxu0 %v9372_v23  ;;  %v1310_v22 = vld [vmem:[#allocation2 + $0x1a0] sm:$0xff]  ;;  %v1308_v23 = vld [vmem:[#allocation2 + $0x190] sm:$0xff]  ;;  %v10457_v14 = vpop.eup %10058 }
 0x1e9   :  { %595 = vmatprep.mubr.f32.mxu1 %v10221_v56  ;;  %666 = vmatprep.mubr.f32.mxu0 %v10221_v56  ;;  %v9412_v30 = vpack.c.bf16 %v1312_v24, %v1308_v23  ;;  %v2099_v23 = vld [vmem:[#allocation2 + $0x2d8] sm:$0xff]  ;;  %v1788_v27 = vrot.slane %v10457_v14, 2 }
 0x1ea   :  { %9375 = vmatprep.subr.bf16.mxu1 %v9374_v25  ;;  %9379 = vmatprep.subr.bf16.mxu0 %v9378_v26  ;;  %v1465_v25 = vld [vmem:[#allocation2 + $0x1c8] sm:$0xff]  ;;  %v2103_v24 = vld [vmem:[#allocation2 + $0x2f8] sm:$0xff] }
 0x1eb   :  { %v1469_v26 = vld [vmem:[#allocation2 + $0x1e8] sm:$0xff] }
 0x1ec   :  { %v9414_v32 = vpack.c.bf16 %v1469_v26, %v1465_v25 }
 0x1ef   :  { %8431 = vmatmul.mubr.msk.f32.vlgmr.msra.gmra.mrb[8].mxu1 %vm384_vm2, %v10402_v21  ;;  %8432 = vmatmul.mubr.msk.f32.vlgmr.msra.gmra.mrb[8].mxu0 %vm384_vm2, %v10402_v21  ;;  %v1306_v21 = vld [vmem:[#allocation2 + $0x180] sm:$0xff] }
 0x1f0   :  { %9377 = vmatpush1.bf16.msra.mxu1 %v9376_v35  ;;  %9381 = vmatpush1.bf16.msra.mxu0 %v9380_v36  ;;  %v9408_v29 = vpack.c.bf16 %v1310_v22, %v1306_v21  ;;  %v8861_v35 = vpop.f32.mrb[6].mxu1  ;;  %v1468_v36 = vld [vmem:[#allocation2 + $0x1e0] sm:$0xff]  ;;  %v2097_v21 = vld [vmem:[#allocation2 + $0x2c8] sm:$0xff] }
 0x1f1   :  { %749 = vmatprep.mubr.f32.mxu1 %v10221_v56  ;;  %820 = vmatprep.mubr.f32.mxu0 %v10221_v56  ;;  %v10441_v39 = vadd.f32 %v8861_v35, %v10385_v1  ;;  %v348_v40 = vpop.f32.mrb[7].mxu1  ;;  %v9416_v46 = vpack.c.bf16 %v1468_v36, %v1464_v34  ;;  %v2101_v22 = vld [vmem:[#allocation2 + $0x2e8] sm:$0xff]  ;;  %v2257_v36 = vld [vmem:[#allocation2 + $0x318] sm:$0xff] }
 0x1f2   :  { %9383 = vmatprep.subr.bf16.mxu1 %v9382_v37  ;;  %9387 = vmatprep.subr.bf16.mxu0 %v9386_v38  ;;  %v1466_v37 = vld [vmem:[#allocation2 + $0x1d0] sm:$0xff]  ;;  %v10444_v42 = vadd.f32 %v10385_v1, %v348_v40  ;;  %v1626_v1 = vld [vmem:[#allocation2 + $0x220] sm:$0xff]  ;;  %v9446_v28 = vpack.c.bf16 %v2101_v22, %v2097_v21  ;;  %v2255_v34 = vld [vmem:[#allocation2 + $0x308] sm:$0xff] }
 0x1f3   :  { %v1470_v38 = vld [vmem:[#allocation2 + $0x1f0] sm:$0xff]  ;;  %v2259_v35 = vld [vmem:[#allocation2 + $0x328] sm:$0xff] }
 0x1f4   :  { %10066 = vtanh.f32 %v10444_v42  ;;  %v4314_v42 = vld [vmem:[#allocation2 + $0x670] sm:$0xff] }
 0x1f5   :  { %10068 = vtanh.f32 %v10441_v39  ;;  %v4946_v39 = vld [vmem:[#allocation2 + $0x770] sm:$0xff] }
 0x1f7   :  { %8433 = vmatmul.mubr.msk.f32.vlgmr.msra.gmra.mrb[8].mxu1 %vm384_vm2, %v682_v49  ;;  %8434 = vmatmul.mubr.msk.f32.vlgmr.msra.gmra.mrb[8].mxu0 %vm384_vm2, %v682_v49  ;;  %v9422_v49 = vpack.c.bf16 %v1627_v43, %v1623_v41  ;;  %v1946_v41 = vrot.slane %v10457_v14, 4  ;;  %v9454_v43 = vpack.c.bf16 %v2259_v35, %v2255_v34 }
 0x1f8   :  { %9385 = vmatpush1.bf16.msra.mxu1 %v9384_v47  ;;  %9389 = vmatpush1.bf16.msra.mxu0 %v9388_v48  ;;  %v9420_v47 = vpack.c.bf16 %v1470_v38, %v1466_v37  ;;  %v1314_v48 = vrot.slane %v10427_v18, 4  ;;  %v2261_v37 = vld [vmem:[#allocation2 + $0x338] sm:$0xff] }
 0x1f9   :  { %907 = vmatprep.mubr.f32.mxu1 %v10221_v56  ;;  %978 = vmatprep.mubr.f32.mxu0 %v10221_v56 }
 0x1fa   :  { %9391 = vmatprep.subr.bf16.mxu1 %v9390_v50  ;;  %9395 = vmatprep.subr.bf16.mxu0 %v9394_v51  ;;  %v9426_v50 = vpack.c.bf16 %v1629_v45, %v1625_v44  ;;  %v1622_v51 = vld [vmem:[#allocation2 + $0x200] sm:$0xff]  ;;  %v9458_v44 = vpack.c.bf16 %v2261_v37, %v2257_v36 }
 0x1fb   :  { %v9424_v59 = vpack.c.bf16 %v1626_v1, %v1622_v51  ;;  %v2254_v45 = vld [vmem:[#allocation2 + $0x300] sm:$0xff]  ;;  %v2415_v51 = vld [vmem:[#allocation2 + $0x358] sm:$0xff] }
 0x1fc   :  { %v2419_v1 = vld [vmem:[#allocation2 + $0x378] sm:$0xff]  ;;  %v2886_v36 = vld [vmem:[#allocation2 + $0x400] sm:$0xff] }
 0x1fd   :  { %v2890_v37 = vld [vmem:[#allocation2 + $0x420] sm:$0xff] }
 0x1ff   :  { %8435 = vmatmul.mubr.msk.f32.vlgmr.msra.gmra.mrb[8].mxu1 %vm384_vm2, %v840_v0  ;;  %8436 = vmatmul.mubr.msk.f32.vlgmr.msra.gmra.mrb[8].mxu0 %vm384_vm2, %v840_v0  ;;  %v1780_v0 = vld [vmem:[#allocation2 + $0x240] sm:$0xff] }
 0x200   :  { %9393 = vmatpush1.bf16.msra.mxu1 %v9392_v62  ;;  %9397 = vmatpush1.bf16.msra.mxu0 %v9396_v63  ;;  %v9430_v62 = vpack.c.bf16 %v1785_v55, %v1781_v54  ;;  %v9434_v63 = vpack.c.bf16 %v1787_v58, %v1783_v57  ;;  %v2104_v54 = vrot.slane %v10457_v14, 6  ;;  %v9466_v57 = vpack.c.bf16 %v2419_v1, %v2415_v51  ;;  %v2412_v58 = vld [vmem:[#allocation2 + $0x340] sm:$0xff] }
 0x201   :  { %1065 = vmatprep.mubr.f32.mxu1 %v10221_v56  ;;  %1136 = vmatprep.mubr.f32.mxu0 %v10221_v56  ;;  %v3044_v51 = vld [vmem:[#allocation2 + $0x440] sm:$0xff] }
 0x202   :  { %9399 = vmatprep.subr.bf16.mxu1 %v9398_v2  ;;  %9403 = vmatprep.subr.bf16.mxu0 %v9402_v3  ;;  %v1784_v2 = vld [vmem:[#allocation2 + $0x260] sm:$0xff]  ;;  %v1782_v3 = vld [vmem:[#allocation2 + $0x250] sm:$0xff] }
 0x203   :  { %v9432_v11 = vpack.c.bf16 %v1784_v2, %v1780_v0  ;;  %v9436_v12 = vpack.c.bf16 %v1786_v8, %v1782_v3  ;;  %v2577_v0 = vld [vmem:[#allocation2 + $0x3b8] sm:$0xff]  ;;  %v10481_v8 = vpop.eup %10060  ;;  %v3048_v1 = vld [vmem:[#allocation2 + $0x460] sm:$0xff] }
 0x207   :  { %8437 = vmatmul.mubr.msk.f32.vlgmr.msra.gmra.mrb[8].mxu1 %vm384_vm2, %v10427_v18  ;;  %8438 = vmatmul.mubr.msk.f32.vlgmr.msra.gmra.mrb[8].mxu0 %vm384_vm2, %v10427_v18  ;;  %v1942_v18 = vld [vmem:[#allocation2 + $0x2a0] sm:$0xff] }
 0x208   :  { %9401 = vmatpush1.bf16.msra.mxu1 %v9400_v16  ;;  %9405 = vmatpush1.bf16.msra.mxu0 %v9404_v17  ;;  %v9442_v16 = vpack.c.bf16 %v1945_v9, %v1941_v7  ;;  %v1938_v17 = vld [vmem:[#allocation2 + $0x280] sm:$0xff] }
 0x209   :  { %1223 = vmatprep.mubr.f32.mxu1 %v10221_v56  ;;  %1294 = vmatprep.mubr.f32.mxu0 %v10221_v56  ;;  %v9440_v25 = vpack.c.bf16 %v1942_v18, %v1938_v17  ;;  %v2570_v7 = vld [vmem:[#allocation2 + $0x380] sm:$0xff]  ;;  %v2735_v17 = vld [vmem:[#allocation2 + $0x3f8] sm:$0xff] }
 0x20a   :  { %9407 = vmatprep.subr.bf16.mxu1 %v9406_v19  ;;  %9411 = vmatprep.subr.bf16.mxu0 %v9410_v20  ;;  %v1940_v19 = vld [vmem:[#allocation2 + $0x290] sm:$0xff]  ;;  %v2574_v9 = vld [vmem:[#allocation2 + $0x3a0] sm:$0xff] }
 0x20b   :  { %v1944_v20 = vld [vmem:[#allocation2 + $0x2b0] sm:$0xff]  ;;  %v9472_v18 = vpack.c.bf16 %v2574_v9, %v2570_v7 }
 0x20c   :  { %v9444_v26 = vpack.c.bf16 %v1944_v20, %v1940_v19  ;;  %v2420_v20 = vrot.slane %v10481_v8, 2 }
 0x20f   :  { %8439 = vmatmul.mubr.msk.f32.vlgmr.msra.gmra.mrb[8].mxu1 %vm384_vm2, %v1156_v31  ;;  %8440 = vmatmul.mubr.msk.f32.vlgmr.msra.gmra.mrb[8].mxu0 %vm384_vm2, %v1156_v31  ;;  %v2100_v31 = vld [vmem:[#allocation2 + $0x2e0] sm:$0xff] }
 0x210   :  { %9409 = vmatpush1.bf16.msra.mxu1 %v9408_v29  ;;  %9413 = vmatpush1.bf16.msra.mxu0 %v9412_v30  ;;  %v9450_v29 = vpack.c.bf16 %v2103_v24, %v2099_v23  ;;  %v2096_v30 = vld [vmem:[#allocation2 + $0x2c0] sm:$0xff] }
 0x211   :  { %1381 = vmatprep.mubr.f32.mxu1 %v10221_v56  ;;  %1452 = vmatprep.mubr.f32.mxu0 %v10221_v56  ;;  %v9448_v38 = vpack.c.bf16 %v2100_v31, %v2096_v30  ;;  %v2728_v23 = vld [vmem:[#allocation2 + $0x3c0] sm:$0xff]  ;;  %v2893_v30 = vld [vmem:[#allocation2 + $0x438] sm:$0xff] }
 0x212   :  { %9415 = vmatprep.subr.bf16.mxu1 %v9414_v32  ;;  %9419 = vmatprep.subr.bf16.mxu0 %v9418_v33  ;;  %v2098_v32 = vld [vmem:[#allocation2 + $0x2d0] sm:$0xff]  ;;  %v2732_v24 = vld [vmem:[#allocation2 + $0x3e0] sm:$0xff] }
 0x213   :  { %v2102_v33 = vld [vmem:[#allocation2 + $0x2f0] sm:$0xff]  ;;  %v9480_v31 = vpack.c.bf16 %v2732_v24, %v2728_v23 }
 0x214   :  { %v9452_v40 = vpack.c.bf16 %v2102_v33, %v2098_v32  ;;  %v2578_v33 = vrot.slane %v10481_v8, 4 }
 0x217   :  { %8441 = vmatmul.mubr.msk.f32.vlgmr.msra.gmra.mrb[8].mxu1 %vm384_vm2, %v1314_v48  ;;  %8442 = vmatmul.mubr.msk.f32.vlgmr.msra.gmra.mrb[8].mxu0 %vm384_vm2, %v1314_v48  ;;  %v2260_v48 = vld [vmem:[#allocation2 + $0x330] sm:$0xff] }
 0x218   :  { %9417 = vmatpush1.bf16.msra.mxu1 %v9416_v46  ;;  %9421 = vmatpush1.bf16.msra.mxu0 %v9420_v47  ;;  %v2258_v46 = vld [vmem:[#allocation2 + $0x320] sm:$0xff]  ;;  %v2256_v47 = vld [vmem:[#allocation2 + $0x310] sm:$0xff] }
 0x219   :  { %1539 = vmatprep.mubr.f32.mxu1 %v10221_v56  ;;  %1610 = vmatprep.mubr.f32.mxu0 %v10221_v56  ;;  %v9456_v52 = vpack.c.bf16 %v2258_v46, %v2254_v45  ;;  %v9460_v53 = vpack.c.bf16 %v2260_v48, %v2256_v47  ;;  %v3051_v45 = vld [vmem:[#allocation2 + $0x478] sm:$0xff]  ;;  %v9488_v46 = vpack.c.bf16 %v2890_v37, %v2886_v36  ;;  %v2736_v48 = vrot.slane %v10481_v8, 6 }
 0x21a   :  { %9423 = vmatprep.subr.bf16.mxu1 %v9422_v49  ;;  %9427 = vmatprep.subr.bf16.mxu0 %v9426_v50  ;;  %v2413_v49 = vld [vmem:[#allocation2 + $0x348] sm:$0xff] }
 0x21b   :  { %v2417_v50 = vld [vmem:[#allocation2 + $0x368] sm:$0xff] }
 0x21c   :  { %v9462_v55 = vpack.c.bf16 %v2417_v50, %v2413_v49 }
 0x21f   :  { %8443 = vmatmul.mubr.msk.f32.vlgmr.msra.gmra.mrb[8].mxu1 %vm384_vm2, %v1472_v61  ;;  %8444 = vmatmul.mubr.msk.f32.vlgmr.msra.gmra.mrb[8].mxu0 %vm384_vm2, %v1472_v61  ;;  %v2571_v61 = vld [vmem:[#allocation2 + $0x388] sm:$0xff] }
 0x220   :  { %9425 = vmatpush1.bf16.msra.mxu1 %v9424_v59  ;;  %9429 = vmatpush1.bf16.msra.mxu0 %v9428_v60  ;;  %v2416_v59 = vld [vmem:[#allocation2 + $0x360] sm:$0xff]  ;;  %v2414_v60 = vld [vmem:[#allocation2 + $0x350] sm:$0xff] }
 0x221   :  { %1697 = vmatprep.mubr.f32.mxu1 %v10221_v56  ;;  %1768 = vmatprep.mubr.f32.mxu0 %v10221_v56  ;;  %v9464_v2 = vpack.c.bf16 %v2416_v59, %v2412_v58  ;;  %v9468_v3 = vpack.c.bf16 %v2418_v6, %v2414_v60  ;;  %v9496_v58 = vpack.c.bf16 %v3048_v1, %v3044_v51  ;;  %v10505_v60 = vpop.eup %10062 }
 0x222   :  { %9431 = vmatprep.subr.bf16.mxu1 %v9430_v62  ;;  %9435 = vmatprep.subr.bf16.mxu0 %v9434_v63  ;;  %v2575_v62 = vld [vmem:[#allocation2 + $0x3a8] sm:$0xff]  ;;  %v2573_v63 = vld [vmem:[#allocation2 + $0x398] sm:$0xff]  ;;  %v10529_v1 = vpop.eup %10064 }
 0x223   :  { %v9470_v4 = vpack.c.bf16 %v2575_v62, %v2571_v61  ;;  %v9474_v5 = vpack.c.bf16 %v2577_v0, %v2573_v63  ;;  %v3202_v62 = vld [vmem:[#allocation2 + $0x480] sm:$0xff]  ;;  %v3204_v0 = vld [vmem:[#allocation2 + $0x490] sm:$0xff] }
 0x224   :  { %v3206_v63 = vld [vmem:[#allocation2 + $0x4a0] sm:$0xff] }
 0x225   :  { %v9504_v7 = vpack.c.bf16 %v3206_v63, %v3202_v62  ;;  %v3684_v63 = vrot.slane %v10529_v1, 2 }
 0x227   :  { %8445 = vmatmul.mubr.msk.f32.vlgmr.msra.gmra.mrb[8].mxu1 %vm384_vm2, %v10457_v14  ;;  %8446 = vmatmul.mubr.msk.f32.vlgmr.msra.gmra.mrb[8].mxu0 %vm384_vm2, %v10457_v14  ;;  %v2729_v14 = vld [vmem:[#allocation2 + $0x3c8] sm:$0xff] }
 0x228   :  { %9433 = vmatpush1.bf16.msra.mxu1 %v9432_v11  ;;  %9437 = vmatpush1.bf16.msra.mxu0 %v9436_v12  ;;  %v2572_v11 = vld [vmem:[#allocation2 + $0x390] sm:$0xff] }
 0x229   :  { %1855 = vmatprep.mubr.f32.mxu1 %v10221_v56  ;;  %1926 = vmatprep.mubr.f32.mxu0 %v10221_v56  ;;  %v2576_v12 = vld [vmem:[#allocation2 + $0x3b0] sm:$0xff] }
 0x22a   :  { %9439 = vmatprep.subr.bf16.mxu1 %v9438_v15  ;;  %9443 = vmatprep.subr.bf16.mxu0 %v9442_v16  ;;  %v2733_v15 = vld [vmem:[#allocation2 + $0x3e8] sm:$0xff]  ;;  %v2731_v16 = vld [vmem:[#allocation2 + $0x3d8] sm:$0xff]  ;;  %v9476_v19 = vpack.c.bf16 %v2576_v12, %v2572_v11  ;;  %v3052_v11 = vrot.slane %v10505_v60, 2 }
 0x22b   :  { %v9478_v21 = vpack.c.bf16 %v2733_v15, %v2729_v14  ;;  %v9482_v22 = vpack.c.bf16 %v2735_v17, %v2731_v16  ;;  %v3360_v15 = vld [vmem:[#allocation2 + $0x4c0] sm:$0xff]  ;;  %v3362_v17 = vld [vmem:[#allocation2 + $0x4d0] sm:$0xff] }
 0x22c   :  { %v3364_v16 = vld [vmem:[#allocation2 + $0x4e0] sm:$0xff] }
 0x22d   :  { %v9512_v23 = vpack.c.bf16 %v3364_v16, %v3360_v15  ;;  %v3842_v16 = vrot.slane %v10529_v1, 4 }
 0x22f   :  { %8447 = vmatmul.mubr.msk.f32.vlgmr.msra.gmra.mrb[8].mxu1 %vm384_vm2, %v1788_v27  ;;  %8448 = vmatmul.mubr.msk.f32.vlgmr.msra.gmra.mrb[8].mxu0 %vm384_vm2, %v1788_v27  ;;  %v2887_v27 = vld [vmem:[#allocation2 + $0x408] sm:$0xff] }
 0x230   :  { %9441 = vmatpush1.bf16.msra.mxu1 %v9440_v25  ;;  %9445 = vmatpush1.bf16.msra.mxu0 %v9444_v26  ;;  %v2730_v25 = vld [vmem:[#allocation2 + $0x3d0] sm:$0xff] }
 0x231   :  { %2013 = vmatprep.mubr.f32.mxu1 %v10221_v56  ;;  %2084 = vmatprep.mubr.f32.mxu0 %v10221_v56  ;;  %v2734_v26 = vld [vmem:[#allocation2 + $0x3f0] sm:$0xff] }
 0x232   :  { %9447 = vmatprep.subr.bf16.mxu1 %v9446_v28  ;;  %9451 = vmatprep.subr.bf16.mxu0 %v9450_v29  ;;  %v2891_v28 = vld [vmem:[#allocation2 + $0x428] sm:$0xff]  ;;  %v2889_v29 = vld [vmem:[#allocation2 + $0x418] sm:$0xff]  ;;  %v9484_v32 = vpack.c.bf16 %v2734_v26, %v2730_v25  ;;  %v3210_v25 = vrot.slane %v10505_v60, 4 }
 0x233   :  { %v9486_v34 = vpack.c.bf16 %v2891_v28, %v2887_v27  ;;  %v9490_v35 = vpack.c.bf16 %v2893_v30, %v2889_v29  ;;  %v3518_v28 = vld [vmem:[#allocation2 + $0x500] sm:$0xff]  ;;  %v3520_v30 = vld [vmem:[#allocation2 + $0x510] sm:$0xff] }
 0x234   :  { %v3522_v29 = vld [vmem:[#allocation2 + $0x520] sm:$0xff] }
 0x235   :  { %v9520_v36 = vpack.c.bf16 %v3522_v29, %v3518_v28  ;;  %v4000_v29 = vrot.slane %v10529_v1, 6 }
 0x237   :  { %8449 = vmatmul.mubr.msk.f32.vlgmr.msra.gmra.mrb[8].mxu1 %vm384_vm2, %v1946_v41  ;;  %8450 = vmatmul.mubr.msk.f32.vlgmr.msra.gmra.mrb[8].mxu0 %vm384_vm2, %v1946_v41  ;;  %v3045_v41 = vld [vmem:[#allocation2 + $0x448] sm:$0xff] }
 0x238   :  { %9449 = vmatpush1.bf16.msra.mxu1 %v9448_v38  ;;  %9453 = vmatpush1.bf16.msra.mxu0 %v9452_v40  ;;  %v2888_v38 = vld [vmem:[#allocation2 + $0x410] sm:$0xff] }
 0x239   :  { %2171 = vmatprep.mubr.f32.mxu1 %v10221_v56  ;;  %2242 = vmatprep.mubr.f32.mxu0 %v10221_v56  ;;  %v2892_v40 = vld [vmem:[#allocation2 + $0x430] sm:$0xff] }
 0x23a   :  { %9455 = vmatprep.subr.bf16.mxu1 %v9454_v43  ;;  %9459 = vmatprep.subr.bf16.mxu0 %v9458_v44  ;;  %v3049_v43 = vld [vmem:[#allocation2 + $0x468] sm:$0xff]  ;;  %v3047_v44 = vld [vmem:[#allocation2 + $0x458] sm:$0xff]  ;;  %v9492_v47 = vpack.c.bf16 %v2892_v40, %v2888_v38  ;;  %v3368_v38 = vrot.slane %v10505_v60, 6 }
 0x23b   :  { %v9494_v49 = vpack.c.bf16 %v3049_v43, %v3045_v41  ;;  %v9498_v50 = vpack.c.bf16 %v3051_v45, %v3047_v44  ;;  %v3676_v43 = vld [vmem:[#allocation2 + $0x540] sm:$0xff]  ;;  %v3678_v45 = vld [vmem:[#allocation2 + $0x550] sm:$0xff] }
 0x23c   :  { %v3680_v44 = vld [vmem:[#allocation2 + $0x560] sm:$0xff]  ;;  %v9532_v51 = vpack.c.bf16 %v3682_v10, %v3678_v45 }
 0x23d   :  { %v4466_v10 = vld [vmem:[#allocation2 + $0x680] sm:$0xff] }
 0x23f   :  { %8451 = vmatmul.mubr.msk.f32.vlgmr.msra.gmra.mrb[8].mxu1 %vm384_vm2, %v2104_v54  ;;  %8452 = vmatmul.mubr.msk.f32.vlgmr.msra.gmra.mrb[8].mxu0 %vm384_vm2, %v2104_v54  ;;  %v3207_v54 = vld [vmem:[#allocation2 + $0x4a8] sm:$0xff] }
 0x240   :  { %9457 = vmatpush1.bf16.msra.mxu1 %v9456_v52  ;;  %9461 = vmatpush1.bf16.msra.mxu0 %v9460_v53  ;;  %v3046_v52 = vld [vmem:[#allocation2 + $0x450] sm:$0xff]  ;;  %v3203_v53 = vld [vmem:[#allocation2 + $0x488] sm:$0xff] }
 0x241   :  { %2329 = vmatprep.mubr.f32.mxu1 %v10221_v56  ;;  %2400 = vmatprep.mubr.f32.mxu0 %v10221_v56  ;;  %v9500_v59 = vpack.c.bf16 %v3050_v13, %v3046_v52  ;;  %v9502_v6 = vpack.c.bf16 %v3207_v54, %v3203_v53  ;;  %v3834_v53 = vld [vmem:[#allocation2 + $0x580] sm:$0xff] }
 0x242   :  { %9463 = vmatprep.subr.bf16.mxu1 %v9462_v55  ;;  %9467 = vmatprep.subr.bf16.mxu0 %v9466_v57  ;;  %v3205_v55 = vld [vmem:[#allocation2 + $0x498] sm:$0xff]  ;;  %v3838_v54 = vld [vmem:[#allocation2 + $0x5a0] sm:$0xff] }
 0x243   :  { %v3209_v57 = vld [vmem:[#allocation2 + $0x4b8] sm:$0xff] }
 0x244   :  { %v9506_v61 = vpack.c.bf16 %v3209_v57, %v3205_v55  ;;  %v3836_v55 = vld [vmem:[#allocation2 + $0x590] sm:$0xff] }
 0x245   :  { %v3840_v57 = vld [vmem:[#allocation2 + $0x5b0] sm:$0xff] }
 0x246   :  { %v9540_v62 = vpack.c.bf16 %v3840_v57, %v3836_v55  ;;  %v4624_v57 = vld [vmem:[#allocation2 + $0x6c0] sm:$0xff] }
 0x247   :  { %8453 = vmatmul.mubr.msk.f32.vlgmr.msra.gmra.mrb[8].mxu1 %vm384_vm2, %v10481_v8  ;;  %8454 = vmatmul.mubr.msk.f32.vlgmr.msra.gmra.mrb[8].mxu0 %vm384_vm2, %v10481_v8  ;;  %v3365_v8 = vld [vmem:[#allocation2 + $0x4e8] sm:$0xff] }
 0x248   :  { %9465 = vmatpush1.bf16.msra.mxu1 %v9464_v2  ;;  %9469 = vmatpush1.bf16.msra.mxu0 %v9468_v3  ;;  %v3208_v2 = vld [vmem:[#allocation2 + $0x4b0] sm:$0xff]  ;;  %v3361_v3 = vld [vmem:[#allocation2 + $0x4c8] sm:$0xff] }
 0x249   :  { %2487 = vmatprep.mubr.f32.mxu1 %v10221_v56  ;;  %2558 = vmatprep.mubr.f32.mxu0 %v10221_v56  ;;  %v9508_v9 = vpack.c.bf16 %v3208_v2, %v3204_v0  ;;  %v9510_v12 = vpack.c.bf16 %v3365_v8, %v3361_v3  ;;  %v3992_v3 = vld [vmem:[#allocation2 + $0x5c0] sm:$0xff] }
 0x24a   :  { %9471 = vmatprep.subr.bf16.mxu1 %v9470_v4  ;;  %9475 = vmatprep.subr.bf16.mxu0 %v9474_v5  ;;  %v3363_v4 = vld [vmem:[#allocation2 + $0x4d8] sm:$0xff]  ;;  %v3996_v8 = vld [vmem:[#allocation2 + $0x5e0] sm:$0xff] }
 0x24b   :  { %v3367_v5 = vld [vmem:[#allocation2 + $0x4f8] sm:$0xff] }
 0x24c   :  { %v9514_v14 = vpack.c.bf16 %v3367_v5, %v3363_v4  ;;  %v3994_v4 = vld [vmem:[#allocation2 + $0x5d0] sm:$0xff] }
 0x24d   :  { %v3998_v5 = vld [vmem:[#allocation2 + $0x5f0] sm:$0xff] }
 0x24e   :  { %v9548_v15 = vpack.c.bf16 %v3998_v5, %v3994_v4  ;;  %v4782_v5 = vld [vmem:[#allocation2 + $0x700] sm:$0xff] }
 0x24f   :  { %8455 = vmatmul.mubr.msk.f32.vlgmr.msra.gmra.mrb[8].mxu1 %vm384_vm2, %v2420_v20  ;;  %8456 = vmatmul.mubr.msk.f32.vlgmr.msra.gmra.mrb[8].mxu0 %vm384_vm2, %v2420_v20  ;;  %v3523_v20 = vld [vmem:[#allocation2 + $0x528] sm:$0xff] }
 0x250   :  { %9473 = vmatpush1.bf16.msra.mxu1 %v9472_v18  ;;  %9477 = vmatpush1.bf16.msra.mxu0 %v9476_v19  ;;  %v3366_v18 = vld [vmem:[#allocation2 + $0x4f0] sm:$0xff]  ;;  %v3519_v19 = vld [vmem:[#allocation2 + $0x508] sm:$0xff] }
 0x251   :  { %2645 = vmatprep.mubr.f32.mxu1 %v10221_v56  ;;  %2716 = vmatprep.mubr.f32.mxu0 %v10221_v56  ;;  %v9516_v24 = vpack.c.bf16 %v3366_v18, %v3362_v17  ;;  %v9518_v26 = vpack.c.bf16 %v3523_v20, %v3519_v19  ;;  %v4150_v19 = vld [vmem:[#allocation2 + $0x600] sm:$0xff] }
 0x252   :  { %9479 = vmatprep.subr.bf16.mxu1 %v9478_v21  ;;  %9483 = vmatprep.subr.bf16.mxu0 %v9482_v22  ;;  %v3521_v21 = vld [vmem:[#allocation2 + $0x518] sm:$0xff]  ;;  %v4154_v20 = vld [vmem:[#allocation2 + $0x620] sm:$0xff] }
 0x253   :  { %v3525_v22 = vld [vmem:[#allocation2 + $0x538] sm:$0xff] }
 0x254   :  { %v9522_v27 = vpack.c.bf16 %v3525_v22, %v3521_v21  ;;  %v4152_v21 = vld [vmem:[#allocation2 + $0x610] sm:$0xff] }
 0x255   :  { %v4156_v22 = vld [vmem:[#allocation2 + $0x630] sm:$0xff] }
 0x256   :  { %v9556_v28 = vpack.c.bf16 %v4156_v22, %v4152_v21  ;;  %v4940_v22 = vld [vmem:[#allocation2 + $0x740] sm:$0xff] }
 0x257   :  { %8457 = vmatmul.mubr.msk.f32.vlgmr.msra.gmra.mrb[8].mxu1 %vm384_vm2, %v2578_v33  ;;  %8458 = vmatmul.mubr.msk.f32.vlgmr.msra.gmra.mrb[8].mxu0 %vm384_vm2, %v2578_v33  ;;  %v3681_v33 = vld [vmem:[#allocation2 + $0x568] sm:$0xff] }
 0x258   :  { %9481 = vmatpush1.bf16.msra.mxu1 %v9480_v31  ;;  %9485 = vmatpush1.bf16.msra.mxu0 %v9484_v32  ;;  %v3524_v31 = vld [vmem:[#allocation2 + $0x530] sm:$0xff]  ;;  %v3677_v32 = vld [vmem:[#allocation2 + $0x548] sm:$0xff] }
 0x259   :  { %2803 = vmatprep.mubr.f32.mxu1 %v10221_v56  ;;  %2874 = vmatprep.mubr.f32.mxu0 %v10221_v56  ;;  %v9524_v37 = vpack.c.bf16 %v3524_v31, %v3520_v30  ;;  %v9526_v40 = vpack.c.bf16 %v3681_v33, %v3677_v32  ;;  %v4308_v32 = vld [vmem:[#allocation2 + $0x640] sm:$0xff] }
 0x25a   :  { %9487 = vmatprep.subr.bf16.mxu1 %v9486_v34  ;;  %9491 = vmatprep.subr.bf16.mxu0 %v9490_v35  ;;  %v3679_v34 = vld [vmem:[#allocation2 + $0x558] sm:$0xff]  ;;  %v4312_v33 = vld [vmem:[#allocation2 + $0x660] sm:$0xff] }
 0x25b   :  { %v3683_v35 = vld [vmem:[#allocation2 + $0x578] sm:$0xff] }
 0x25c   :  { %v9530_v41 = vpack.c.bf16 %v3683_v35, %v3679_v34  ;;  %v4310_v34 = vld [vmem:[#allocation2 + $0x650] sm:$0xff]  ;;  %v4467_v35 = vld [vmem:[#allocation2 + $0x688] sm:$0xff] }
 0x25f   :  { %8459 = vmatmul.mubr.msk.f32.vlgmr.msra.gmra.mrb[8].mxu1 %vm384_vm2, %v2736_v48  ;;  %8460 = vmatmul.mubr.msk.f32.vlgmr.msra.gmra.mrb[8].mxu0 %vm384_vm2, %v2736_v48  ;;  %v3837_v48 = vld [vmem:[#allocation2 + $0x598] sm:$0xff] }
 0x260   :  { %9489 = vmatpush1.bf16.msra.mxu1 %v9488_v46  ;;  %9493 = vmatpush1.bf16.msra.mxu0 %v9492_v47  ;;  %v3835_v46 = vld [vmem:[#allocation2 + $0x588] sm:$0xff] }
 0x261   :  { %2961 = vmatprep.mubr.f32.mxu1 %v10221_v56  ;;  %3032 = vmatprep.mubr.f32.mxu0 %v10221_v56  ;;  %v3839_v47 = vld [vmem:[#allocation2 + $0x5a8] sm:$0xff] }
 0x262   :  { %9495 = vmatprep.subr.bf16.mxu1 %v9494_v49  ;;  %9499 = vmatprep.subr.bf16.mxu0 %v9498_v50  ;;  %v3841_v49 = vld [vmem:[#allocation2 + $0x5b8] sm:$0xff]  ;;  %v9528_v50 = vpack.c.bf16 %v3680_v44, %v3676_v43  ;;  %v9534_v52 = vpack.c.bf16 %v3839_v47, %v3835_v46  ;;  %v10553_v43 = vpop.eup %10066  ;;  %v4470_v46 = vld [vmem:[#allocation2 + $0x6a0] sm:$0xff]  ;;  %v4468_v47 = vld [vmem:[#allocation2 + $0x690] sm:$0xff] }
 0x263   :  { %v9538_v13 = vpack.c.bf16 %v3841_v49, %v3837_v48  ;;  %v4472_v48 = vld [vmem:[#allocation2 + $0x6b0] sm:$0xff]  ;;  %v4625_v49 = vld [vmem:[#allocation2 + $0x6c8] sm:$0xff] }
 0x267   :  { %8461 = vmatmul.mubr.msk.f32.vlgmr.msra.gmra.mrb[8].mxu1 %vm384_vm2, %v10505_v60  ;;  %8462 = vmatmul.mubr.msk.f32.vlgmr.msra.gmra.mrb[8].mxu0 %vm384_vm2, %v10505_v60  ;;  %v3995_v60 = vld [vmem:[#allocation2 + $0x5d8] sm:$0xff] }
 0x268   :  { %9497 = vmatpush1.bf16.msra.mxu1 %v9496_v58  ;;  %9501 = vmatpush1.bf16.msra.mxu0 %v9500_v59  ;;  %v3993_v58 = vld [vmem:[#allocation2 + $0x5c8] sm:$0xff] }
 0x269   :  { %3119 = vmatprep.mubr.f32.mxu1 %v10221_v56  ;;  %3190 = vmatprep.mubr.f32.mxu0 %v10221_v56  ;;  %v3997_v59 = vld [vmem:[#allocation2 + $0x5e8] sm:$0xff] }
 0x26a   :  { %9503 = vmatprep.subr.bf16.mxu1 %v9502_v6  ;;  %9507 = vmatprep.subr.bf16.mxu0 %v9506_v61  ;;  %v3999_v6 = vld [vmem:[#allocation2 + $0x5f8] sm:$0xff]  ;;  %v9536_v61 = vpack.c.bf16 %v3838_v54, %v3834_v53  ;;  %v9542_v0 = vpack.c.bf16 %v3997_v59, %v3993_v58  ;;  %v4316_v53 = vrot.slane %v10553_v43, 2  ;;  %v4628_v58 = vld [vmem:[#allocation2 + $0x6e0] sm:$0xff]  ;;  %v4626_v59 = vld [vmem:[#allocation2 + $0x6d0] sm:$0xff] }
 0x26b   :  { %v9546_v2 = vpack.c.bf16 %v3999_v6, %v3995_v60  ;;  %v4630_v60 = vld [vmem:[#allocation2 + $0x6f0] sm:$0xff]  ;;  %v4783_v6 = vld [vmem:[#allocation2 + $0x708] sm:$0xff] }
 0x26f   :  { %8463 = vmatmul.mubr.msk.f32.vlgmr.msra.gmra.mrb[8].mxu1 %vm384_vm2, %v3052_v11  ;;  %8464 = vmatmul.mubr.msk.f32.vlgmr.msra.gmra.mrb[8].mxu0 %vm384_vm2, %v3052_v11  ;;  %v4153_v11 = vld [vmem:[#allocation2 + $0x618] sm:$0xff] }
 0x270   :  { %9505 = vmatpush1.bf16.msra.mxu1 %v9504_v7  ;;  %9509 = vmatpush1.bf16.msra.mxu0 %v9508_v9  ;;  %v4151_v7 = vld [vmem:[#allocation2 + $0x608] sm:$0xff] }
 0x271   :  { %3277 = vmatprep.mubr.f32.mxu1 %v10221_v56  ;;  %3348 = vmatprep.mubr.f32.mxu0 %v10221_v56  ;;  %v4155_v9 = vld [vmem:[#allocation2 + $0x628] sm:$0xff] }
 0x272   :  { %9511 = vmatprep.subr.bf16.mxu1 %v9510_v12  ;;  %9515 = vmatprep.subr.bf16.mxu0 %v9514_v14  ;;  %v4157_v12 = vld [vmem:[#allocation2 + $0x638] sm:$0xff]  ;;  %v9544_v14 = vpack.c.bf16 %v3996_v8, %v3992_v3  ;;  %v9550_v17 = vpack.c.bf16 %v4155_v9, %v4151_v7  ;;  %v4474_v3 = vrot.slane %v10553_v43, 4  ;;  %v4786_v7 = vld [vmem:[#allocation2 + $0x720] sm:$0xff]  ;;  %v4784_v9 = vld [vmem:[#allocation2 + $0x710] sm:$0xff] }
 0x273   :  { %v9554_v18 = vpack.c.bf16 %v4157_v12, %v4153_v11  ;;  %v4788_v11 = vld [vmem:[#allocation2 + $0x730] sm:$0xff]  ;;  %v4941_v12 = vld [vmem:[#allocation2 + $0x748] sm:$0xff] }
 0x277   :  { %8465 = vmatmul.mubr.msk.f32.vlgmr.msra.gmra.mrb[8].mxu1 %vm384_vm2, %v3210_v25  ;;  %8466 = vmatmul.mubr.msk.f32.vlgmr.msra.gmra.mrb[8].mxu0 %vm384_vm2, %v3210_v25  ;;  %v4311_v25 = vld [vmem:[#allocation2 + $0x658] sm:$0xff] }
 0x278   :  { %9513 = vmatpush1.bf16.msra.mxu1 %v9512_v23  ;;  %9517 = vmatpush1.bf16.msra.mxu0 %v9516_v24  ;;  %v4309_v23 = vld [vmem:[#allocation2 + $0x648] sm:$0xff] }
 0x279   :  { %3435 = vmatprep.mubr.f32.mxu1 %v10221_v56  ;;  %3506 = vmatprep.mubr.f32.mxu0 %v10221_v56  ;;  %v4313_v24 = vld [vmem:[#allocation2 + $0x668] sm:$0xff] }
 0x27a   :  { %9519 = vmatprep.subr.bf16.mxu1 %v9518_v26  ;;  %9523 = vmatprep.subr.bf16.mxu0 %v9522_v27  ;;  %v4315_v26 = vld [vmem:[#allocation2 + $0x678] sm:$0xff]  ;;  %v9552_v27 = vpack.c.bf16 %v4154_v20, %v4150_v19  ;;  %v9558_v30 = vpack.c.bf16 %v4313_v24, %v4309_v23  ;;  %v4632_v19 = vrot.slane %v10553_v43, 6  ;;  %v4944_v23 = vld [vmem:[#allocation2 + $0x760] sm:$0xff]  ;;  %v4942_v24 = vld [vmem:[#allocation2 + $0x750] sm:$0xff] }
 0x27b   :  { %v9562_v31 = vpack.c.bf16 %v4315_v26, %v4311_v25  ;;  %v5099_v25 = vld [vmem:[#allocation2 + $0x788] sm:$0xff] }
 0x27c   :  { %v5103_v26 = vld [vmem:[#allocation2 + $0x7a8] sm:$0xff] }
 0x27f   :  { %8467 = vmatmul.mubr.msk.f32.vlgmr.msra.gmra.mrb[8].mxu1 %vm384_vm2, %v3368_v38  ;;  %8468 = vmatmul.mubr.msk.f32.vlgmr.msra.gmra.mrb[8].mxu0 %vm384_vm2, %v3368_v38  ;;  %v4473_v38 = vld [vmem:[#allocation2 + $0x6b8] sm:$0xff] }
 0x280   :  { %9521 = vmatpush1.bf16.msra.mxu1 %v9520_v36  ;;  %9525 = vmatpush1.bf16.msra.mxu0 %v9524_v37  ;;  %v4471_v36 = vld [vmem:[#allocation2 + $0x6a8] sm:$0xff]  ;;  %v4469_v37 = vld [vmem:[#allocation2 + $0x698] sm:$0xff] }
 0x281   :  { %3593 = vmatprep.mubr.f32.mxu1 %v10221_v56  ;;  %3664 = vmatprep.mubr.f32.mxu0 %v10221_v56  ;;  %v9566_v44 = vpack.c.bf16 %v4471_v36, %v4467_v35  ;;  %v9570_v45 = vpack.c.bf16 %v4473_v38, %v4469_v37  ;;  %v5100_v35 = vld [vmem:[#allocation2 + $0x790] sm:$0xff]  ;;  %v5257_v37 = vld [vmem:[#allocation2 + $0x7c8] sm:$0xff] }
 0x282   :  { %9527 = vmatprep.subr.bf16.mxu1 %v9526_v40  ;;  %9531 = vmatprep.subr.bf16.mxu0 %v9530_v41  ;;  %v9560_v40 = vpack.c.bf16 %v4312_v33, %v4308_v32  ;;  %v9564_v41 = vpack.c.bf16 %v4314_v42, %v4310_v34  ;;  %v9598_v32 = vpack.c.bf16 %v5103_v26, %v5099_v25  ;;  %v5098_v34 = vld [vmem:[#allocation2 + $0x780] sm:$0xff]  ;;  %v5104_v36 = vld [vmem:[#allocation2 + $0x7b0] sm:$0xff]  ;;  %v5261_v38 = vld [vmem:[#allocation2 + $0x7e8] sm:$0xff] }
 0x283   :  { %v5102_v42 = vld [vmem:[#allocation2 + $0x7a0] sm:$0xff] }
 0x287   :  { %8469 = vmatmul.mubr.msk.f32.vlgmr.msra.gmra.mrb[8].mxu1 %vm384_vm2, %v10529_v1  ;;  %8470 = vmatmul.mubr.msk.f32.vlgmr.msra.gmra.mrb[8].mxu0 %vm384_vm2, %v10529_v1  ;;  %v4631_v1 = vld [vmem:[#allocation2 + $0x6f8] sm:$0xff] }
 0x288   :  { %9529 = vmatpush1.bf16.msra.mxu1 %v9528_v50  ;;  %9533 = vmatpush1.bf16.msra.mxu0 %v9532_v51  ;;  %v4629_v50 = vld [vmem:[#allocation2 + $0x6e8] sm:$0xff]  ;;  %v4627_v51 = vld [vmem:[#allocation2 + $0x6d8] sm:$0xff] }
 0x289   :  { %3751 = vmatprep.mubr.f32.mxu1 %v10221_v56  ;;  %3822 = vmatprep.mubr.f32.mxu0 %v10221_v56  ;;  %v9574_v54 = vpack.c.bf16 %v4629_v50, %v4625_v49  ;;  %v9578_v55 = vpack.c.bf16 %v4631_v1, %v4627_v51  ;;  %v5258_v49 = vld [vmem:[#allocation2 + $0x7d0] sm:$0xff] }
 0x28a   :  { %9535 = vmatprep.subr.bf16.mxu1 %v9534_v52  ;;  %9539 = vmatprep.subr.bf16.mxu0 %v9538_v13  ;;  %v9568_v52 = vpack.c.bf16 %v4470_v46, %v4466_v10  ;;  %v9572_v13 = vpack.c.bf16 %v4472_v48, %v4468_v47  ;;  %v9606_v10 = vpack.c.bf16 %v5261_v38, %v5257_v37  ;;  %v5256_v47 = vld [vmem:[#allocation2 + $0x7c0] sm:$0xff]  ;;  %v5262_v50 = vld [vmem:[#allocation2 + $0x7f0] sm:$0xff] }
 0x28b   :  { %v5260_v48 = vld [vmem:[#allocation2 + $0x7e0] sm:$0xff]  ;;  %v9612_v1 = vpack.c.bf16 %v5262_v50, %v5258_v49 }
 0x28c   :  { %v9608_v51 = vpack.c.bf16 %v5260_v48, %v5256_v47  ;;  %v6621_v38 = vld [vmem:[%s11465_s10] sm:$0xff]  ;;  %v8522_v47 = vld [vmem:[%s11465_s10 + $0x30] sm:$0xff]  ;;  %v8523_v48 = vld [vmem:[%s11465_s10 + $0x38] sm:$0xff] }
 0x28f   :  { %8471 = vmatmul.mubr.msk.f32.vlgmr.msra.gmra.mrb[8].mxu1 %vm384_vm2, %v3684_v63  ;;  %8472 = vmatmul.mubr.msk.f32.vlgmr.msra.gmra.mrb[8].mxu0 %vm384_vm2, %v3684_v63  ;;  %v4789_v63 = vld [vmem:[#allocation2 + $0x738] sm:$0xff] }
 0x290   :  { %9537 = vmatpush1.bf16.msra.mxu1 %v9536_v61  ;;  %9541 = vmatpush1.bf16.msra.mxu0 %v9540_v62  ;;  %v4787_v61 = vld [vmem:[#allocation2 + $0x728] sm:$0xff]  ;;  %v4785_v62 = vld [vmem:[#allocation2 + $0x718] sm:$0xff] }
 0x291   :  { %3909 = vmatprep.mubr.f32.mxu1 %v10221_v56  ;;  %3980 = vmatprep.mubr.f32.mxu0 %v10221_v56  ;;  %v9582_v8 = vpack.c.bf16 %v4787_v61, %v4783_v6  ;;  %v9586_v4 = vpack.c.bf16 %v4789_v63, %v4785_v62  ;;  %v5442_v61 = vld [vmem:[%s11463_s8 + $0x18] sm:$0xff]  ;;  %v8495_v62 = vld [vmem:[%s11463_s8 + $0x50] sm:$0xff] }
 0x292   :  { %9543 = vmatprep.subr.bf16.mxu1 %v9542_v0  ;;  %9547 = vmatprep.subr.bf16.mxu0 %v9546_v2  ;;  %v9576_v0 = vpack.c.bf16 %v4628_v58, %v4624_v57  ;;  %v9580_v2 = vpack.c.bf16 %v4630_v60, %v4626_v59  ;;  %v10222_v57 = vmov 0.0|0.0   ;;  %v5441_v60 = vld [vmem:[%s11463_s8 + $0x10] sm:$0xff]  ;;  %v8496_v63 = vld [vmem:[%s11463_s8 + $0x58] sm:$0xff] }
 0x297   :  { %8473 = vmatmul.mubr.msk.f32.vlgmr.msra.gmra.mrb[8].mxu1 %vm384_vm2, %v3842_v16  ;;  %8474 = vmatmul.mubr.msk.f32.vlgmr.msra.gmra.mrb[8].mxu0 %vm384_vm2, %v3842_v16  ;;  %v4947_v16 = vld [vmem:[#allocation2 + $0x778] sm:$0xff] }
 0x298   :  { %9545 = vmatpush1.bf16.msra.mxu1 %v9544_v14  ;;  %9549 = vmatpush1.bf16.msra.mxu0 %v9548_v15  ;;  %v4945_v14 = vld [vmem:[#allocation2 + $0x768] sm:$0xff]  ;;  %v4943_v15 = vld [vmem:[#allocation2 + $0x758] sm:$0xff] }
 0x299   :  { %4067 = vmatprep.mubr.f32.mxu1 %v10221_v56  ;;  %4138 = vmatprep.mubr.f32.mxu0 %v10221_v56  ;;  %v9590_v20 = vpack.c.bf16 %v4945_v14, %v4941_v12  ;;  %v9594_v21 = vpack.c.bf16 %v4947_v16, %v4943_v15  ;;  %v5446_v12 = vld [vmem:[%s11463_s8 + $0x38] sm:$0xff]  ;;  %v8499_v14 = vld [vmem:[%s11463_s8 + $0x70] sm:$0xff] }
 0x29a   :  { %9551 = vmatprep.subr.bf16.mxu1 %v9550_v17  ;;  %9555 = vmatprep.subr.bf16.mxu0 %v9554_v18  ;;  %v9584_v17 = vpack.c.bf16 %v4786_v7, %v4782_v5  ;;  %v9588_v18 = vpack.c.bf16 %v4788_v11, %v4784_v9  ;;  %v8498_v5 = vld [vmem:[%s11463_s8 + $0x68] sm:$0xff]  ;;  %v5445_v11 = vld [vmem:[%s11463_s8 + $0x30] sm:$0xff]  ;;  %v8500_v16 = vld [vmem:[%s11463_s8 + $0x78] sm:$0xff] }
 0x29b   :  { %v10662_v15 = vpack.c.bf16 %v5446_v12, %v5445_v11 }
 0x29f   :  { %8475 = vmatmul.mubr.msk.f32.vlgmr.msra.gmra.mrb[8].mxu1 %vm384_vm2, %v4000_v29  ;;  %8476 = vmatmul.mubr.msk.f32.vlgmr.msra.gmra.mrb[8].mxu0 %vm384_vm2, %v4000_v29  ;;  %v9592_v29 = vpack.c.bf16 %v4944_v23, %v4940_v22  ;;  %v5413_v22 = vld [vmem:[%s11462_s7] sm:$0xf] }
 0x2a0   :  { %9553 = vmatpush1.bf16.msra.mxu1 %v9552_v27  ;;  %9557 = vmatpush1.bf16.msra.mxu0 %v9556_v28  ;;  %v5101_v27 = vld [vmem:[#allocation2 + $0x798] sm:$0xff] }
 0x2a1   :  { %4225 = vmatprep.mubr.f32.mxu1 %v10221_v56  ;;  %4296 = vmatprep.mubr.f32.mxu0 %v10221_v56  ;;  %v5105_v28 = vld [vmem:[#allocation2 + $0x7b8] sm:$0xff] }
 0x2a2   :  { %9559 = vmatprep.subr.bf16.mxu1 %v9558_v30  ;;  %9563 = vmatprep.subr.bf16.mxu0 %v9562_v31  ;;  %v9596_v30 = vpack.c.bf16 %v4946_v39, %v4942_v24  ;;  %v10069_v31 = vpop.eup %10068  ;;  %v9602_v33 = vpack.c.bf16 %v5105_v28, %v5101_v27 }
 0x2a3   :  { %v5264_v6 = vrot.slane %v10069_v31, 6 }
 0x2a7   :  { %8477 = vmatmul.mubr.msk.f32.vlgmr.msra.gmra.mrb[8].mxu1 %vm384_vm2, %v10553_v43  ;;  %8478 = vmatmul.mubr.msk.f32.vlgmr.msra.gmra.mrb[8].mxu0 %vm384_vm2, %v10553_v43  ;;  %v9600_v43 = vpack.c.bf16 %v5102_v42, %v5098_v34 }
 0x2a8   :  { %9561 = vmatpush1.bf16.msra.mxu1 %v9560_v40  ;;  %9565 = vmatpush1.bf16.msra.mxu0 %v9564_v41  ;;  %v5259_v40 = vld [vmem:[#allocation2 + $0x7d8] sm:$0xff] }
 0x2a9   :  { %4383 = vmatprep.mubr.f32.mxu1 %v10221_v56  ;;  %4454 = vmatprep.mubr.f32.mxu0 %v10221_v56  ;;  %v5263_v41 = vld [vmem:[#allocation2 + $0x7f8] sm:$0xff] }
 0x2aa   :  { %9567 = vmatprep.subr.bf16.mxu1 %v9566_v44  ;;  %9571 = vmatprep.subr.bf16.mxu0 %v9570_v45  ;;  %v9604_v44 = vpack.c.bf16 %v5104_v36, %v5100_v35  ;;  %v4948_v45 = vrot.slane %v10069_v31, 2  ;;  %v9610_v46 = vpack.c.bf16 %v5263_v41, %v5259_v40  ;;  %v6622_v40 = vld [vmem:[%s11465_s10 + $0x8] sm:$0xff]  ;;  %v8520_v41 = vld [vmem:[%s11465_s10 + $0x20] sm:$0xff] }
 0x2af   :  { %8479 = vmatmul.mubr.msk.f32.vlgmr.msra.gmra.mrb[8].mxu1 %vm384_vm2, %v4316_v53  ;;  %8480 = vmatmul.mubr.msk.f32.vlgmr.msra.gmra.mrb[8].mxu0 %vm384_vm2, %v4316_v53  ;;  %v5440_v53 = vld [vmem:[%s11463_s8 + $0x8] sm:$0xff] }
 0x2b0   :  { %9569 = vmatpush1.bf16.msra.mxu1 %v9568_v52  ;;  %9573 = vmatpush1.bf16.msra.mxu0 %v9572_v13  ;;  %v5106_v52 = vrot.slane %v10069_v31, 4  ;;  %v5439_v13 = vld [vmem:[%s11463_s8] sm:$0xff] }
 0x2b1   :  { %4541 = vmatprep.mubr.f32.mxu1 %v10221_v56  ;;  %4612 = vmatprep.mubr.f32.mxu0 %v10221_v56  ;;  %v10603_v58 = vpack.c.bf16 %v5440_v53, %v5439_v13 }
 0x2b2   :  { %9575 = vmatprep.subr.bf16.mxu1 %v9574_v54  ;;  %9579 = vmatprep.subr.bf16.mxu0 %v9578_v55  ;;  %v8493_v54 = vld [vmem:[%s11463_s8 + $0x40] sm:$0xff]  ;;  %v8494_v55 = vld [vmem:[%s11463_s8 + $0x48] sm:$0xff] }
 0x2b3   :  { %v10605_v59 = vpack.c.bf16 %v8494_v55, %v8493_v54 }
 0x2b7   :  { %8481 = vmatmul.mubr.msk.f32.vlgmr.msra.gmra.mrb[8].mxu1 %vm384_vm2, %v4474_v3  ;;  %8482 = vmatmul.mubr.msk.f32.vlgmr.msra.gmra.mrb[8].mxu0 %vm384_vm2, %v4474_v3  ;;  %v5443_v3 = vld [vmem:[%s11463_s8 + $0x20] sm:$0xff] }
 0x2b8   :  { %9577 = vmatpush1.bf16.msra.mxu1 %v9576_v0  ;;  %9581 = vmatpush1.bf16.msra.mxu0 %v9580_v2  ;;  %v10623_v0 = vpack.c.bf16 %v5442_v61, %v5441_v60  ;;  %v10625_v2 = vpack.c.bf16 %v8496_v63, %v8495_v62 }
 0x2b9   :  { %4699 = vmatprep.mubr.f32.mxu1 %v10221_v56  ;;  %4770 = vmatprep.mubr.f32.mxu0 %v10221_v56 }
 0x2ba   :  { %9583 = vmatprep.subr.bf16.mxu1 %v9582_v8  ;;  %9587 = vmatprep.subr.bf16.mxu0 %v9586_v4  ;;  %v5444_v8 = vld [vmem:[%s11463_s8 + $0x28] sm:$0xff]  ;;  %v8497_v4 = vld [vmem:[%s11463_s8 + $0x60] sm:$0xff] }
 0x2bb   :  { %v10643_v7 = vpack.c.bf16 %v5444_v8, %v5443_v3  ;;  %v10645_v9 = vpack.c.bf16 %v8498_v5, %v8497_v4 }
 0x2bf   :  { %8483 = vmatmul.mubr.msk.f32.vlgmr.msra.gmra.mrb[8].mxu1 %vm384_vm2, %v4632_v19  ;;  %8484 = vmatmul.mubr.msk.f32.vlgmr.msra.gmra.mrb[8].mxu0 %vm384_vm2, %v4632_v19 }
 0x2c0   :  { %9585 = vmatpush1.bf16.msra.mxu1 %v9584_v17  ;;  %9589 = vmatpush1.bf16.msra.mxu0 %v9588_v18  ;;  %v10667_v17 = vpack.c.bf16 %v8500_v16, %v8499_v14  ;;  %v5415_v18 = vlaneseq }
 0x2c1   :  { %4857 = vmatprep.mubr.f32.mxu1 %v10221_v56  ;;  %4928 = vmatprep.mubr.f32.mxu0 %v10221_v56 }
 0x2c2   :  { %9591 = vmatprep.subr.bf16.mxu1 %v9590_v20  ;;  %9595 = vmatprep.subr.bf16.mxu0 %v9594_v21  ;;  %v5416_v19 = vshrl.u32 %v5415_v18, 7 }
 0x2c4   :  { %v5417_v20 = vsub.s32 0, %v5416_v19  ;;  %v5425_v21 = vsub.s32 2, %v5416_v19  ;;  %v5421_v23 = vsub.s32 1, %v5416_v19  ;;  %v5429_v25 = vsub.s32 3, %v5416_v19 }
 0x2c6   :  { %v5418_v24 = vrot.slane %v5413_v22, %v5417_v20  ;;  %v5426_v39 = vrot.slane %v5413_v22, %v5425_v21  ;;  %v5422_v28 = vrot.slane %v5413_v22, %v5421_v23  ;;  %v10225_v23 = vmov 0  }
 0x2c7   :  { %8485 = vmatmul.mubr.msk.f32.vlgmr.msra.gmra.mrb[8].mxu1 %vm384_vm2, %v10069_v31  ;;  %8486 = vmatmul.mubr.msk.f32.vlgmr.msra.gmra.mrb[8].mxu0 %vm384_vm2, %v10069_v31 }
 0x2c8   :  { %9593 = vmatpush1.bf16.msra.mxu1 %v9592_v29  ;;  %9597 = vmatpush1.bf16.msra.mxu0 %v9596_v30 }
 0x2c9   :  { %5015 = vmatprep.mubr.f32.mxu1 %v10221_v56  ;;  %5086 = vmatprep.mubr.f32.mxu0 %v10221_v56 }
 0x2ca   :  { %9599 = vmatprep.subr.bf16.mxu1 %v9598_v32  ;;  %9603 = vmatprep.subr.bf16.mxu0 %v9602_v33  ;;  %v5430_v33 = vrot.slane %v5413_v22, %v5429_v25 }
 0x2cb   :  { %10036 = vset.pattern.permute.xlu0 %v10225_v23  ;;  %10037 = vset.pattern.permute.xlu1 %v10225_v23 }
 0x2cf   :  { %8487 = vmatmul.mubr.msk.f32.vlgmr.msra.gmra.mrb[8].mxu1 %vm384_vm2, %v4948_v45  ;;  %8488 = vmatmul.mubr.msk.f32.vlgmr.msra.gmra.mrb[8].mxu0 %vm384_vm2, %v4948_v45 }
 0x2d0   :  { %9601 = vmatpush1.bf16.msra.mxu1 %v9600_v43  ;;  %9605 = vmatpush1.bf16.msra.mxu0 %v9604_v44  ;;  %v8521_v43 = vld [vmem:[%s11465_s10 + $0x28] sm:$0xff]  ;;  %v10858_v44 = vpack.c.bf16 %v6622_v40, %v6621_v38 }
 0x2d1   :  { %5173 = vmatprep.mubr.f32.mxu1 %v10221_v56  ;;  %5244 = vmatprep.mubr.f32.mxu0 %v10221_v56  ;;  %v10860_v45 = vpack.c.bf16 %v8521_v43, %v8520_v41 }
 0x2d2   :  { %9607 = vmatprep.subr.bf16.mxu1 %v9606_v10  ;;  %9611 = vmatprep.subr.bf16.mxu0 %v9610_v46  ;;  %v6623_v10 = vld [vmem:[%s11465_s10 + $0x10] sm:$0xff]  ;;  %v6624_v46 = vld [vmem:[%s11465_s10 + $0x18] sm:$0xff] }
 0x2d7   :  { %8489 = vmatmul.mubr.msk.f32.vlgmr.msra.gmra.mrb[8].mxu1 %vm384_vm2, %v5106_v52  ;;  %8490 = vmatmul.mubr.msk.f32.vlgmr.msra.gmra.mrb[8].mxu0 %vm384_vm2, %v5106_v52  ;;  %v10886_v52 = vpack.c.bf16 %v8523_v48, %v8522_v47 }
 0x2d8   :  { %9609 = vmatpush1.bf16.msra.mxu1 %v9608_v51  ;;  %9613 = vmatpush1.bf16.msra.mxu0 %v9612_v1  ;;  %v10884_v1 = vpack.c.bf16 %v6624_v46, %v6623_v10  ;;  %v10970_v10 = vld [vmem:[%s11456_s1] sm:$0x3]  ;;  %s10226_s1 = smov 96  }
 0x2d9   :  { %5331 = vmatprep.mubr.f32.mxu1 %v10221_v56  ;;  %5402 = vmatprep.mubr.f32.mxu0 %v10221_v56  ;;  %vm6738_vm5 = vcmp.gt.s32.totalorder %v10970_v10, 0  ;;  %vm6853_vm6 = vcmp.gt.s32.totalorder %v10970_v10, 7  ;;  %vm6961_vm11 = vcmp.gt.s32.totalorder %v10970_v10, 1  ;;  %vm7076_vm12 = vcmp.gt.s32.totalorder %v10970_v10, 6 }
 0x2da   :  { %9614 = vmatprep.subr.bf16.mxu1 %v10222_v57  ;;  %9626 = vmatprep.subr.bf16.mxu0 %v10222_v57  ;;  %vm7187_vm15 = vcmp.gt.s32.totalorder %v10970_v10, 2  ;;  %vm7302_vm0 = vcmp.gt.s32.totalorder %v10970_v10, 5 }
 0x2df   :  { %8491 = vmatmul.mubr.msk.f32.vlgmr.msra.gmra.mrb[8].mxu1 %vm384_vm2, %v5264_v6  ;;  %8492 = vmatmul.mubr.msk.f32.vlgmr.msra.gmra.mrb[8].mxu0 %vm384_vm2, %v5264_v6 }
 0x2e0   :  { %9616 = vmatpush3.bf16.msra.mxu1 %v10603_v58  ;;  %9628 = vmatpush3.bf16.msra.mxu0 %v10605_v59 }
 0x2e1   :  { %9617 = vmatprep.subr.bf16.mxu1 %v10222_v57  ;;  %9629 = vmatprep.subr.bf16.mxu0 %v10222_v57 }
 0x2e2   :  { %8878 = vmatprep.mubr.msk.f32.mxu1 %vm10223_vm3, %v10221_v56  ;;  %8897 = vmatprep.mubr.msk.f32.mxu0 %vm10223_vm3, %v10221_v56 }
 0x2e4   :  { %9619 = vmatpush3.bf16.msra.mxu1 %v10623_v0  ;;  %9631 = vmatpush3.bf16.msra.mxu0 %v10625_v2 }
 0x2e5   :  { %9620 = vmatprep.subr.bf16.mxu1 %v10222_v57  ;;  %9632 = vmatprep.subr.bf16.mxu0 %v10222_v57 }
 0x2e8   :  { %9622 = vmatpush3.bf16.msra.mxu1 %v10643_v7  ;;  %9634 = vmatpush3.bf16.msra.mxu0 %v10645_v9 }
 0x2e9   :  { %9623 = vmatprep.subr.bf16.mxu1 %v10222_v57  ;;  %9635 = vmatprep.subr.bf16.mxu0 %v10222_v57 }
 0x2ec   :  { %9625 = vmatpush3.bf16.msra.mxu1 %v10662_v15  ;;  %9637 = vmatpush3.bf16.msra.mxu0 %v10667_v17 }
 0x2ed   :  { %9638 = vmatprep.subr.bf16.mxu1 %v10222_v57  ;;  %9650 = vmatprep.subr.bf16.mxu0 %v10222_v57 }
 0x3b2   :  { %v5333_v26 = vpop.f32.mrb[8].mxu1  ;;  %v5404_v27 = vpop.f32.mrb[8].mxu0 }
 0x3b3   :  { %v5435_v29 = vadd.f32 %v5418_v24, %v5333_v26  ;;  %v10680_v30 = vadd.f32 %v5426_v39, %v5404_v27  ;;  %v5335_v31 = vpop.f32.mrb[9].mxu1  ;;  %v5406_v32 = vpop.f32.mrb[9].mxu0  ;;  %v10943_v24 = vld [vmem:[%s11466_s11] ss:$0 sm:$0xff]  ;;  %v10948_v39 = vld [vmem:[%s11466_s11 + $0x1] ss:$0 sm:$0xff] }
 0x3b4   :  { %v5436_v34 = vadd.f32 %v5422_v28, %v5335_v31  ;;  %v10687_v42 = vadd.f32 %v5430_v33, %v5406_v32  ;;  %v10957_v31 = vld [vmem:[%s11464_s9] ss:$0 sm:$0xff]  ;;  %v10964_v33 = vld [vmem:[%s11464_s9 + $0x1] ss:$0 sm:$0xff] }
 0x3b5   :  { %6189 = vrot.lane.b32.xlu1 %v10680_v30, %s10224_s29  ;;  %5615 = vrot.lane.b32.xlu0 %v5435_v29, %s10224_s29 }
 0x3b6   :  { %8879 = vmatmul.mubr.msk.f32.vlgmr.msra.gmra.mrb[10].mxu1 %vm5465_vm4, %v5435_v29  ;;  %8898 = vmatmul.mubr.msk.f32.vlgmr.msra.gmra.mrb[10].mxu0 %vm5465_vm4, %v5435_v29 }
 0x3b7   :  { %9640 = vmatpush3.bf16.msra.mxu1 %v10603_v58  ;;  %9652 = vmatpush3.bf16.msra.mxu0 %v10605_v59 }
 0x3b8   :  { %9641 = vmatprep.subr.bf16.mxu1 %v10222_v57  ;;  %9653 = vmatprep.subr.bf16.mxu0 %v10222_v57 }
 0x3b9   :  { %6476 = vrot.lane.b32.xlu1 %v10687_v42, %s10224_s29  ;;  %5902 = vrot.lane.b32.xlu0 %v5436_v34, %s10224_s29 }
 0x3ba   :  { %8916 = vmatprep.mubr.msk.f32.mxu1 %vm10223_vm3, %v10221_v56  ;;  %8935 = vmatprep.mubr.msk.f32.mxu0 %vm10223_vm3, %v10221_v56 }
 0x3bb   :  { %9643 = vmatpush3.bf16.msra.mxu1 %v10623_v0  ;;  %9655 = vmatpush3.bf16.msra.mxu0 %v10625_v2 }
 0x3bc   :  { %9644 = vmatprep.subr.bf16.mxu1 %v10222_v57  ;;  %9656 = vmatprep.subr.bf16.mxu0 %v10222_v57 }
 0x3bf   :  { %9646 = vmatpush3.bf16.msra.mxu1 %v10643_v7  ;;  %9658 = vmatpush3.bf16.msra.mxu0 %v10645_v9 }
 0x3c0   :  { %9647 = vmatprep.subr.bf16.mxu1 %v10222_v57  ;;  %9659 = vmatprep.subr.bf16.mxu0 %v10222_v57 }
 0x3c3   :  { %9649 = vmatpush3.bf16.msra.mxu1 %v10662_v15  ;;  %9661 = vmatpush3.bf16.msra.mxu0 %v10667_v17 }
 0x3c4   :  { %9662 = vmatprep.subr.bf16.mxu1 %v10222_v57  ;;  %9674 = vmatprep.subr.bf16.mxu0 %v10222_v57 }
 0x427   :  { %v5616_v35 = vpop.permute.xlu0 %5615  ;;  %v6190_v37 = vpop.permute.xlu1 %6189 }
 0x428   :  { %8917 = vmatmul.mubr.msk.f32.vlgmr.msra.gmra.mrb[12].mxu1 %vm5465_vm4, %v5616_v35  ;;  %8936 = vmatmul.mubr.msk.f32.vlgmr.msra.gmra.mrb[12].mxu0 %vm5465_vm4, %v5616_v35 }
 0x429   :  { %9664 = vmatpush3.bf16.msra.mxu1 %v10603_v58  ;;  %9676 = vmatpush3.bf16.msra.mxu0 %v10605_v59 }
 0x42a   :  { %9665 = vmatprep.subr.bf16.mxu1 %v10222_v57  ;;  %9677 = vmatprep.subr.bf16.mxu0 %v10222_v57 }
 0x42b   :  { %8954 = vmatprep.mubr.msk.f32.mxu1 %vm10223_vm3, %v10221_v56  ;;  %8973 = vmatprep.mubr.msk.f32.mxu0 %vm10223_vm3, %v10221_v56  ;;  %v5903_v36 = vpop.permute.xlu0 %5902  ;;  %v6477_v49 = vpop.permute.xlu1 %6476 }
 0x42d   :  { %9667 = vmatpush3.bf16.msra.mxu1 %v10623_v0  ;;  %9679 = vmatpush3.bf16.msra.mxu0 %v10625_v2 }
 0x42e   :  { %9668 = vmatprep.subr.bf16.mxu1 %v10222_v57  ;;  %9680 = vmatprep.subr.bf16.mxu0 %v10222_v57 }
 0x431   :  { %9670 = vmatpush3.bf16.msra.mxu1 %v10643_v7  ;;  %9682 = vmatpush3.bf16.msra.mxu0 %v10645_v9 }
 0x432   :  { %9671 = vmatprep.subr.bf16.mxu1 %v10222_v57  ;;  %9683 = vmatprep.subr.bf16.mxu0 %v10222_v57 }
 0x435   :  { %9673 = vmatpush3.bf16.msra.mxu1 %v10662_v15  ;;  %9685 = vmatpush3.bf16.msra.mxu0 %v10667_v17 }
 0x436   :  { %9686 = vmatprep.subr.bf16.mxu1 %v10222_v57  ;;  %9698 = vmatprep.subr.bf16.mxu0 %v10222_v57 }
 0x438   :  { %8955 = vmatmul.mubr.msk.f32.vlgmr.msra.gmra.mrb[14].mxu1 %vm5465_vm4, %v5436_v34  ;;  %8974 = vmatmul.mubr.msk.f32.vlgmr.msra.gmra.mrb[14].mxu0 %vm5465_vm4, %v5436_v34 }
 0x439   :  { %9688 = vmatpush3.bf16.msra.mxu1 %v10603_v58  ;;  %9700 = vmatpush3.bf16.msra.mxu0 %v10605_v59 }
 0x43a   :  { %9689 = vmatprep.subr.bf16.mxu1 %v10222_v57  ;;  %9701 = vmatprep.subr.bf16.mxu0 %v10222_v57 }
 0x43b   :  { %8992 = vmatprep.mubr.msk.f32.mxu1 %vm10223_vm3, %v10221_v56  ;;  %9011 = vmatprep.mubr.msk.f32.mxu0 %vm10223_vm3, %v10221_v56 }
 0x43d   :  { %9691 = vmatpush3.bf16.msra.mxu1 %v10623_v0  ;;  %9703 = vmatpush3.bf16.msra.mxu0 %v10625_v2 }
 0x43e   :  { %9692 = vmatprep.subr.bf16.mxu1 %v10222_v57  ;;  %9704 = vmatprep.subr.bf16.mxu0 %v10222_v57 }
 0x441   :  { %9694 = vmatpush3.bf16.msra.mxu1 %v10643_v7  ;;  %9706 = vmatpush3.bf16.msra.mxu0 %v10645_v9 }
 0x442   :  { %9695 = vmatprep.subr.bf16.mxu1 %v10222_v57  ;;  %9707 = vmatprep.subr.bf16.mxu0 %v10222_v57 }
 0x445   :  { %9697 = vmatpush3.bf16.msra.mxu1 %v10662_v15  ;;  %9709 = vmatpush3.bf16.msra.mxu0 %v10667_v17 }
 0x446   :  { %9710 = vmatprep.subr.bf16.mxu1 %v10222_v57  ;;  %9722 = vmatprep.subr.bf16.mxu0 %v10222_v57 }
 0x448   :  { %8993 = vmatmul.mubr.msk.f32.vlgmr.msra.gmra.mrb[16].mxu1 %vm5465_vm4, %v5903_v36  ;;  %9012 = vmatmul.mubr.msk.f32.vlgmr.msra.gmra.mrb[16].mxu0 %vm5465_vm4, %v5903_v36 }
 0x449   :  { %9712 = vmatpush3.bf16.msra.mxu1 %v10603_v58  ;;  %9724 = vmatpush3.bf16.msra.mxu0 %v10605_v59 }
 0x44a   :  { %9713 = vmatprep.subr.bf16.mxu1 %v10222_v57  ;;  %9725 = vmatprep.subr.bf16.mxu0 %v10222_v57 }
 0x44b   :  { %9030 = vmatprep.mubr.msk.f32.mxu1 %vm10223_vm3, %v10221_v56  ;;  %9049 = vmatprep.mubr.msk.f32.mxu0 %vm10223_vm3, %v10221_v56 }
 0x44d   :  { %9715 = vmatpush3.bf16.msra.mxu1 %v10623_v0  ;;  %9727 = vmatpush3.bf16.msra.mxu0 %v10625_v2 }
 0x44e   :  { %9716 = vmatprep.subr.bf16.mxu1 %v10222_v57  ;;  %9728 = vmatprep.subr.bf16.mxu0 %v10222_v57 }
 0x451   :  { %9718 = vmatpush3.bf16.msra.mxu1 %v10643_v7  ;;  %9730 = vmatpush3.bf16.msra.mxu0 %v10645_v9 }
 0x452   :  { %9719 = vmatprep.subr.bf16.mxu1 %v10222_v57  ;;  %9731 = vmatprep.subr.bf16.mxu0 %v10222_v57 }
 0x455   :  { %9721 = vmatpush3.bf16.msra.mxu1 %v10662_v15  ;;  %9733 = vmatpush3.bf16.msra.mxu0 %v10667_v17 }
 0x456   :  { %9734 = vmatprep.subr.bf16.mxu1 %v10222_v57  ;;  %9746 = vmatprep.subr.bf16.mxu0 %v10222_v57 }
 0x458   :  { %9031 = vmatmul.mubr.msk.f32.vlgmr.msra.gmra.mrb[18].mxu1 %vm5465_vm4, %v10680_v30  ;;  %9050 = vmatmul.mubr.msk.f32.vlgmr.msra.gmra.mrb[18].mxu0 %vm5465_vm4, %v10680_v30 }
 0x459   :  { %9736 = vmatpush3.bf16.msra.mxu1 %v10603_v58  ;;  %9748 = vmatpush3.bf16.msra.mxu0 %v10605_v59 }
 0x45a   :  { %9737 = vmatprep.subr.bf16.mxu1 %v10222_v57  ;;  %9749 = vmatprep.subr.bf16.mxu0 %v10222_v57 }
 0x45b   :  { %9068 = vmatprep.mubr.msk.f32.mxu1 %vm10223_vm3, %v10221_v56  ;;  %9087 = vmatprep.mubr.msk.f32.mxu0 %vm10223_vm3, %v10221_v56 }
 0x45d   :  { %9739 = vmatpush3.bf16.msra.mxu1 %v10623_v0  ;;  %9751 = vmatpush3.bf16.msra.mxu0 %v10625_v2 }
 0x45e   :  { %9740 = vmatprep.subr.bf16.mxu1 %v10222_v57  ;;  %9752 = vmatprep.subr.bf16.mxu0 %v10222_v57 }
 0x461   :  { %9742 = vmatpush3.bf16.msra.mxu1 %v10643_v7  ;;  %9754 = vmatpush3.bf16.msra.mxu0 %v10645_v9 }
 0x462   :  { %9743 = vmatprep.subr.bf16.mxu1 %v10222_v57  ;;  %9755 = vmatprep.subr.bf16.mxu0 %v10222_v57 }
 0x465   :  { %9745 = vmatpush3.bf16.msra.mxu1 %v10662_v15  ;;  %9757 = vmatpush3.bf16.msra.mxu0 %v10667_v17 }
 0x466   :  { %9758 = vmatprep.subr.bf16.mxu1 %v10222_v57  ;;  %9770 = vmatprep.subr.bf16.mxu0 %v10222_v57 }
 0x468   :  { %9069 = vmatmul.mubr.msk.f32.vlgmr.msra.gmra.mrb[20].mxu1 %vm5465_vm4, %v6190_v37  ;;  %9088 = vmatmul.mubr.msk.f32.vlgmr.msra.gmra.mrb[20].mxu0 %vm5465_vm4, %v6190_v37 }
 0x469   :  { %9760 = vmatpush3.bf16.msra.mxu1 %v10603_v58  ;;  %9772 = vmatpush3.bf16.msra.mxu0 %v10605_v59 }
 0x46a   :  { %9761 = vmatprep.subr.bf16.mxu1 %v10222_v57  ;;  %9773 = vmatprep.subr.bf16.mxu0 %v10222_v57 }
 0x46b   :  { %9106 = vmatprep.mubr.msk.f32.mxu1 %vm10223_vm3, %v10221_v56  ;;  %9125 = vmatprep.mubr.msk.f32.mxu0 %vm10223_vm3, %v10221_v56 }
 0x46d   :  { %9763 = vmatpush3.bf16.msra.mxu1 %v10623_v0  ;;  %9775 = vmatpush3.bf16.msra.mxu0 %v10625_v2 }
 0x46e   :  { %9764 = vmatprep.subr.bf16.mxu1 %v10222_v57  ;;  %9776 = vmatprep.subr.bf16.mxu0 %v10222_v57 }
 0x471   :  { %9766 = vmatpush3.bf16.msra.mxu1 %v10643_v7  ;;  %9778 = vmatpush3.bf16.msra.mxu0 %v10645_v9 }
 0x472   :  { %9767 = vmatprep.subr.bf16.mxu1 %v10222_v57  ;;  %9779 = vmatprep.subr.bf16.mxu0 %v10222_v57 }
 0x475   :  { %9769 = vmatpush3.bf16.msra.mxu1 %v10662_v15  ;;  %9781 = vmatpush3.bf16.msra.mxu0 %v10667_v17 }
 0x476   :  { %9782 = vmatprep.subr.bf16.mxu1 %v10222_v57  ;;  %9794 = vmatprep.subr.bf16.mxu0 %v10222_v57 }
 0x478   :  { %9107 = vmatmul.mubr.msk.f32.vlgmr.msra.gmra.mrb[22].mxu1 %vm5465_vm4, %v10687_v42  ;;  %9126 = vmatmul.mubr.msk.f32.vlgmr.msra.gmra.mrb[22].mxu0 %vm5465_vm4, %v10687_v42 }
 0x479   :  { %9784 = vmatpush3.bf16.msra.mxu1 %v10603_v58  ;;  %9796 = vmatpush3.bf16.msra.mxu0 %v10605_v59 }
 0x47a   :  { %9785 = vmatprep.subr.bf16.mxu1 %v10222_v57  ;;  %9797 = vmatprep.subr.bf16.mxu0 %v10222_v57 }
 0x47b   :  { %9144 = vmatprep.mubr.msk.f32.mxu1 %vm10223_vm3, %v10221_v56  ;;  %9163 = vmatprep.mubr.msk.f32.mxu0 %vm10223_vm3, %v10221_v56 }
 0x47d   :  { %9787 = vmatpush3.bf16.msra.mxu1 %v10623_v0  ;;  %9799 = vmatpush3.bf16.msra.mxu0 %v10625_v2 }
 0x47e   :  { %9788 = vmatprep.subr.bf16.mxu1 %v10222_v57  ;;  %9800 = vmatprep.subr.bf16.mxu0 %v10222_v57 }
 0x481   :  { %9790 = vmatpush3.bf16.msra.mxu1 %v10643_v7  ;;  %9802 = vmatpush3.bf16.msra.mxu0 %v10645_v9 }
 0x482   :  { %9791 = vmatprep.subr.bf16.mxu1 %v10222_v57  ;;  %9803 = vmatprep.subr.bf16.mxu0 %v10222_v57 }
 0x485   :  { %9793 = vmatpush3.bf16.msra.mxu1 %v10662_v15  ;;  %9805 = vmatpush3.bf16.msra.mxu0 %v10667_v17 }
 0x486   :  { %9806 = vmatprep.subr.bf16.mxu1 %v10222_v57  ;;  %9812 = vmatprep.subr.bf16.mxu0 %v10222_v57 }
 0x488   :  { %9145 = vmatmul.mubr.msk.f32.vlgmr.msra.gmra.mrb[24].mxu1 %vm5465_vm4, %v6477_v49  ;;  %9164 = vmatmul.mubr.msk.f32.vlgmr.msra.gmra.mrb[24].mxu0 %vm5465_vm4, %v6477_v49 }
 0x489   :  { %v10878_v50 = vpop.f32.mrb[10].mxu1  ;;  %v10880_v51 = vpop.f32.mrb[10].mxu0  ;;  %9808 = vmatpush3.bf16.msra.mxu1 %v10858_v44  ;;  %9814 = vmatpush3.bf16.msra.mxu0 %v10860_v45 }
 0x48a   :  { %v8880_v13 = vpop.f32.mrb[11].mxu1  ;;  %v8899_v53 = vpop.f32.mrb[11].mxu0  ;;  %9809 = vmatprep.subr.bf16.mxu1 %v10222_v57  ;;  %9815 = vmatprep.subr.bf16.mxu0 %v10222_v57  ;;  %v5536_v32 = vadd.f32 %v10957_v31, %v10878_v50 }
 0x48b   :  { %9174 = vmatprep.mubr.msk.f32.mxu1 %vm10223_vm3, %v10221_v56  ;;  %9185 = vmatprep.mubr.msk.f32.mxu0 %vm10223_vm3, %v10221_v56  ;;  %v6739_v53 = vsel %vm6738_vm5, 1, %v10225_v23  ;;  %vm7413_vm5 = vcmp.gt.s32.totalorder %v10970_v10, 3 }
 0x48d   :  { %9811 = vmatpush3.bf16.msra.mxu1 %v10884_v1  ;;  %9817 = vmatpush3.bf16.msra.mxu0 %v10886_v52 }
 0x48e   :  { %9818 = vmatprep.subr.bf16.mxu1 %v10222_v57  ;;  %9824 = vmatprep.subr.bf16.mxu0 %v10222_v57 }
 0x490   :  { %9175 = vmatmul.mubr.f32.vlgmr.msra.gmra.mrb[26].mxu1 %v10221_v56  ;;  %9186 = vmatmul.mubr.f32.vlgmr.msra.gmra.mrb[26].mxu0 %v10221_v56 }
 0x491   :  { %9820 = vmatpush3.bf16.msra.mxu1 %v10858_v44  ;;  %9196 = vmatprep.mubr.msk.f32.mxu1 %vm10223_vm3, %v10221_v56 }
 0x492   :  { %9821 = vmatprep.subr.bf16.mxu1 %v10222_v57  ;;  %9826 = vmatpush3.bf16.msra.mxu0 %v10860_v45 }
 0x493   :  { %9827 = vmatprep.subr.bf16.mxu0 %v10222_v57  ;;  %9207 = vmatprep.mubr.msk.f32.mxu0 %vm10223_vm3, %v10221_v56 }
 0x495   :  { %9823 = vmatpush3.bf16.msra.mxu1 %v10884_v1 }
 0x496   :  { %9829 = vmatpush3.bf16.msra.mxu0 %v10886_v52  ;;  %9830 = vmatprep.subr.bf16.mxu1 %v10222_v57 }
 0x497   :  { %9836 = vmatprep.subr.bf16.mxu0 %v10222_v57 }
 0x4fb   :  { %v10912_v54 = vpop.f32.mrb[12].mxu1  ;;  %v10914_v55 = vpop.f32.mrb[12].mxu0 }
 0x4fc   :  { %v8918_v58 = vpop.f32.mrb[13].mxu1  ;;  %v8937_v59 = vpop.f32.mrb[13].mxu0 }
 0x50b   :  { %v10916_v60 = vpop.f32.mrb[14].mxu1  ;;  %v10918_v6 = vpop.f32.mrb[14].mxu0 }
 0x50c   :  { %v8956_v61 = vpop.f32.mrb[15].mxu1  ;;  %v8975_v62 = vpop.f32.mrb[15].mxu0 }
 0x51b   :  { %v10920_v63 = vpop.f32.mrb[16].mxu1  ;;  %v10922_v0 = vpop.f32.mrb[16].mxu0 }
 0x51c   :  { %v8994_v2 = vpop.f32.mrb[17].mxu1  ;;  %v9013_v3 = vpop.f32.mrb[17].mxu0 }
 0x52b   :  { %v10924_v8 = vpop.f32.mrb[18].mxu1  ;;  %v10926_v4 = vpop.f32.mrb[18].mxu0 }
 0x52c   :  { %v9032_v5 = vpop.f32.mrb[19].mxu1  ;;  %v9051_v7 = vpop.f32.mrb[19].mxu0 }
 0x52d   :  { %v6854_v5 = vsel %vm6853_vm6, 1, %v10225_v23  ;;  %vm7528_vm6 = vcmp.gt.s32.totalorder %v10970_v10, 4 }
 0x53b   :  { %v10928_v9 = vpop.f32.mrb[20].mxu1  ;;  %v10930_v11 = vpop.f32.mrb[20].mxu0 }
 0x53c   :  { %v9070_v12 = vpop.f32.mrb[21].mxu1  ;;  %v9089_v14 = vpop.f32.mrb[21].mxu0 }
 0x54b   :  { %v10932_v15 = vpop.f32.mrb[22].mxu1  ;;  %v10934_v16 = vpop.f32.mrb[22].mxu0 }
 0x54c   :  { %v9108_v17 = vpop.f32.mrb[23].mxu1  ;;  %v9127_v18 = vpop.f32.mrb[23].mxu0 }
 0x55b   :  { %v10936_v19 = vpop.f32.mrb[24].mxu1  ;;  %v6616_v20 = vpop.f32.mrb[24].mxu0 }
 0x55c   :  { %v9146_v21 = vpop.f32.mrb[25].mxu1  ;;  %v9165_v22 = vpop.f32.mrb[25].mxu0  ;;  %v6617_v34 = vadd.f32 %v10964_v33, %v6616_v20 }
 0x563   :  { %v6708_v25 = vpop.f32.mrb[26].mxu1  ;;  %v6823_v26 = vpop.f32.mrb[26].mxu0 }
 0x564   :  { %v6709_v27 = vadd.f32 %v10943_v24, %v6708_v25  ;;  %v6824_v28 = vadd.f32 %v10948_v39, %v6823_v26  ;;  %v9176_v29 = vpop.f32.mrb[27].mxu1  ;;  %v9187_v30 = vpop.f32.mrb[27].mxu0 }
 0x566   :  { %6835 = vrot.lane.b32.xlu1 %v6824_v28, %s10224_s29  ;;  %6720 = vrot.lane.b32.xlu0 %v6709_v27, %s10224_s29  ;;  %v6712_v42 = vadd.f32 %v6709_v27, %v5536_v32  ;;  %v6827_v35 = vadd.f32 %v6824_v28, %v6617_v34 }
 0x568   :  { %v8526_v36 = vmul.f32 -1.442695, %v6712_v42  ;;  %v8528_v37 = vmul.f32 -1.442695, %v6827_v35 }
 0x56a   :  { %10070 = vpow2.f32 %v8526_v36 }
 0x56b   :  { %10072 = vpow2.f32 %v8528_v37 }
 0x574   :  { %v10071_v38 = vpop.eup %10070 }
 0x575   :  { %v10073_v40 = vpop.eup %10072  ;;  %v6716_v41 = vadd.f32 1.0, %v10071_v38 }
 0x576   :  { %v6831_v43 = vadd.f32 1.0, %v10073_v40 }
 0x577   :  { %10074 = vrcp.f32 %v6716_v41  ;;  %v5686_v41 = vadd.f32 %v10957_v31, %v10912_v54  ;;  %v6962_v54 = vsel %vm6961_vm11, 1, %v10225_v23 }
 0x578   :  { %10076 = vrcp.f32 %v6831_v43 }
 0x581   :  { %v10075_v46 = vpop.eup %10074 }
 0x582   :  { %v10077_v47 = vpop.eup %10076  ;;  %v6730_v7 = vsub.f32 1.0, %v10075_v46  ;;  %v6736_v17 = vmul.f32 0.0, %v10075_v46 }
 0x583   :  { %v6845_v25 = vsub.f32 1.0, %v10077_v47  ;;  %v6851_v27 = vmul.f32 0.0, %v10077_v47 }
 0x5d8   :  { %v6836_v48 = vpop.permute.xlu1 %6835  ;;  %v6721_v49 = vpop.permute.xlu0 %6720 }
 0x5d9   :  { %v6838_v50 = vmul.f32 %v10077_v47, %v6836_v48  ;;  %v6723_v13 = vmul.f32 %v10075_v46, %v6721_v49  ;;  %v6473_v47 = vadd.f32 %v10964_v33, %v10934_v16  ;;  %v7077_v16 = vsel %vm7076_vm12, 1, %v10225_v23 }
 0x5db   :  { %6840 = vrot.lane.b32.xlu1 %v6838_v50, %s10224_s29  ;;  %6725 = vrot.lane.b32.xlu0 %v6723_v13, %s10224_s29 }
 0x5df   :  { %6741 = vperm.xlu0 %10036, %v6739_v53  }
 0x64d   :  { %v6841_v58 = vpop.permute.xlu1 %6840  ;;  %v6726_v59 = vpop.permute.xlu0 %6725 }
 0x64e   :  { %v6843_v61 = vadd.f32 %v6841_v58, %v6617_v34  ;;  %v6728_v62 = vadd.f32 %v6726_v59, %v5536_v32 }
 0x650   :  { %10078 = vtanh.f32 %v6843_v61 }
 0x651   :  { %10080 = vtanh.f32 %v6728_v62 }
 0x65a   :  { %v10079_v2 = vpop.eup %10078 }
 0x65b   :  { %v10081_v3 = vpop.eup %10080  ;;  %6847 = vrot.lane.b32.xlu0 %v10079_v2, %s10226_s1 }
 0x65c   :  { %6732 = vrot.lane.b32.xlu1 %v10081_v3, %s10226_s1 }
 0x65e   :  { %v10980_v14 = vpop.permute.xlu0 %6741 }
 0x65f   :  { %vm6743_vm7 = vcmp.eq.s32.totalorder %v10980_v14, 1 }
 0x660   :  { %6856 = vperm.xlu1 %10037, %v6854_v5  }
 0x6cd   :  { %v6848_v22 = vpop.permute.xlu0 %6847 }
 0x6ce   :  { %v6733_v12 = vpop.permute.xlu1 %6732  ;;  %v6850_v26 = vmul.f32 %v6848_v22, %v6845_v25 }
 0x6cf   :  { %v6735_v18 = vmul.f32 %v6733_v12, %v6730_v7 }
 0x6d0   :  { %v6852_v28 = vadd.f32 %v6851_v27, %v6850_v26 }
 0x6d1   :  { %v6737_v20 = vadd.f32 %v6736_v17, %v6735_v18 }
 0x6d3   :  { %v10985_v21 = vsel %vm6743_vm7, %v6737_v20, 0.0 }
 0x6d4   :  { %6746 = vrot.lane.b32.xlu1 %v10985_v21, %s10226_s1 }
 0x6df   :  { %v10989_v29 = vpop.permute.xlu1 %6856 }
 0x6e0   :  { %vm6858_vm9 = vcmp.eq.s32.totalorder %v10989_v29, 1 }
 0x6e1   :  { %v10994_v30 = vsel %vm6858_vm9, %v6852_v28, 0.0 }
 0x6e2   :  { %8529 = vst.msk [vmem:[%s11467_s12 + $0xe] sm:$0x3] %vm6861_vm8, %v10994_v30  ;;  %6976 = vrot.lane.b32.xlu0 %v10994_v30, %s10226_s1 }
 0x746   :  { %v6747_v32 = vpop.permute.xlu1 %6746 }
 0x747   :  { %6750 = vst.msk [vmem:[%s11467_s12] sm:$0x3] %vm6749_vm10, %v6747_v32  ;;  %9197 = vmatmul.mubr.msk.f32.vlgmr.msra.gmra.mrb[28].mxu1 %vm227_vm1, %v6747_v32 }
 0x748   :  { %9832 = vmatpush3.bf16.msra.mxu1 %v10858_v44  ;;  %9218 = vmatprep.mubr.msk.f32.mxu1 %vm10223_vm3, %v10221_v56 }
 0x749   :  { %9833 = vmatprep.subr.bf16.mxu1 %v10222_v57 }
 0x74c   :  { %9835 = vmatpush3.bf16.msra.mxu1 %v10884_v1 }
 0x74d   :  { %9842 = vmatprep.subr.bf16.mxu1 %v10222_v57 }
 0x754   :  { %v6977_v34 = vpop.permute.xlu0 %6976 }
 0x755   :  { %9208 = vmatmul.mubr.msk.f32.vlgmr.msra.gmra.mrb[28].mxu0 %vm227_vm1, %v6977_v34 }
 0x756   :  { %9838 = vmatpush3.bf16.msra.mxu0 %v10860_v45  ;;  %9229 = vmatprep.mubr.msk.f32.mxu0 %vm10223_vm3, %v10221_v56 }
 0x757   :  { %9839 = vmatprep.subr.bf16.mxu0 %v10222_v57 }
 0x75a   :  { %9841 = vmatpush3.bf16.msra.mxu0 %v10886_v52 }
 0x75b   :  { %9848 = vmatprep.subr.bf16.mxu0 %v10222_v57 }
 0x81a   :  { %v6931_v42 = vpop.f32.mrb[28].mxu1 }
 0x81b   :  { %v6932_v35 = vadd.f32 %v10943_v24, %v6931_v42  ;;  %v9198_v36 = vpop.f32.mrb[29].mxu1 }
 0x81d   :  { %6943 = vrot.lane.b32.xlu1 %v6932_v35, %s10224_s29  ;;  %v6935_v43 = vadd.f32 %v6932_v35, %v5686_v41 }
 0x81f   :  { %v8531_v46 = vmul.f32 -1.442695, %v6935_v43 }
 0x821   :  { %10082 = vpow2.f32 %v8531_v46 }
 0x828   :  { %v7046_v37 = vpop.f32.mrb[28].mxu0 }
 0x829   :  { %v7047_v38 = vadd.f32 %v10948_v39, %v7046_v37  ;;  %v9209_v40 = vpop.f32.mrb[29].mxu0 }
 0x82b   :  { %7058 = vrot.lane.b32.xlu0 %v7047_v38, %s10224_s29  ;;  %v7050_v48 = vadd.f32 %v7047_v38, %v6473_v47  ;;  %v10083_v49 = vpop.eup %10082 }
 0x82c   :  { %v6939_v13 = vadd.f32 1.0, %v10083_v49 }
 0x82d   :  { %v8534_v50 = vmul.f32 -1.442695, %v7050_v48 }
 0x82f   :  { %10084 = vpow2.f32 %v8534_v50 }
 0x830   :  { %10086 = vrcp.f32 %v6939_v13 }
 0x839   :  { %v10085_v53 = vpop.eup %10084 }
 0x83a   :  { %v10087_v58 = vpop.eup %10086  ;;  %v7054_v59 = vadd.f32 1.0, %v10085_v53 }
 0x83b   :  { %v6953_v25 = vsub.f32 1.0, %v10087_v58  ;;  %v6959_v28 = vmul.f32 %v10087_v58, %v10985_v21 }
 0x83c   :  { %10088 = vrcp.f32 %v7054_v59 }
 0x846   :  { %v10089_v2 = vpop.eup %10088 }
 0x847   :  { %v7068_v35 = vsub.f32 1.0, %v10089_v2  ;;  %v7074_v38 = vmul.f32 %v10089_v2, %v10994_v30 }
 0x88f   :  { %v6944_v61 = vpop.permute.xlu1 %6943 }
 0x890   :  { %v6946_v62 = vmul.f32 %v10087_v58, %v6944_v61  ;;  %v5829_v58 = vadd.f32 %v10957_v31, %v10916_v60  ;;  %v7188_v60 = vsel %vm7187_vm15, 1, %v10225_v23 }
 0x892   :  { %6948 = vrot.lane.b32.xlu1 %v6946_v62, %s10224_s29  ;;  %v6330_v62 = vadd.f32 %v10964_v33, %v10930_v11  ;;  %v7303_v11 = vsel %vm7302_vm0, 1, %v10225_v23 }
 0x896   :  { %6964 = vperm.xlu1 %10037, %v6962_v54  }
 0x89a   :  { %7079 = vperm.xlu1 %10037, %v7077_v16  }
 0x89d   :  { %v7059_v3 = vpop.permute.xlu0 %7058 }
 0x89e   :  { %v7061_v5 = vmul.f32 %v10089_v2, %v7059_v3 }
 0x8a0   :  { %7063 = vrot.lane.b32.xlu0 %v7061_v5, %s10224_s29 }
 0x904   :  { %v6949_v7 = vpop.permute.xlu1 %6948 }
 0x905   :  { %v6951_v12 = vadd.f32 %v6949_v7, %v5686_v41 }
 0x907   :  { %10090 = vtanh.f32 %v6951_v12 }
 0x911   :  { %v10091_v17 = vpop.eup %10090 }
 0x912   :  { %v7064_v18 = vpop.permute.xlu0 %7063  ;;  %6955 = vrot.lane.b32.xlu0 %v10091_v17, %s10226_s1 }
 0x913   :  { %v7066_v20 = vadd.f32 %v7064_v18, %v6473_v47 }
 0x915   :  { %10092 = vtanh.f32 %v7066_v20  ;;  %v11037_v27 = vpop.permute.xlu1 %6964 }
 0x916   :  { %vm6966_vm13 = vcmp.eq.s32.totalorder %v11037_v27, 1 }
 0x919   :  { %v11051_v37 = vpop.permute.xlu1 %7079 }
 0x91a   :  { %vm7081_vm14 = vcmp.eq.s32.totalorder %v11051_v37, 1 }
 0x91f   :  { %v10093_v22 = vpop.eup %10092 }
 0x920   :  { %7070 = vrot.lane.b32.xlu0 %v10093_v22, %s10226_s1 }
 0x984   :  { %v6956_v26 = vpop.permute.xlu0 %6955 }
 0x985   :  { %v6958_v32 = vmul.f32 %v6956_v26, %v6953_v25 }
 0x987   :  { %v11040_v34 = vadd.f32 %v6959_v28, %v6958_v32 }
 0x989   :  { %v11047_v42 = vsel %vm6966_vm13, %v11040_v34, %v10985_v21 }
 0x98a   :  { %7087 = vrot.lane.b32.xlu1 %v11047_v42, %s10226_s1 }
 0x992   :  { %v7071_v36 = vpop.permute.xlu0 %7070 }
 0x993   :  { %v7073_v40 = vmul.f32 %v7071_v36, %v7068_v35 }
 0x995   :  { %v7075_v41 = vadd.f32 %v7074_v38, %v7073_v40 }
 0x997   :  { %v7083_v43 = vsel %vm7081_vm14, %v7075_v41, 0.0  ;;  %v11060_v21 = vsel %vm7081_vm14, %v7075_v41, %v10994_v30 }
 0x998   :  { %8535 = vst.msk [vmem:[%s11467_s12 + $0xc] sm:$0x3] %vm6861_vm8, %v7083_v43  ;;  %7202 = vrot.lane.b32.xlu0 %v11060_v21, %s10226_s1 }
 0x9fc   :  { %v7088_v46 = vpop.permute.xlu1 %7087 }
 0x9fd   :  { %9219 = vmatmul.mubr.msk.f32.vlgmr.msra.gmra.mrb[30].mxu1 %vm227_vm1, %v7088_v46 }
 0x9fe   :  { %9844 = vmatpush3.bf16.msra.mxu1 %v10858_v44  ;;  %9240 = vmatprep.mubr.msk.f32.mxu1 %vm10223_vm3, %v10221_v56 }
 0x9ff   :  { %9845 = vmatprep.subr.bf16.mxu1 %v10222_v57 }
 0xa02   :  { %9847 = vmatpush3.bf16.msra.mxu1 %v10884_v1 }
 0xa03   :  { %9854 = vmatprep.subr.bf16.mxu1 %v10222_v57 }
 0xa0a   :  { %v7203_v30 = vpop.permute.xlu0 %7202 }
 0xa0b   :  { %9230 = vmatmul.mubr.msk.f32.vlgmr.msra.gmra.mrb[30].mxu0 %vm227_vm1, %v7203_v30 }
 0xa0c   :  { %9850 = vmatpush3.bf16.msra.mxu0 %v10860_v45  ;;  %9251 = vmatprep.mubr.msk.f32.mxu0 %vm10223_vm3, %v10221_v56 }
 0xa0d   :  { %9851 = vmatprep.subr.bf16.mxu0 %v10222_v57 }
 0xa10   :  { %9853 = vmatpush3.bf16.msra.mxu0 %v10886_v52 }
 0xa11   :  { %9860 = vmatprep.subr.bf16.mxu0 %v10222_v57 }
 0xad0   :  { %v7157_v47 = vpop.f32.mrb[30].mxu1 }
 0xad1   :  { %v7158_v48 = vadd.f32 %v10943_v24, %v7157_v47  ;;  %v9220_v49 = vpop.f32.mrb[31].mxu1 }
 0xad3   :  { %7169 = vrot.lane.b32.xlu1 %v7158_v48, %s10224_s29  ;;  %v7161_v59 = vadd.f32 %v7158_v48, %v5829_v58 }
 0xad5   :  { %v8537_v61 = vmul.f32 -1.442695, %v7161_v59 }
 0xad7   :  { %10094 = vpow2.f32 %v8537_v61 }
 0xade   :  { %v7272_v50 = vpop.f32.mrb[30].mxu0 }
 0xadf   :  { %v7273_v13 = vadd.f32 %v10948_v39, %v7272_v50  ;;  %v9231_v53 = vpop.f32.mrb[31].mxu0 }
 0xae1   :  { %7284 = vrot.lane.b32.xlu0 %v7273_v13, %s10224_s29  ;;  %v7276_v54 = vadd.f32 %v7273_v13, %v6330_v62  ;;  %v10095_v16 = vpop.eup %10094 }
 0xae2   :  { %v7165_v3 = vadd.f32 1.0, %v10095_v16 }
 0xae3   :  { %v8540_v2 = vmul.f32 -1.442695, %v7276_v54 }
 0xae5   :  { %10096 = vpow2.f32 %v8540_v2 }
 0xae6   :  { %10098 = vrcp.f32 %v7165_v3 }
 0xaef   :  { %v10097_v5 = vpop.eup %10096 }
 0xaf0   :  { %v10099_v7 = vpop.eup %10098  ;;  %v7280_v12 = vadd.f32 1.0, %v10097_v5 }
 0xaf1   :  { %v7179_v40 = vsub.f32 1.0, %v10099_v7  ;;  %v7185_v46 = vmul.f32 %v10099_v7, %v11047_v42 }
 0xaf2   :  { %10100 = vrcp.f32 %v7280_v12  ;;  %v5973_v12 = vadd.f32 %v10957_v31, %v10920_v63  ;;  %v7414_v63 = vsel %vm7413_vm5, 1, %v10225_v23 }
 0xafc   :  { %v10101_v20 = vpop.eup %10100 }
 0xafd   :  { %v7294_v49 = vsub.f32 1.0, %v10101_v20  ;;  %v7300_v53 = vmul.f32 %v10101_v20, %v11060_v21 }
 0xb45   :  { %v7170_v17 = vpop.permute.xlu1 %7169 }
 0xb46   :  { %v7172_v18 = vmul.f32 %v10099_v7, %v7170_v17 }
 0xb48   :  { %7174 = vrot.lane.b32.xlu1 %v7172_v18, %s10224_s29 }
 0xb4c   :  { %7190 = vperm.xlu1 %10037, %v7188_v60   ;;  %v6186_v60 = vadd.f32 %v10964_v33, %v10926_v4  ;;  %v7529_v4 = vsel %vm7528_vm6, 1, %v10225_v23 }
 0xb50   :  { %7305 = vperm.xlu1 %10037, %v7303_v11  }
 0xb53   :  { %v7285_v22 = vpop.permute.xlu0 %7284 }
 0xb54   :  { %v7287_v25 = vmul.f32 %v10101_v20, %v7285_v22 }
 0xb56   :  { %7289 = vrot.lane.b32.xlu0 %v7287_v25, %s10224_s29 }
 0xbba   :  { %v7175_v26 = vpop.permute.xlu1 %7174 }
 0xbbb   :  { %v7177_v28 = vadd.f32 %v7175_v26, %v5829_v58 }
 0xbbd   :  { %10102 = vtanh.f32 %v7177_v28 }
 0xbc7   :  { %v10103_v32 = vpop.eup %10102 }
 0xbc8   :  { %v7290_v35 = vpop.permute.xlu0 %7289  ;;  %7181 = vrot.lane.b32.xlu0 %v10103_v32, %s10226_s1 }
 0xbc9   :  { %v7292_v36 = vadd.f32 %v7290_v35, %v6330_v62 }
 0xbcb   :  { %10104 = vtanh.f32 %v7292_v36  ;;  %v11098_v43 = vpop.permute.xlu1 %7190 }
 0xbcc   :  { %vm7192_vm2 = vcmp.eq.s32.totalorder %v11098_v43, 1 }
 0xbcf   :  { %v11112_v13 = vpop.permute.xlu1 %7305 }
 0xbd0   :  { %vm7307_vm4 = vcmp.eq.s32.totalorder %v11112_v13, 1 }
 0xbd5   :  { %v10105_v38 = vpop.eup %10104 }
 0xbd6   :  { %7296 = vrot.lane.b32.xlu0 %v10105_v38, %s10226_s1 }
 0xc3a   :  { %v7182_v41 = vpop.permute.xlu0 %7181 }
 0xc3b   :  { %v7184_v30 = vmul.f32 %v7182_v41, %v7179_v40 }
 0xc3d   :  { %v11101_v47 = vadd.f32 %v7185_v46, %v7184_v30 }
 0xc3f   :  { %v11108_v48 = vsel %vm7192_vm2, %v11101_v47, %v11047_v42 }
 0xc40   :  { %7313 = vrot.lane.b32.xlu1 %v11108_v48, %s10226_s1 }
 0xc48   :  { %v7297_v50 = vpop.permute.xlu0 %7296 }
 0xc49   :  { %v7299_v58 = vmul.f32 %v7297_v50, %v7294_v49 }
 0xc4b   :  { %v7301_v59 = vadd.f32 %v7300_v53, %v7299_v58 }
 0xc4d   :  { %v7309_v61 = vsel %vm7307_vm4, %v7301_v59, 0.0  ;;  %v11121_v42 = vsel %vm7307_vm4, %v7301_v59, %v11060_v21 }
 0xc4e   :  { %8541 = vst.msk [vmem:[%s11467_s12 + $0xa] sm:$0x3] %vm6861_vm8, %v7309_v61  ;;  %7428 = vrot.lane.b32.xlu0 %v11121_v42, %s10226_s1 }
 0xcb2   :  { %v7314_v62 = vpop.permute.xlu1 %7313 }
 0xcb3   :  { %9241 = vmatmul.mubr.msk.f32.vlgmr.msra.gmra.mrb[32].mxu1 %vm227_vm1, %v7314_v62 }
 0xcb4   :  { %9856 = vmatpush3.bf16.msra.mxu1 %v10858_v44  ;;  %9262 = vmatprep.mubr.msk.f32.mxu1 %vm10223_vm3, %v10221_v56 }
 0xcb5   :  { %9857 = vmatprep.subr.bf16.mxu1 %v10222_v57 }
 0xcb8   :  { %9859 = vmatpush3.bf16.msra.mxu1 %v10884_v1 }
 0xcb9   :  { %9866 = vmatprep.subr.bf16.mxu1 %v10222_v57 }
 0xcc0   :  { %v7429_v21 = vpop.permute.xlu0 %7428 }
 0xcc1   :  { %9252 = vmatmul.mubr.msk.f32.vlgmr.msra.gmra.mrb[32].mxu0 %vm227_vm1, %v7429_v21 }
 0xcc2   :  { %9862 = vmatpush3.bf16.msra.mxu0 %v10860_v45  ;;  %9273 = vmatprep.mubr.msk.f32.mxu0 %vm10223_vm3, %v10221_v56 }
 0xcc3   :  { %9863 = vmatprep.subr.bf16.mxu0 %v10222_v57 }
 0xcc6   :  { %9865 = vmatpush3.bf16.msra.mxu0 %v10886_v52 }
 0xcc7   :  { %9872 = vmatprep.subr.bf16.mxu0 %v10222_v57 }
 0xd86   :  { %v7383_v54 = vpop.f32.mrb[32].mxu1 }
 0xd87   :  { %v7384_v16 = vadd.f32 %v10943_v24, %v7383_v54  ;;  %v9242_v2 = vpop.f32.mrb[33].mxu1 }
 0xd89   :  { %7395 = vrot.lane.b32.xlu1 %v7384_v16, %s10224_s29  ;;  %v7387_v17 = vadd.f32 %v7384_v16, %v5973_v12 }
 0xd8b   :  { %v8543_v18 = vmul.f32 -1.442695, %v7387_v17 }
 0xd8d   :  { %10106 = vpow2.f32 %v8543_v18 }
 0xd94   :  { %v7498_v3 = vpop.f32.mrb[32].mxu0 }
 0xd95   :  { %v7499_v5 = vadd.f32 %v10948_v39, %v7498_v3  ;;  %v9253_v7 = vpop.f32.mrb[33].mxu0 }
 0xd97   :  { %7510 = vrot.lane.b32.xlu0 %v7499_v5, %s10224_s29  ;;  %v7502_v11 = vadd.f32 %v7499_v5, %v6186_v60  ;;  %v10107_v20 = vpop.eup %10106 }
 0xd98   :  { %v7391_v25 = vadd.f32 1.0, %v10107_v20 }
 0xd99   :  { %v8546_v22 = vmul.f32 -1.442695, %v7502_v11 }
 0xd9b   :  { %10108 = vpow2.f32 %v8546_v22 }
 0xd9c   :  { %10110 = vrcp.f32 %v7391_v25 }
 0xda5   :  { %v10109_v26 = vpop.eup %10108 }
 0xda6   :  { %v10111_v28 = vpop.eup %10110  ;;  %v7506_v32 = vadd.f32 1.0, %v10109_v26 }
 0xda7   :  { %v7405_v10 = vsub.f32 1.0, %v10111_v28  ;;  %v7411_v61 = vmul.f32 %v10111_v28, %v11108_v48 }
 0xda8   :  { %10112 = vrcp.f32 %v7506_v32 }
 0xdb2   :  { %v10113_v38 = vpop.eup %10112 }
 0xdb3   :  { %v7520_v16 = vsub.f32 1.0, %v10113_v38  ;;  %v7526_v5 = vmul.f32 %v10113_v38, %v11121_v42 }
 0xdfb   :  { %v7396_v35 = vpop.permute.xlu1 %7395 }
 0xdfc   :  { %v7398_v36 = vmul.f32 %v10111_v28, %v7396_v35  ;;  %v6116_v28 = vadd.f32 %v10957_v31, %v10924_v8 }
 0xdfe   :  { %7400 = vrot.lane.b32.xlu1 %v7398_v36, %s10224_s29  ;;  %v6043_v36 = vadd.f32 %v10964_v33, %v10922_v0 }
 0xe02   :  { %7416 = vperm.xlu1 %10037, %v7414_v63  }
 0xe06   :  { %7531 = vperm.xlu1 %10037, %v7529_v4  }
 0xe09   :  { %v7511_v40 = vpop.permute.xlu0 %7510 }
 0xe0a   :  { %v7513_v41 = vmul.f32 %v10113_v38, %v7511_v40 }
 0xe0c   :  { %7515 = vrot.lane.b32.xlu0 %v7513_v41, %s10224_s29 }
 0xe70   :  { %v7401_v46 = vpop.permute.xlu1 %7400 }
 0xe71   :  { %v7403_v30 = vadd.f32 %v7401_v46, %v5973_v12 }
 0xe73   :  { %10114 = vtanh.f32 %v7403_v30 }
 0xe7d   :  { %v10115_v49 = vpop.eup %10114 }
 0xe7e   :  { %v7516_v50 = vpop.permute.xlu0 %7515  ;;  %7407 = vrot.lane.b32.xlu0 %v10115_v49, %s10226_s1 }
 0xe7f   :  { %v7518_v53 = vadd.f32 %v7516_v50, %v6186_v60 }
 0xe81   :  { %10116 = vtanh.f32 %v7518_v53  ;;  %v11159_v59 = vpop.permute.xlu1 %7416 }
 0xe82   :  { %vm7418_vm11 = vcmp.eq.s32.totalorder %v11159_v59, 1 }
 0xe85   :  { %v11173_v3 = vpop.permute.xlu1 %7531 }
 0xe86   :  { %vm7533_vm12 = vcmp.eq.s32.totalorder %v11173_v3, 1 }
 0xe8b   :  { %v10117_v58 = vpop.eup %10116 }
 0xe8c   :  { %7522 = vrot.lane.b32.xlu0 %v10117_v58, %s10226_s1 }
 0xef0   :  { %v7408_v23 = vpop.permute.xlu0 %7407 }
 0xef1   :  { %v7410_v62 = vmul.f32 %v7408_v23, %v7405_v10 }
 0xef3   :  { %v11162_v21 = vadd.f32 %v7411_v61, %v7410_v62 }
 0xef5   :  { %v11169_v54 = vsel %vm7418_vm11, %v11162_v21, %v11108_v48 }
 0xef6   :  { %7539 = vrot.lane.b32.xlu1 %v11169_v54, %s10226_s1 }
 0xefe   :  { %v7523_v2 = vpop.permute.xlu0 %7522 }
 0xeff   :  { %v7525_v7 = vmul.f32 %v7523_v2, %v7520_v16 }
 0xf01   :  { %v7527_v12 = vadd.f32 %v7526_v5, %v7525_v7 }
 0xf03   :  { %v7535_v17 = vsel %vm7533_vm12, %v7527_v12, 0.0  ;;  %v11182_v48 = vsel %vm7533_vm12, %v7527_v12, %v11121_v42 }
 0xf04   :  { %8547 = vst.msk [vmem:[%s11467_s12 + $0x8] sm:$0x3] %vm6861_vm8, %v7535_v17  ;;  %7647 = vrot.lane.b32.xlu0 %v11182_v48, %s10226_s1 }
 0xf68   :  { %v7540_v18 = vpop.permute.xlu1 %7539 }
 0xf69   :  { %9263 = vmatmul.mubr.msk.f32.vlgmr.msra.gmra.mrb[34].mxu1 %vm227_vm1, %v7540_v18 }
 0xf6a   :  { %9868 = vmatpush3.bf16.msra.mxu1 %v10858_v44  ;;  %9284 = vmatprep.mubr.msk.f32.mxu1 %vm10223_vm3, %v10221_v56 }
 0xf6b   :  { %9869 = vmatprep.subr.bf16.mxu1 %v10222_v57 }
 0xf6e   :  { %9871 = vmatpush3.bf16.msra.mxu1 %v10884_v1 }
 0xf6f   :  { %9878 = vmatprep.subr.bf16.mxu1 %v10222_v57 }
 0xf76   :  { %v7648_v42 = vpop.permute.xlu0 %7647 }
 0xf77   :  { %9274 = vmatmul.mubr.msk.f32.vlgmr.msra.gmra.mrb[34].mxu0 %vm227_vm1, %v7648_v42 }
 0xf78   :  { %9874 = vmatpush3.bf16.msra.mxu0 %v10860_v45  ;;  %9295 = vmatprep.mubr.msk.f32.mxu0 %vm10223_vm3, %v10221_v56 }
 0xf79   :  { %9875 = vmatprep.subr.bf16.mxu0 %v10222_v57 }
 0xf7c   :  { %9877 = vmatpush3.bf16.msra.mxu0 %v10886_v52 }
 0xf7d   :  { %9884 = vmatprep.subr.bf16.mxu0 %v10222_v57 }
0x103c   :  { %v7609_v60 = vpop.f32.mrb[34].mxu1 }
0x103d   :  { %v7610_v11 = vadd.f32 %v10943_v24, %v7609_v60  ;;  %v9264_v20 = vpop.f32.mrb[35].mxu1 }
0x103f   :  { %7621 = vrot.lane.b32.xlu1 %v7610_v11, %s10224_s29  ;;  %v7613_v32 = vadd.f32 %v7610_v11, %v6116_v28 }
0x1041   :  { %v8549_v35 = vmul.f32 -1.442695, %v7613_v32 }
0x1043   :  { %10118 = vpow2.f32 %v8549_v35 }
0x104a   :  { %v7717_v22 = vpop.f32.mrb[34].mxu0 }
0x104b   :  { %v7718_v25 = vadd.f32 %v10948_v39, %v7717_v22  ;;  %v9275_v26 = vpop.f32.mrb[35].mxu0 }
0x104d   :  { %7729 = vrot.lane.b32.xlu0 %v7718_v25, %s10224_s29  ;;  %v7721_v63 = vadd.f32 %v7718_v25, %v6043_v36  ;;  %v10119_v4 = vpop.eup %10118 }
0x104e   :  { %v7617_v40 = vadd.f32 1.0, %v10119_v4  ;;  %v6260_v4 = vadd.f32 %v10957_v31, %v10928_v9 }
0x104f   :  { %v8552_v38 = vmul.f32 -1.442695, %v7721_v63 }
0x1051   :  { %10120 = vpow2.f32 %v8552_v38 }
0x1052   :  { %10122 = vrcp.f32 %v7617_v40 }
0x105b   :  { %v10121_v41 = vpop.eup %10120 }
0x105c   :  { %v10123_v46 = vpop.eup %10122  ;;  %v7725_v30 = vadd.f32 1.0, %v10121_v41  ;;  %v5899_v41 = vadd.f32 %v10964_v33, %v10918_v6 }
0x105d   :  { %v7631_v2 = vsub.f32 1.0, %v10123_v46  ;;  %v7637_v7 = vmul.f32 %v10123_v46, %v11169_v54 }
0x105e   :  { %10124 = vrcp.f32 %v7725_v30 }
0x1068   :  { %v10125_v8 = vpop.eup %10124 }
0x1069   :  { %v7739_v42 = vsub.f32 1.0, %v10125_v8  ;;  %v7745_v11 = vmul.f32 %v10125_v8, %v11182_v48 }
0x10b1   :  { %v7622_v49 = vpop.permute.xlu1 %7621 }
0x10b2   :  { %v7624_v50 = vmul.f32 %v10123_v46, %v7622_v49 }
0x10b4   :  { %7626 = vrot.lane.b32.xlu1 %v7624_v50, %s10224_s29 }
0x10bf   :  { %v7730_v53 = vpop.permute.xlu0 %7729 }
0x10c0   :  { %v7732_v58 = vmul.f32 %v10125_v8, %v7730_v53 }
0x10c2   :  { %7734 = vrot.lane.b32.xlu0 %v7732_v58, %s10224_s29 }
0x1126   :  { %v7627_v0 = vpop.permute.xlu1 %7626 }
0x1127   :  { %v7629_v10 = vadd.f32 %v7627_v0, %v6116_v28 }
0x1129   :  { %10126 = vtanh.f32 %v7629_v10 }
0x1133   :  { %v10127_v23 = vpop.eup %10126 }
0x1134   :  { %v7735_v61 = vpop.permute.xlu0 %7734  ;;  %7633 = vrot.lane.b32.xlu1 %v10127_v23, %s10226_s1 }
0x1135   :  { %v7737_v62 = vadd.f32 %v7735_v61, %v6043_v36 }
0x1137   :  { %10128 = vtanh.f32 %v7737_v62 }
0x1141   :  { %v10129_v16 = vpop.eup %10128 }
0x1142   :  { %7741 = vrot.lane.b32.xlu0 %v10129_v16, %s10226_s1 }
0x11a6   :  { %v7634_v5 = vpop.permute.xlu1 %7633 }
0x11a7   :  { %v7636_v12 = vmul.f32 %v7634_v5, %v7631_v2 }
0x11a9   :  { %v11217_v17 = vadd.f32 %v7637_v7, %v7636_v12 }
0x11ab   :  { %v11223_v18 = vsel %vm7533_vm12, %v11217_v17, %v11169_v54 }
0x11ac   :  { %7751 = vrot.lane.b32.xlu1 %v11223_v18, %s10226_s1 }
0x11b4   :  { %v7742_v60 = vpop.permute.xlu0 %7741 }
0x11b5   :  { %v7744_v20 = vmul.f32 %v7742_v60, %v7739_v42 }
0x11b7   :  { %v11228_v22 = vadd.f32 %v7745_v11, %v7744_v20 }
0x11b9   :  { %v11234_v25 = vsel %vm7418_vm11, %v11228_v22, %v11182_v48  ;;  %v7748_v27 = vsel %vm7418_vm11, %v11228_v22, 0.0 }
0x11ba   :  { %7859 = vrot.lane.b32.xlu0 %v11234_v25, %s10226_s1 }
0x121e   :  { %v7752_v54 = vpop.permute.xlu1 %7751 }
0x121f   :  { %9285 = vmatmul.mubr.msk.f32.vlgmr.msra.gmra.mrb[36].mxu1 %vm227_vm1, %v7752_v54 }
0x1220   :  { %9880 = vmatpush3.bf16.msra.mxu1 %v10858_v44  ;;  %9306 = vmatprep.mubr.msk.f32.mxu1 %vm10223_vm3, %v10221_v56 }
0x1221   :  { %9881 = vmatprep.subr.bf16.mxu1 %v10222_v57 }
0x1224   :  { %9883 = vmatpush3.bf16.msra.mxu1 %v10884_v1 }
0x1225   :  { %9890 = vmatprep.subr.bf16.mxu1 %v10222_v57 }
0x122c   :  { %v7860_v26 = vpop.permute.xlu0 %7859 }
0x122d   :  { %9296 = vmatmul.mubr.msk.f32.vlgmr.msra.gmra.mrb[36].mxu0 %vm227_vm1, %v7860_v26 }
0x122e   :  { %9886 = vmatpush3.bf16.msra.mxu0 %v10860_v45  ;;  %9317 = vmatprep.mubr.msk.f32.mxu0 %vm10223_vm3, %v10221_v56 }
0x122f   :  { %9887 = vmatprep.subr.bf16.mxu0 %v10222_v57 }
0x1232   :  { %9889 = vmatpush3.bf16.msra.mxu0 %v10886_v52 }
0x1233   :  { %9896 = vmatprep.subr.bf16.mxu0 %v10222_v57 }
0x12f2   :  { %v7821_v48 = vpop.f32.mrb[36].mxu1 }
0x12f3   :  { %v7822_v28 = vadd.f32 %v10943_v24, %v7821_v48  ;;  %v9286_v32 = vpop.f32.mrb[37].mxu1 }
0x12f5   :  { %7833 = vrot.lane.b32.xlu1 %v7822_v28, %s10224_s29  ;;  %v7825_v38 = vadd.f32 %v7822_v28, %v6260_v4 }
0x12f7   :  { %v8555_v40 = vmul.f32 -1.442695, %v7825_v38 }
0x12f9   :  { %10130 = vpow2.f32 %v8555_v40 }
0x1300   :  { %v7929_v35 = vpop.f32.mrb[36].mxu0 }
0x1301   :  { %v7930_v36 = vadd.f32 %v10948_v39, %v7929_v35  ;;  %v9297_v63 = vpop.f32.mrb[37].mxu0 }
0x1303   :  { %7941 = vrot.lane.b32.xlu0 %v7930_v36, %s10224_s29  ;;  %v7933_v46 = vadd.f32 %v7930_v36, %v5899_v41  ;;  %v10131_v30 = vpop.eup %10130 }
0x1304   :  { %v7829_v50 = vadd.f32 1.0, %v10131_v30 }
0x1305   :  { %v8558_v49 = vmul.f32 -1.442695, %v7933_v46 }
0x1307   :  { %10132 = vpow2.f32 %v8558_v49 }
0x1308   :  { %10134 = vrcp.f32 %v7829_v50 }
0x1311   :  { %v10133_v8 = vpop.eup %10132 }
0x1312   :  { %v10135_v53 = vpop.eup %10134  ;;  %v7937_v58 = vadd.f32 1.0, %v10133_v8 }
0x1313   :  { %v7843_v12 = vsub.f32 1.0, %v10135_v53  ;;  %v7849_v60 = vmul.f32 %v10135_v53, %v11223_v18 }
0x1314   :  { %10136 = vrcp.f32 %v7937_v58 }
0x131e   :  { %v10137_v9 = vpop.eup %10136 }
0x131f   :  { %v7951_v26 = vsub.f32 1.0, %v10137_v9  ;;  %v7957_v28 = vmul.f32 %v10137_v9, %v11234_v25 }
0x1367   :  { %v7834_v0 = vpop.permute.xlu1 %7833 }
0x1368   :  { %v7836_v10 = vmul.f32 %v10135_v53, %v7834_v0 }
0x136a   :  { %7838 = vrot.lane.b32.xlu1 %v7836_v10, %s10224_s29 }
0x1375   :  { %v7942_v23 = vpop.permute.xlu0 %7941 }
0x1376   :  { %v7944_v61 = vmul.f32 %v10137_v9, %v7942_v23 }
0x1378   :  { %7946 = vrot.lane.b32.xlu0 %v7944_v61, %s10224_s29 }
0x13dc   :  { %v7839_v6 = vpop.permute.xlu1 %7838 }
0x13dd   :  { %v7841_v62 = vadd.f32 %v7839_v6, %v6260_v4 }
0x13df   :  { %10138 = vtanh.f32 %v7841_v62 }
0x13e9   :  { %v10139_v16 = vpop.eup %10138 }
0x13ea   :  { %v7947_v2 = vpop.permute.xlu0 %7946  ;;  %7845 = vrot.lane.b32.xlu1 %v10139_v16, %s10226_s1 }
0x13eb   :  { %v7949_v5 = vadd.f32 %v7947_v2, %v5899_v41 }
0x13ed   :  { %10140 = vtanh.f32 %v7949_v5 }
0x13f7   :  { %v10141_v7 = vpop.eup %10140 }
0x13f8   :  { %7953 = vrot.lane.b32.xlu0 %v10141_v7, %s10226_s1 }
0x145c   :  { %v7846_v42 = vpop.permute.xlu1 %7845 }
0x145d   :  { %v7848_v11 = vmul.f32 %v7846_v42, %v7843_v12 }
0x145f   :  { %v11265_v20 = vadd.f32 %v7849_v60, %v7848_v11 }
0x1461   :  { %v11271_v54 = vsel %vm7307_vm4, %v11265_v20, %v11223_v18  ;;  %v7852_v3 = vsel %vm7307_vm4, %v11265_v20, 0.0 }
0x1462   :  { %7963 = vrot.lane.b32.xlu1 %v11271_v54, %s10226_s1 }
0x146a   :  { %v7954_v48 = vpop.permute.xlu0 %7953 }
0x146b   :  { %v7956_v32 = vmul.f32 %v7954_v48, %v7951_v26 }
0x146d   :  { %v11276_v35 = vadd.f32 %v7957_v28, %v7956_v32  ;;  %v10166_v32 = vld [vmem:[%s11466_s11] ss:$0 sm:$0xff] }
0x146f   :  { %v11282_v36 = vsel %vm7192_vm2, %v11276_v35, %v11234_v25 }
0x1470   :  { %8071 = vrot.lane.b32.xlu0 %v11282_v36, %s10226_s1 }
0x14d4   :  { %v7964_v18 = vpop.permute.xlu1 %7963 }
0x14d5   :  { %9307 = vmatmul.mubr.msk.f32.vlgmr.msra.gmra.mrb[38].mxu1 %vm227_vm1, %v7964_v18 }
0x14d6   :  { %9892 = vmatpush3.bf16.msra.mxu1 %v10858_v44  ;;  %9328 = vmatprep.mubr.msk.f32.mxu1 %vm10223_vm3, %v10221_v56 }
0x14d7   :  { %9893 = vmatprep.subr.bf16.mxu1 %v10222_v57 }
0x14da   :  { %9895 = vmatpush3.bf16.msra.mxu1 %v10884_v1 }
0x14e2   :  { %v8072_v63 = vpop.permute.xlu0 %8071 }
0x14e3   :  { %9318 = vmatmul.mubr.msk.f32.vlgmr.msra.gmra.mrb[38].mxu0 %vm227_vm1, %v8072_v63 }
0x14e4   :  { %9898 = vmatpush3.bf16.msra.mxu0 %v10860_v45  ;;  %9339 = vmatprep.mubr.msk.f32.mxu0 %vm10223_vm3, %v10221_v56  ;;  %v6403_v45 = vadd.f32 %v10957_v31, %v10932_v15 }
0x14e5   :  { %9899 = vmatprep.subr.bf16.mxu0 %v10222_v57  ;;  %v5756_v57 = vadd.f32 %v10964_v33, %v10914_v55 }
0x14e8   :  { %9901 = vmatpush3.bf16.msra.mxu0 %v10886_v52 }
0x15a8   :  { %v8033_v44 = vpop.f32.mrb[38].mxu1 }
0x15a9   :  { %v8034_v25 = vadd.f32 %v10943_v24, %v8033_v44  ;;  %v9308_v4 = vpop.f32.mrb[39].mxu1  ;;  %v10167_v44 = vld [vmem:[%s11466_s11 + $0x1] ss:$0 sm:$0xff] }
0x15ab   :  { %8045 = vrot.lane.b32.xlu1 %v8034_v25, %s10224_s29  ;;  %v8037_v56 = vadd.f32 %v8034_v25, %v6403_v45 }
0x15ad   :  { %v8561_v41 = vmul.f32 -1.442695, %v8037_v56  ;;  %v10169_v56 = vld [vmem:[%s11464_s9 + $0x1] ss:$0 sm:$0xff] }
0x15af   :  { %10142 = vpow2.f32 %v8561_v41  ;;  %v5612_v41 = vadd.f32 %v10169_v56, %v10880_v51  ;;  %v6968_v51 = vsel %vm6966_vm13, %v11040_v34, 0.0  ;;  %v7194_v34 = vsel %vm7192_vm2, %v11101_v47, 0.0 }
0x15b0   :  { %v7640_v47 = vsel %vm7533_vm12, %v11217_v17, 0.0 }
0x15b6   :  { %v8141_v38 = vpop.f32.mrb[38].mxu0 }
0x15b7   :  { %v8142_v1 = vadd.f32 %v10948_v39, %v8141_v38  ;;  %v9319_v40 = vpop.f32.mrb[39].mxu0  ;;  %v10168_v38 = vld [vmem:[%s11464_s9] ss:$0 sm:$0xff] }
0x15b9   :  { %8153 = vrot.lane.b32.xlu0 %v8142_v1, %s10224_s29  ;;  %v8145_v52 = vadd.f32 %v8142_v1, %v5756_v57  ;;  %v10143_v24 = vpop.eup %10142  ;;  %v6547_v1 = vadd.f32 %v10168_v38, %v10936_v19 }
0x15ba   :  { %v8041_v30 = vadd.f32 1.0, %v10143_v24 }
0x15bb   :  { %v8564_v46 = vmul.f32 -1.442695, %v8145_v52 }
0x15bd   :  { %10144 = vpow2.f32 %v8564_v46 }
0x15be   :  { %10146 = vrcp.f32 %v8041_v30 }
0x15c7   :  { %v10145_v49 = vpop.eup %10144 }
0x15c8   :  { %v10147_v39 = vpop.eup %10146  ;;  %v8149_v50 = vadd.f32 1.0, %v10145_v49 }
0x15c9   :  { %v8055_v61 = vsub.f32 1.0, %v10147_v39  ;;  %v8061_v62 = vmul.f32 %v10147_v39, %v11271_v54 }
0x15ca   :  { %10148 = vrcp.f32 %v8149_v50 }
0x15d4   :  { %v10149_v15 = vpop.eup %10148 }
0x15d5   :  { %v8163_v7 = vsub.f32 1.0, %v10149_v15  ;;  %v8169_v42 = vmul.f32 %v10149_v15, %v11282_v36 }
0x161d   :  { %v8046_v8 = vpop.permute.xlu1 %8045 }
0x161e   :  { %v8048_v53 = vmul.f32 %v10147_v39, %v8046_v8 }
0x1620   :  { %8050 = vrot.lane.b32.xlu1 %v8048_v53, %s10224_s29 }
0x162b   :  { %v8154_v31 = vpop.permute.xlu0 %8153 }
0x162c   :  { %v8156_v58 = vmul.f32 %v10149_v15, %v8154_v31  ;;  %v7420_v31 = vsel %vm7418_vm11, %v11162_v21, 0.0 }
0x162e   :  { %8158 = vrot.lane.b32.xlu0 %v8156_v58, %s10224_s29 }
0x1692   :  { %v8051_v55 = vpop.permute.xlu1 %8050 }
0x1693   :  { %v8053_v33 = vadd.f32 %v8051_v55, %v6403_v45 }
0x1695   :  { %10150 = vtanh.f32 %v8053_v33 }
0x169f   :  { %v10151_v0 = vpop.eup %10150 }
0x16a0   :  { %v8159_v10 = vpop.permute.xlu0 %8158  ;;  %8057 = vrot.lane.b32.xlu1 %v10151_v0, %s10226_s1 }
0x16a1   :  { %v8161_v9 = vadd.f32 %v8159_v10, %v5756_v57 }
0x16a3   :  { %10152 = vtanh.f32 %v8161_v9 }
0x16ad   :  { %v10153_v23 = vpop.eup %10152 }
0x16ae   :  { %8165 = vrot.lane.b32.xlu0 %v10153_v23, %s10226_s1 }
0x1712   :  { %v8058_v6 = vpop.permute.xlu1 %8057 }
0x1713   :  { %v8060_v16 = vmul.f32 %v8058_v6, %v8055_v61 }
0x1715   :  { %v11311_v2 = vadd.f32 %v8061_v62, %v8060_v16 }
0x1717   :  { %v11317_v5 = vsel %vm7081_vm14, %v11311_v2, %v11271_v54  ;;  %v8064_v29 = vsel %vm7081_vm14, %v11311_v2, 0.0 }
0x1718   :  { %8175 = vrot.lane.b32.xlu1 %v11317_v5, %s10226_s1 }
0x1720   :  { %v8166_v12 = vpop.permute.xlu0 %8165 }
0x1721   :  { %v8168_v60 = vmul.f32 %v8166_v12, %v8163_v7  ;;  %v7960_v7 = vsel %vm7192_vm2, %v11276_v35, 0.0 }
0x1723   :  { %v8170_v11 = vadd.f32 %v8169_v42, %v8168_v60 }
0x1725   :  { %v11325_v26 = vsel %vm6966_vm13, %v8170_v11, %v11282_v36  ;;  %v8172_v21 = vsel %vm6966_vm13, %v8170_v11, 0.0 }
0x1726   :  { %8283 = vrot.lane.b32.xlu0 %v11325_v26, %s10226_s1 }
0x178a   :  { %v8176_v48 = vpop.permute.xlu1 %8175 }
0x178b   :  { %9329 = vmatmul.mubr.msk.f32.vlgmr.msra.gmra.mrb[40].mxu1 %vm227_vm1, %v8176_v48 }
0x1798   :  { %v8284_v54 = vpop.permute.xlu0 %8283 }
0x1799   :  { %9340 = vmatmul.mubr.msk.f32.vlgmr.msra.gmra.mrb[40].mxu0 %vm227_vm1, %v8284_v54 }
0x185e   :  { %v8245_v28 = vpop.f32.mrb[40].mxu1 }
0x185f   :  { %v8246_v18 = vadd.f32 %v10166_v32, %v8245_v28  ;;  %v9330_v63 = vpop.f32.mrb[41].mxu1 }
0x1861   :  { %8257 = vrot.lane.b32.xlu1 %v8246_v18, %s10224_s29  ;;  %v8249_v40 = vadd.f32 %v8246_v18, %v6547_v1 }
0x1863   :  { %v8567_v45 = vmul.f32 -1.442695, %v8249_v40 }
0x1865   :  { %10154 = vpow2.f32 %v8567_v45 }
0x186c   :  { %v8353_v36 = vpop.f32.mrb[40].mxu0 }
0x186d   :  { %v8354_v25 = vadd.f32 %v10167_v44, %v8353_v36  ;;  %v9341_v4 = vpop.f32.mrb[41].mxu0 }
0x186f   :  { %8365 = vrot.lane.b32.xlu0 %v8354_v25, %s10224_s29  ;;  %v8357_v57 = vadd.f32 %v8354_v25, %v5612_v41  ;;  %v10155_v52 = vpop.eup %10154 }
0x1870   :  { %v8253_v46 = vadd.f32 1.0, %v10155_v52 }
0x1871   :  { %v8570_v24 = vmul.f32 -1.442695, %v8357_v57 }
0x1873   :  { %10156 = vpow2.f32 %v8570_v24 }
0x1874   :  { %10158 = vrcp.f32 %v8253_v46 }
0x187d   :  { %v10157_v30 = vpop.eup %10156 }
0x187e   :  { %v10159_v49 = vpop.eup %10158  ;;  %v8361_v39 = vadd.f32 1.0, %v10157_v30 }
0x187f   :  { %v8267_v59 = vsub.f32 1.0, %v10159_v49  ;;  %v8273_v22 = vmul.f32 %v10159_v49, %v11317_v5 }
0x1880   :  { %10160 = vrcp.f32 %v8361_v39 }
0x188a   :  { %v10161_v8 = vpop.eup %10160 }
0x188b   :  { %v8375_v35 = vsub.f32 1.0, %v10161_v8  ;;  %v8381_v12 = vmul.f32 %v10161_v8, %v11325_v26 }
0x18d3   :  { %v8258_v50 = vpop.permute.xlu1 %8257 }
0x18d4   :  { %v8260_v19 = vmul.f32 %v10159_v49, %v8258_v50 }
0x18d6   :  { %8262 = vrot.lane.b32.xlu1 %v8260_v19, %s10224_s29 }
0x18e1   :  { %v8366_v53 = vpop.permute.xlu0 %8365 }
0x18e2   :  { %v8368_v15 = vmul.f32 %v10161_v8, %v8366_v53 }
0x18e4   :  { %8370 = vrot.lane.b32.xlu0 %v8368_v15, %s10224_s29 }
0x18e8   :  { %6970 = vrot.lane.b32.xlu0 %v6968_v51, %s10226_s1 }
0x18ec   :  { %7422 = vrot.lane.b32.xlu0 %v7420_v31, %s10226_s1 }
0x1948   :  { %v8263_v58 = vpop.permute.xlu1 %8262 }
0x1949   :  { %v8265_v55 = vadd.f32 %v8263_v58, %v6547_v1 }
0x194b   :  { %10162 = vtanh.f32 %v8265_v55 }
0x1955   :  { %v10163_v33 = vpop.eup %10162 }
0x1956   :  { %v8371_v0 = vpop.permute.xlu0 %8370  ;;  %8269 = vrot.lane.b32.xlu1 %v10163_v33, %s10226_s1 }
0x1957   :  { %v8373_v10 = vadd.f32 %v8371_v0, %v5612_v41 }
0x1959   :  { %10164 = vtanh.f32 %v8373_v10 }
0x195a   :  { %v6971_v9 = vpop.permute.xlu0 %6970  ;;  %7196 = vrot.lane.b32.xlu1 %v7194_v34, %s10226_s1 }
0x195b   :  { %8532 = vst.msk [vmem:[%s11467_s12 + $0x2] sm:$0x3] %vm6749_vm10, %v6971_v9 }
0x195c   :  { %8565 = vst.msk [vmem:[%s11467_s12 + $0x2] sm:$0x3] %vm6861_vm8, %v8172_v21 }
0x195e   :  { %v7423_v23 = vpop.permute.xlu0 %7422  ;;  %7642 = vrot.lane.b32.xlu1 %v7640_v47, %s10226_s1 }
0x195f   :  { %8544 = vst.msk [vmem:[%s11467_s12 + $0x6] sm:$0x3] %vm6749_vm10, %v7423_v23 }
0x1960   :  { %8553 = vst.msk [vmem:[%s11467_s12 + $0x6] sm:$0x3] %vm6861_vm8, %v7748_v27 }
0x1963   :  { %v10165_v61 = vpop.eup %10164 }
0x1964   :  { %8377 = vrot.lane.b32.xlu0 %v10165_v61, %s10226_s1 }
0x1968   :  { %7854 = vrot.lane.b32.xlu0 %v7852_v3, %s10226_s1 }
0x19c8   :  { %v8270_v17 = vpop.permute.xlu1 %8269 }
0x19c9   :  { %v8272_v6 = vmul.f32 %v8270_v17, %v8267_v59 }
0x19cb   :  { %v8274_v62 = vadd.f32 %v8273_v22, %v8272_v6 }
0x19cc   :  { %v7197_v16 = vpop.permute.xlu1 %7196 }
0x19cd   :  { %8538 = vst.msk [vmem:[%s11467_s12 + $0x4] sm:$0x3] %vm6749_vm10, %v7197_v16  ;;  %v8276_v13 = vsel %vm6858_vm9, %v8274_v62, 0.0  ;;  %v8275_v20 = vsel %vm6858_vm9, %v8274_v62, %v11317_v5 }
0x19ce   :  { %8559 = vst.msk [vmem:[%s11467_s12 + $0x4] sm:$0x3] %vm6861_vm8, %v7960_v7  ;;  %8278 = vrot.lane.b32.xlu0 %v8276_v13, %s10226_s1  ;;  %8387 = vrot.lane.b32.xlu1 %v8275_v20, %s10226_s1 }
0x19d0   :  { %v7643_v43 = vpop.permute.xlu1 %7642 }
0x19d1   :  { %8550 = vst.msk [vmem:[%s11467_s12 + $0x8] sm:$0x3] %vm6749_vm10, %v7643_v43 }
0x19d2   :  { %8066 = vrot.lane.b32.xlu1 %v8064_v29, %s10226_s1  ;;  %s10227_s1 = smov [#allocation5]  }
0x19d3   :  { %s8400_s0 = sshll.u32 %s10227_s1, 4  ;;  %s8401_s0 = int_to_ptr.vmem [resolvable:$true] %s8400_s0 }
0x19d4   :  { %s10192_s4 = scalar_lea.vmem %s8401_s0, 32  ;;  %p10197_p9 = scmp.lt.s32.totalorder %s8401_s0, %s8401_s0 }
0x19d5   :  { %p10193_p8 = scmp.ne.s32.totalorder %s8401_s0, %s10192_s4  ;;  %p10198_p10 = scmp.lt.s32.totalorder %s10192_s4, %s10192_s4 }
0x19d6   :  { %v8378_v5 = vpop.permute.xlu0 %8377 }
0x19d7   :  { %v8380_v42 = vmul.f32 %v8378_v5, %v8375_v35  ;;  %p10199_p11 = por %p10198_p10, %p10197_p9 }
0x19d9   :  { %v8382_v60 = vadd.f32 %v8381_v12, %v8380_v42  ;;  %p10200_p12 = pnand %p10199_p11, %p10193_p8 }
0x19da   :  { %v7855_v11 = vpop.permute.xlu0 %7854 }
0x19db   :  { %v8384_v48 = vsel %vm6743_vm7, %v8382_v60, 0.0  ;;  %8556 = vst.msk [vmem:[%s11467_s12 + $0xa] sm:$0x3] %vm6749_vm10, %v7855_v11  ;;  %v8383_v54 = vsel %vm6743_vm7, %v8382_v60, %v11325_v26 }
0x19dc   :  { %8385 = vst.msk [vmem:[%s11467_s12] sm:$0x3] %vm6861_vm8, %v8384_v48 }
0x1a40   :  { %v8279_v37 = vpop.permute.xlu0 %8278  ;;  %v8388_v2 = vpop.permute.xlu1 %8387 }
0x1a41   :  { %8568 = vst.msk [vmem:[%s11467_s12 + $0xe] sm:$0x3] %vm6749_vm10, %v8279_v37  ;;  %8390 = vst.msk [vmem:[#allocation5] sm:$0x3] %vm6749_vm10, %v8388_v2 }
0x1a42   :  { %8391 = vst.msk [vmem:[#allocation5] sm:$0x3] %vm6861_vm8, %v8383_v54 }
0x1a43   :  { %10203 = shalt.err (!%p10200_p12)
}
0x1a44   :  { %s10204_s21 = scalar_lea.hbm %s11468_s13, 32 }
0x1a45   :  { %p10205_p13 = scmp.ne.s32.totalorder %s11468_s13, %s10204_s21  ;;  %p10208_p0 = scmp.lt.u32.totalorder %s10204_s21, %s11468_s13 }
0x1a47   :  { %p10210_p1 = pnand %p10208_p0, %p10205_p13 }
0x1a49   :  { %10213 = shalt.err (!%p10210_p1)
}
0x1a4a   :  { %8403 = dma.vmem_to_hbm [thread:$0]  %s8401_s0, 32, %s11468_s13, [#allocation4]   ;;  %v8067_v14 = vpop.permute.xlu1 %8066 }
0x1a4b   :  { %8562 = vst.msk [vmem:[%s11467_s12 + $0xc] sm:$0x3] %vm6749_vm10, %v8067_v14 }
0x1a4c   :  { %10216 = dma.done.wait [#allocation4], 32  }
0x1a4d   :  { %10217 = vsyncadd [#allocation4], 4294967264 }
0x1a4e   :  { %8409 = vsyncpa [#allocation3], 1 }
0x1a4f   :  { %8410 = vsyncpa [#allocation4], 1 }

</bundles_post_ra>
